<compile_context>
chip_gen: v7x
topology: tpu7x:2x2x1
jax: 0.10.0
libtpu: 0.0.40
codegen_flags: <defaults>
</compile_context>

<pallas_src>
import math

import jax
import jax.numpy as jnp
from jax.experimental import pallas as pl
from jax.experimental.pallas import tpu as pltpu

BN_EPS = 1e-5


# ------------------------------ Pallas kernel -------------------------------

def _double_conv_kernel(x_ref, w1_ref, b1_ref, w2f_ref, b2f_ref, s2_ref, t2_ref,
                        pad1_ref, o_ref, xpad_ref, midpad_ref):
    """Fused DoubleConv for a block of Nb images.

    x_ref:    (Nb, H, W, Cin)  bf16
    w1_ref:   (9*Cin, Cmid)    bf16   im2col weights, conv1
    b1_ref:   (1, Cmid)        f32    conv1 bias
    w2f_ref:  (9*Cmid, Cout)   bf16   im2col weights, conv2 with BN1 folded in
    b2f_ref:  (1, Cout)        f32    conv2 bias with BN1 shift folded in
    s2_ref/t2_ref: (1, Cout)   f32    folded eval BatchNorm2 scale / shift
    pad1_ref: (1, Cmid)        bf16   halo value (-t1/s1) that keeps the BN1 fold exact
    o_ref:    (Nb, H, W, Cout) f32
    xpad_ref:   VMEM (Nb, H+2, W+2, Cin)  bf16 zero-padded input
    midpad_ref: VMEM (Nb, H+2, W+2, Cmid) bf16 padded intermediate (stays in VMEM)
    """
    Nb, H, W, Cin = x_ref.shape
    Cmid = midpad_ref.shape[3]
    Cout = o_ref.shape[3]
    M = Nb * H * W

    # ---- padded input: write ONLY the 1-wide halo strips + the interior ----
    zrow = jnp.zeros((Nb, 1, W + 2, Cin), xpad_ref.dtype)
    zcol = jnp.zeros((Nb, H + 2, 1, Cin), xpad_ref.dtype)
    xpad_ref[:, 0:1, :, :] = zrow
    xpad_ref[:, H + 1:H + 2, :, :] = zrow
    xpad_ref[:, :, 0:1, :] = zcol
    xpad_ref[:, :, W + 1:W + 2, :] = zcol
    xpad_ref[:, 1:H + 1, 1:W + 1, :] = x_ref[...]
    xp = xpad_ref[...]                                       # (Nb, H+2, W+2, Cin) bf16

    # ---- conv1: ONE im2col matmul (M, 9*Cin) x (9*Cin, Cmid) on the MXU ----
    cols = [xp[:, dy:dy + H, dx:dx + W, :].reshape(M, Cin)
            for dy in range(3) for dx in range(3)]
    patches = jnp.concatenate(cols, axis=1)                  # (M, 9*Cin) bf16
    acc = jnp.dot(patches, w1_ref[...], preferred_element_type=jnp.float32)
    r = jnp.maximum(acc + b1_ref[...], 0.0)                  # bias + ReLU (BN1 folded into conv2)
    # Dropout(p=0.2) -> identity in eval mode.

    # ---- padded intermediate stays in VMEM; halo = -t1/s1 keeps BN1 fold exact ----
    p1 = pad1_ref[...].reshape(1, 1, 1, Cmid)
    midpad_ref[:, 0:1, :, :] = jnp.broadcast_to(p1, (Nb, 1, W + 2, Cmid))
    midpad_ref[:, H + 1:H + 2, :, :] = jnp.broadcast_to(p1, (Nb, 1, W + 2, Cmid))
    midpad_ref[:, :, 0:1, :] = jnp.broadcast_to(p1, (Nb, H + 2, 1, Cmid))
    midpad_ref[:, :, W + 1:W + 2, :] = jnp.broadcast_to(p1, (Nb, H + 2, 1, Cmid))
    midpad_ref[:, 1:H + 1, 1:W + 1, :] = r.astype(midpad_ref.dtype).reshape(Nb, H, W, Cmid)
    mp = midpad_ref[...]                                     # (Nb, H+2, W+2, Cmid) bf16

    # ---- conv2: ONE im2col matmul (M, 9*Cmid) x (9*Cmid, Cout) on the MXU ----
    cols2 = [mp[:, dy:dy + H, dx:dx + W, :].reshape(M, Cmid)
             for dy in range(3) for dx in range(3)]
    patches2 = jnp.concatenate(cols2, axis=1)                # (M, 9*Cmid) bf16
    acc2 = jnp.dot(patches2, w2f_ref[...], preferred_element_type=jnp.float32)
    y2 = jnp.maximum(acc2 + b2f_ref[...], 0.0)               # (folded) bias + ReLU
    y2 = y2 * s2_ref[...] + t2_ref[...]                      # eval BatchNorm2 (folded)

    o_ref[...] = y2.reshape(Nb, H, W, Cout).astype(o_ref.dtype)


# ------------------------------ helpers --------------------------------------

def _vmem_tile_bytes(shape, dtype):
    """VMEM footprint of one buffer with (sublane, lane) tile padding."""
    itemsize = jnp.dtype(dtype).itemsize
    packing = max(1, 4 // itemsize)          # f32: 1, bf16: 2
    shape = tuple(int(d) for d in shape)
    if len(shape) < 2:
        shape = (1,) * (2 - len(shape)) + shape
    lead = 1
    for d in shape[:-2]:
        lead *= d
    sub = -(-shape[-2] // (8 * packing)) * (8 * packing)
    lane = -(-shape[-1] // 128) * 128
    return lead * sub * lane * itemsize


def _pick_batch_block(N, H, W, target_rows=2048):
    """Largest batch block keeping the matmul M-dim modest, preferring >= 2 grid
    steps so both v7x TensorCores get work from the 'parallel' axis."""
    divisors = [d for d in range(1, N + 1) if N % d == 0]
    fits = [d for d in divisors if d * H * W <= target_rows] or [1]
    multi_step = [d for d in fits if N // d >= 2]
    return max(multi_step) if multi_step else max(fits)


# ------------------------------ wrapper --------------------------------------

def double_conv_forward(x_nchw, params):
    """PyTorch-facing forward: NCHW in -> NCHW out (eval-mode DoubleConv)."""
    x = jnp.transpose(x_nchw, (0, 2, 3, 1))                   # NCHW -> NHWC
    N, H, W, Cin = x.shape
    x = x.astype(jnp.bfloat16)                                # bf16 MXU operands

    # PyTorch OIHW -> HWIO (trace-time, free).
    w1_hwio = jnp.transpose(params["w1"], (2, 3, 1, 0)).astype(jnp.float32)
    w2_hwio = jnp.transpose(params["w2"], (2, 3, 1, 0)).astype(jnp.float32)
    Cmid, Cout = w1_hwio.shape[-1], w2_hwio.shape[-1]

    # Fold eval-mode BatchNorm running stats into per-channel scale/shift.
    s1 = params["gamma1"] / jnp.sqrt(params["var1"] + BN_EPS)
    t1 = params["beta1"] - params["mean1"] * s1
    s2 = params["gamma2"] / jnp.sqrt(params["var2"] + BN_EPS)
    t2 = params["beta2"] - params["mean2"] * s2

    # Fold BN1 (affine between ReLU1 and conv2) into conv2:
    #   w2f = w2 * s1 (along input channels),  b2f = b2 + sum_{ky,kx,ci} w2*t1,
    # and pad conv2's halo with -t1/s1 so zero-padding of BN1's output is
    # reproduced exactly at borders.  NOTE: assumes gamma1 != 0 (s1 != 0).
    w2f_hwio = w2_hwio * s1[None, None, :, None]
    b2f = params["b2"] + jnp.einsum("hwio,i->o", w2_hwio, t1)
    pad1 = (-t1 / s1).astype(jnp.bfloat16)

    # im2col weight matrices; row order (ky, kx, ci) matches the kernel's patch order.
    w1_mat = w1_hwio.reshape(9 * Cin, Cmid).astype(jnp.bfloat16)
    w2f_mat = w2f_hwio.reshape(9 * Cmid, Cout).astype(jnp.bfloat16)

    Nb = _pick_batch_block(N, H, W)
    grid = (N // Nb,)

    # Explicit VMEM budget: double-buffered tiles + padded scratches + matmul temps,
    # with 2x headroom; clamp to 48 MiB so it also fits v7x's 64 MiB per-core VMEM.
    est = (2 * _vmem_tile_bytes((Nb, H, W, Cin), jnp.bfloat16)
           + 2 * _vmem_tile_bytes((Nb, H, W, Cout), jnp.float32)
           + 2 * (_vmem_tile_bytes((9 * Cin, Cmid), jnp.bfloat16)
                  + _vmem_tile_bytes((9 * Cmid, Cout), jnp.bfloat16)
                  + 5 * _vmem_tile_bytes((1, max(Cmid, Cout)), jnp.float32))
           + _vmem_tile_bytes((Nb, H + 2, W + 2, Cin), jnp.bfloat16)
           + _vmem_tile_bytes((Nb, H + 2, W + 2, Cmid), jnp.bfloat16)
           + _vmem_tile_bytes((Nb * H * W, 9 * Cin), jnp.bfloat16)
           + _vmem_tile_bytes((Nb * H * W, 9 * Cmid), jnp.bfloat16)
           + 2 * _vmem_tile_bytes((Nb * H * W, max(Cmid, Cout)), jnp.float32))
    vmem_limit = int(min(max(2 * est, 16 * 2 ** 20), 48 * 2 ** 20))

    out_nhwc = pl.pallas_call(
        _double_conv_kernel,
        out_shape=jax.ShapeDtypeStruct((N, H, W, Cout), jnp.float32),
        grid=grid,
        in_specs=[
            pl.BlockSpec((Nb, H, W, Cin), lambda n: (n, 0, 0, 0)),
            pl.BlockSpec((9 * Cin, Cmid), lambda n: (0, 0)),
            pl.BlockSpec((1, Cmid), lambda n: (0, 0)),
            pl.BlockSpec((9 * Cmid, Cout), lambda n: (0, 0)),
            pl.BlockSpec((1, Cout), lambda n: (0, 0)),
            pl.BlockSpec((1, Cout), lambda n: (0, 0)),
            pl.BlockSpec((1, Cout), lambda n: (0, 0)),
            pl.BlockSpec((1, Cmid), lambda n: (0, 0)),
        ],
        out_specs=pl.BlockSpec((Nb, H, W, Cout), lambda n: (n, 0, 0, 0)),
        scratch_shapes=[
            pltpu.VMEM((Nb, H + 2, W + 2, Cin), jnp.bfloat16),
            pltpu.VMEM((Nb, H + 2, W + 2, Cmid), jnp.bfloat16),
        ],
        compiler_params=pltpu.CompilerParams(
            dimension_semantics=("parallel",),
            vmem_limit_bytes=vmem_limit),
    )(x, w1_mat,
      params["b1"].reshape(1, Cmid).astype(jnp.float32),
      w2f_mat,
      b2f.reshape(1, Cout).astype(jnp.float32),
      s2.reshape(1, Cout).astype(jnp.float32),
      t2.reshape(1, Cout).astype(jnp.float32),
      pad1.reshape(1, Cmid))

    return jnp.transpose(out_nhwc, (0, 3, 1, 2))              # NHWC -> NCHW


# ------------------------------ parameters -----------------------------------

def init_double_conv_params(key, cin, cout, cmid=None):
    if cmid is None:
        cmid = cout
    ks = jax.random.split(key, 6)

    def conv_init(kw, kb, ci, co):
        w = jax.random.normal(kw, (co, ci, 3, 3), jnp.float32) / math.sqrt(9.0 * ci)
        b = 0.05 * jax.random.normal(kb, (co,), jnp.float32)
        return w, b

    def bn_init(k, c):
        k1, k2, k3, k4 = jax.random.split(k, 4)
        gamma = 1.0 + 0.1 * jax.random.normal(k1, (c,), jnp.float32)
        beta = 0.1 * jax.random.normal(k2, (c,), jnp.float32)
        mean = 0.1 * jax.random.normal(k3, (c,), jnp.float32)
        var = 1.0 + 0.1 * jnp.abs(jax.random.normal(k4, (c,), jnp.float32))
        return gamma, beta, mean, var

    w1, b1 = conv_init(*jax.random.split(ks[0]), cin, cmid)
    g1, be1, m1, v1 = bn_init(ks[1], cmid)
    w2, b2 = conv_init(*jax.random.split(ks[2]), cmid, cout)
    g2, be2, m2, v2 = bn_init(ks[3], cout)
    return dict(w1=w1, b1=b1, gamma1=g1, beta1=be1, mean1=m1, var1=v1,
                w2=w2, b2=b2, gamma2=g2, beta2=be2, mean2=m2, var2=v2)


# ------------------------------ pure-JAX reference ---------------------------

def _ref_double_conv(x_nchw, params):
    def block(x, w, b, gamma, beta, mean, var):
        y = jax.lax.conv_general_dilated(
            x, w, window_strides=(1, 1), padding=((1, 1), (1, 1)),
            dimension_numbers=("NCHW", "OIHW", "NCHW"),
            precision=jax.lax.Precision.HIGHEST)
        y = jnp.maximum(y + b[None, :, None, None], 0.0)
        scale = gamma / jnp.sqrt(var + BN_EPS)
        shift = beta - mean * scale
        return y * scale[None, :, None, None] + shift[None, :, None, None]

    y = block(x_nchw, params["w1"], params["b1"],
              params["gamma1"], params["beta1"], params["mean1"], params["var1"])
    # Dropout -> identity in eval mode.
    return block(y, params["w2"], params["b2"],
                 params["gamma2"], params["beta2"], params["mean2"], params["var2"])


# ------------------------------ main ------------------------------------------

if __name__ == "__main__":
    key = jax.random.PRNGKey(0)
    kx, kp = jax.random.split(key)

    N, Cin, H, W = 2, 4, 16, 16
    Cout = 16

    x = jax.random.normal(kx, (N, Cin, H, W), jnp.float32)        # NCHW, like PyTorch
    params = init_double_conv_params(kp, Cin, Cout)               # DoubleConv(4, 16)

    fwd = jax.jit(double_conv_forward)
    y = jax.block_until_ready(fwd(x, params))

    assert y.shape == (N, Cout, H, W), y.shape
    assert bool(jnp.all(jnp.isfinite(y)))

    y_ref = _ref_double_conv(x, params)
    # Relative check (bf16 MXU operands vs f32 reference).
    rel_err = float(jnp.max(jnp.abs(y - y_ref) / (1.0 + jnp.abs(y_ref))))
    assert rel_err < 5e-2, f"relative error vs reference: {rel_err}"

    print("KERNEL_OK")
</pallas_src>

<mosaic_0001>
module attributes {stable_mosaic.version = 11 : i64} {
  func.func @_double_conv_kernel(%arg0: i32, %arg1: memref<1x16x16x4xbf16, #tpu.memory_space<vmem>>, %arg2: memref<36x16xbf16, #tpu.memory_space<vmem>>, %arg3: memref<1x16xf32, #tpu.memory_space<vmem>>, %arg4: memref<144x16xbf16, #tpu.memory_space<vmem>>, %arg5: memref<1x16xf32, #tpu.memory_space<vmem>>, %arg6: memref<1x16xf32, #tpu.memory_space<vmem>>, %arg7: memref<1x16xf32, #tpu.memory_space<vmem>>, %arg8: memref<1x16xbf16, #tpu.memory_space<vmem>>, %arg9: memref<1x16x16x16xf32, #tpu.memory_space<vmem>>, %arg10: memref<1x18x18x4xbf16, #tpu.memory_space<vmem>>, %arg11: memref<1x18x18x16xbf16, #tpu.memory_space<vmem>>) attributes {dimension_semantics = [#tpu.dimension_semantics<parallel>], iteration_bounds = array<i64: 2>, scalar_prefetch = 0 : i64, scratch_operands = 2 : i64, tpu.core_type = #tpu.core_type<tc>, window_params = [{transform_indices = @transform_0, window_bounds = array<i64: 1, 16, 16, 4>}, {pipeline_mode = #tpu.pipeline_mode<synchronous>, transform_indices = @transform_1, window_bounds = array<i64: 36, 16>}, {pipeline_mode = #tpu.pipeline_mode<synchronous>, transform_indices = @transform_2, window_bounds = array<i64: 1, 16>}, {pipeline_mode = #tpu.pipeline_mode<synchronous>, transform_indices = @transform_3, window_bounds = array<i64: 144, 16>}, {pipeline_mode = #tpu.pipeline_mode<synchronous>, transform_indices = @transform_4, window_bounds = array<i64: 1, 16>}, {pipeline_mode = #tpu.pipeline_mode<synchronous>, transform_indices = @transform_5, window_bounds = array<i64: 1, 16>}, {pipeline_mode = #tpu.pipeline_mode<synchronous>, transform_indices = @transform_6, window_bounds = array<i64: 1, 16>}, {pipeline_mode = #tpu.pipeline_mode<synchronous>, transform_indices = @transform_7, window_bounds = array<i64: 1, 16>}, {transform_indices = @transform_8, window_bounds = array<i64: 1, 16, 16, 16>}]} {
    %cst = arith.constant 0.000000e+00 : bf16
    %0 = vector.broadcast %cst : bf16 to vector<1x1x18x4xbf16>
    %cst_0 = arith.constant 0.000000e+00 : bf16
    %1 = vector.broadcast %cst_0 : bf16 to vector<1x18x1x4xbf16>
    %c0 = arith.constant 0 : index
    %c0_1 = arith.constant 0 : index
    %c0_2 = arith.constant 0 : index
    %c0_3 = arith.constant 0 : index
    %2 = vector.load %arg10[%c0, %c0_1, %c0_2, %c0_3] : memref<1x18x18x4xbf16, #tpu.memory_space<vmem>>, vector<1x1x18x4xbf16>
    tpu.vector_store %arg10[%c0, %c0_1, %c0_2, %c0_3], %0 {strides = array<i32>} : memref<1x18x18x4xbf16, #tpu.memory_space<vmem>>, vector<1x1x18x4xbf16>,
    %c0_4 = arith.constant 0 : index
    %c17 = arith.constant 17 : index
    %c0_5 = arith.constant 0 : index
    %c0_6 = arith.constant 0 : index
    %3 = vector.load %arg10[%c0_4, %c17, %c0_5, %c0_6] : memref<1x18x18x4xbf16, #tpu.memory_space<vmem>>, vector<1x1x18x4xbf16>
    tpu.vector_store %arg10[%c0_4, %c17, %c0_5, %c0_6], %0 {strides = array<i32>} : memref<1x18x18x4xbf16, #tpu.memory_space<vmem>>, vector<1x1x18x4xbf16>,
    %c0_7 = arith.constant 0 : index
    %c0_8 = arith.constant 0 : index
    %c0_9 = arith.constant 0 : index
    %c0_10 = arith.constant 0 : index
    %4 = vector.load %arg10[%c0_7, %c0_8, %c0_9, %c0_10] : memref<1x18x18x4xbf16, #tpu.memory_space<vmem>>, vector<1x18x1x4xbf16>
    tpu.vector_store %arg10[%c0_7, %c0_8, %c0_9, %c0_10], %1 {strides = array<i32>} : memref<1x18x18x4xbf16, #tpu.memory_space<vmem>>, vector<1x18x1x4xbf16>,
    %c0_11 = arith.constant 0 : index
    %c0_12 = arith.constant 0 : index
    %c17_13 = arith.constant 17 : index
    %c0_14 = arith.constant 0 : index
    %5 = vector.load %arg10[%c0_11, %c0_12, %c17_13, %c0_14] : memref<1x18x18x4xbf16, #tpu.memory_space<vmem>>, vector<1x18x1x4xbf16>
    tpu.vector_store %arg10[%c0_11, %c0_12, %c17_13, %c0_14], %1 {strides = array<i32>} : memref<1x18x18x4xbf16, #tpu.memory_space<vmem>>, vector<1x18x1x4xbf16>,
    %c0_15 = arith.constant 0 : index
    %c0_16 = arith.constant 0 : index
    %c0_17 = arith.constant 0 : index
    %c0_18 = arith.constant 0 : index
    %6 = vector.load %arg1[%c0_15, %c0_16, %c0_17, %c0_18] : memref<1x16x16x4xbf16, #tpu.memory_space<vmem>>, vector<1x16x16x4xbf16>
    %c0_19 = arith.constant 0 : index
    %c1 = arith.constant 1 : index
    %c1_20 = arith.constant 1 : index
    %c0_21 = arith.constant 0 : index
    %7 = vector.load %arg10[%c0_19, %c1, %c1_20, %c0_21] : memref<1x18x18x4xbf16, #tpu.memory_space<vmem>>, vector<1x16x16x4xbf16>
    tpu.vector_store %arg10[%c0_19, %c1, %c1_20, %c0_21], %6 {strides = array<i32>} : memref<1x18x18x4xbf16, #tpu.memory_space<vmem>>, vector<1x16x16x4xbf16>,
    %c0_22 = arith.constant 0 : index
    %c0_23 = arith.constant 0 : index
    %c0_24 = arith.constant 0 : index
    %c0_25 = arith.constant 0 : index
    %8 = vector.load %arg10[%c0_22, %c0_23, %c0_24, %c0_25] : memref<1x18x18x4xbf16, #tpu.memory_space<vmem>>, vector<1x18x18x4xbf16>
    %9 = vector.extract_strided_slice %8 {offsets = [0, 0, 0, 0], sizes = [1, 16, 16, 4], strides = [1, 1, 1, 1]} : vector<1x18x18x4xbf16> to vector<1x16x16x4xbf16>
    %10 = vector.shape_cast %9 : vector<1x16x16x4xbf16> to vector<256x4xbf16>
    %11 = vector.extract_strided_slice %8 {offsets = [0, 0, 1, 0], sizes = [1, 16, 16, 4], strides = [1, 1, 1, 1]} : vector<1x18x18x4xbf16> to vector<1x16x16x4xbf16>
    %12 = vector.shape_cast %11 : vector<1x16x16x4xbf16> to vector<256x4xbf16>
    %13 = vector.extract_strided_slice %8 {offsets = [0, 0, 2, 0], sizes = [1, 16, 16, 4], strides = [1, 1, 1, 1]} : vector<1x18x18x4xbf16> to vector<1x16x16x4xbf16>
    %14 = vector.shape_cast %13 : vector<1x16x16x4xbf16> to vector<256x4xbf16>
    %15 = vector.extract_strided_slice %8 {offsets = [0, 1, 0, 0], sizes = [1, 16, 16, 4], strides = [1, 1, 1, 1]} : vector<1x18x18x4xbf16> to vector<1x16x16x4xbf16>
    %16 = vector.shape_cast %15 : vector<1x16x16x4xbf16> to vector<256x4xbf16>
    %17 = vector.extract_strided_slice %8 {offsets = [0, 1, 1, 0], sizes = [1, 16, 16, 4], strides = [1, 1, 1, 1]} : vector<1x18x18x4xbf16> to vector<1x16x16x4xbf16>
    %18 = vector.shape_cast %17 : vector<1x16x16x4xbf16> to vector<256x4xbf16>
    %19 = vector.extract_strided_slice %8 {offsets = [0, 1, 2, 0], sizes = [1, 16, 16, 4], strides = [1, 1, 1, 1]} : vector<1x18x18x4xbf16> to vector<1x16x16x4xbf16>
    %20 = vector.shape_cast %19 : vector<1x16x16x4xbf16> to vector<256x4xbf16>
    %21 = vector.extract_strided_slice %8 {offsets = [0, 2, 0, 0], sizes = [1, 16, 16, 4], strides = [1, 1, 1, 1]} : vector<1x18x18x4xbf16> to vector<1x16x16x4xbf16>
    %22 = vector.shape_cast %21 : vector<1x16x16x4xbf16> to vector<256x4xbf16>
    %23 = vector.extract_strided_slice %8 {offsets = [0, 2, 1, 0], sizes = [1, 16, 16, 4], strides = [1, 1, 1, 1]} : vector<1x18x18x4xbf16> to vector<1x16x16x4xbf16>
    %24 = vector.shape_cast %23 : vector<1x16x16x4xbf16> to vector<256x4xbf16>
    %25 = vector.extract_strided_slice %8 {offsets = [0, 2, 2, 0], sizes = [1, 16, 16, 4], strides = [1, 1, 1, 1]} : vector<1x18x18x4xbf16> to vector<1x16x16x4xbf16>
    %26 = vector.shape_cast %25 : vector<1x16x16x4xbf16> to vector<256x4xbf16>
    %27 = tpu.concatenate %10, %12, %14, %16, %18, %20, %22, %24, %26 in 1 : vector<256x4xbf16>, vector<256x4xbf16>, vector<256x4xbf16>, vector<256x4xbf16>, vector<256x4xbf16>, vector<256x4xbf16>, vector<256x4xbf16>, vector<256x4xbf16>, vector<256x4xbf16> -> vector<256x36xbf16>
    %c0_26 = arith.constant 0 : index
    %c0_27 = arith.constant 0 : index
    %28 = vector.load %arg2[%c0_26, %c0_27] : memref<36x16xbf16, #tpu.memory_space<vmem>>, vector<36x16xbf16>
    %cst_28 = arith.constant dense<0.000000e+00> : vector<256x16xf32>
    %29 = tpu.matmul %27, %28, %cst_28 {dimension_numbers = #tpu.dot_dimension_numbers<[1], [0], [0], [1], [0, 0, 1, 1], [], []>} : vector<256x36xbf16>, vector<36x16xbf16>, vector<256x16xf32> -> vector<256x16xf32>
    %c0_29 = arith.constant 0 : index
    %c0_30 = arith.constant 0 : index
    %30 = vector.load %arg3[%c0_29, %c0_30] : memref<1x16xf32, #tpu.memory_space<vmem>>, vector<1x16xf32>
    %31 = vector.broadcast %30 : vector<1x16xf32> to vector<256x16xf32>
    %32 = arith.addf %29, %31 : vector<256x16xf32>
    %cst_31 = arith.constant 0.000000e+00 : f32
    %33 = vector.broadcast %cst_31 : f32 to vector<256x16xf32>
    %34 = arith.maximumf %32, %33 : vector<256x16xf32>
    %c0_32 = arith.constant 0 : index
    %c0_33 = arith.constant 0 : index
    %35 = vector.load %arg8[%c0_32, %c0_33] : memref<1x16xbf16, #tpu.memory_space<vmem>>, vector<1x16xbf16>
    %36 = vector.shape_cast %35 : vector<1x16xbf16> to vector<1x1x1x16xbf16>
    %37 = vector.shape_cast %36 : vector<1x1x1x16xbf16> to vector<1x1x1x16xbf16>
    %38 = vector.broadcast %37 : vector<1x1x1x16xbf16> to vector<1x1x18x16xbf16>
    %c0_34 = arith.constant 0 : index
    %c0_35 = arith.constant 0 : index
    %c0_36 = arith.constant 0 : index
    %c0_37 = arith.constant 0 : index
    %39 = vector.load %arg11[%c0_34, %c0_35, %c0_36, %c0_37] : memref<1x18x18x16xbf16, #tpu.memory_space<vmem>>, vector<1x1x18x16xbf16>
    tpu.vector_store %arg11[%c0_34, %c0_35, %c0_36, %c0_37], %38 {strides = array<i32>} : memref<1x18x18x16xbf16, #tpu.memory_space<vmem>>, vector<1x1x18x16xbf16>,
    %40 = vector.shape_cast %36 : vector<1x1x1x16xbf16> to vector<1x1x1x16xbf16>
    %41 = vector.broadcast %40 : vector<1x1x1x16xbf16> to vector<1x1x18x16xbf16>
    %c0_38 = arith.constant 0 : index
    %c17_39 = arith.constant 17 : index
    %c0_40 = arith.constant 0 : index
    %c0_41 = arith.constant 0 : index
    %42 = vector.load %arg11[%c0_38, %c17_39, %c0_40, %c0_41] : memref<1x18x18x16xbf16, #tpu.memory_space<vmem>>, vector<1x1x18x16xbf16>
    tpu.vector_store %arg11[%c0_38, %c17_39, %c0_40, %c0_41], %41 {strides = array<i32>} : memref<1x18x18x16xbf16, #tpu.memory_space<vmem>>, vector<1x1x18x16xbf16>,
    %43 = vector.shape_cast %36 : vector<1x1x1x16xbf16> to vector<1x1x1x16xbf16>
    %44 = vector.broadcast %43 : vector<1x1x1x16xbf16> to vector<1x18x1x16xbf16>
    %c0_42 = arith.constant 0 : index
    %c0_43 = arith.constant 0 : index
    %c0_44 = arith.constant 0 : index
    %c0_45 = arith.constant 0 : index
    %45 = vector.load %arg11[%c0_42, %c0_43, %c0_44, %c0_45] : memref<1x18x18x16xbf16, #tpu.memory_space<vmem>>, vector<1x18x1x16xbf16>
    tpu.vector_store %arg11[%c0_42, %c0_43, %c0_44, %c0_45], %44 {strides = array<i32>} : memref<1x18x18x16xbf16, #tpu.memory_space<vmem>>, vector<1x18x1x16xbf16>,
    %46 = vector.shape_cast %36 : vector<1x1x1x16xbf16> to vector<1x1x1x16xbf16>
    %47 = vector.broadcast %46 : vector<1x1x1x16xbf16> to vector<1x18x1x16xbf16>
    %c0_46 = arith.constant 0 : index
    %c0_47 = arith.constant 0 : index
    %c17_48 = arith.constant 17 : index
    %c0_49 = arith.constant 0 : index
    %48 = vector.load %arg11[%c0_46, %c0_47, %c17_48, %c0_49] : memref<1x18x18x16xbf16, #tpu.memory_space<vmem>>, vector<1x18x1x16xbf16>
    tpu.vector_store %arg11[%c0_46, %c0_47, %c17_48, %c0_49], %47 {strides = array<i32>} : memref<1x18x18x16xbf16, #tpu.memory_space<vmem>>, vector<1x18x1x16xbf16>,
    %49 = arith.truncf %34 : vector<256x16xf32> to vector<256x16xbf16>
    %50 = vector.shape_cast %49 : vector<256x16xbf16> to vector<1x16x16x16xbf16>
    %c0_50 = arith.constant 0 : index
    %c1_51 = arith.constant 1 : index
    %c1_52 = arith.constant 1 : index
    %c0_53 = arith.constant 0 : index
    %51 = vector.load %arg11[%c0_50, %c1_51, %c1_52, %c0_53] : memref<1x18x18x16xbf16, #tpu.memory_space<vmem>>, vector<1x16x16x16xbf16>
    tpu.vector_store %arg11[%c0_50, %c1_51, %c1_52, %c0_53], %50 {strides = array<i32>} : memref<1x18x18x16xbf16, #tpu.memory_space<vmem>>, vector<1x16x16x16xbf16>,
    %c0_54 = arith.constant 0 : index
    %c0_55 = arith.constant 0 : index
    %c0_56 = arith.constant 0 : index
    %c0_57 = arith.constant 0 : index
    %52 = vector.load %arg11[%c0_54, %c0_55, %c0_56, %c0_57] : memref<1x18x18x16xbf16, #tpu.memory_space<vmem>>, vector<1x18x18x16xbf16>
    %53 = vector.extract_strided_slice %52 {offsets = [0, 0, 0, 0], sizes = [1, 16, 16, 16], strides = [1, 1, 1, 1]} : vector<1x18x18x16xbf16> to vector<1x16x16x16xbf16>
    %54 = vector.shape_cast %53 : vector<1x16x16x16xbf16> to vector<256x16xbf16>
    %55 = vector.extract_strided_slice %52 {offsets = [0, 0, 1, 0], sizes = [1, 16, 16, 16], strides = [1, 1, 1, 1]} : vector<1x18x18x16xbf16> to vector<1x16x16x16xbf16>
    %56 = vector.shape_cast %55 : vector<1x16x16x16xbf16> to vector<256x16xbf16>
    %57 = vector.extract_strided_slice %52 {offsets = [0, 0, 2, 0], sizes = [1, 16, 16, 16], strides = [1, 1, 1, 1]} : vector<1x18x18x16xbf16> to vector<1x16x16x16xbf16>
    %58 = vector.shape_cast %57 : vector<1x16x16x16xbf16> to vector<256x16xbf16>
    %59 = vector.extract_strided_slice %52 {offsets = [0, 1, 0, 0], sizes = [1, 16, 16, 16], strides = [1, 1, 1, 1]} : vector<1x18x18x16xbf16> to vector<1x16x16x16xbf16>
    %60 = vector.shape_cast %59 : vector<1x16x16x16xbf16> to vector<256x16xbf16>
    %61 = vector.extract_strided_slice %52 {offsets = [0, 1, 1, 0], sizes = [1, 16, 16, 16], strides = [1, 1, 1, 1]} : vector<1x18x18x16xbf16> to vector<1x16x16x16xbf16>
    %62 = vector.shape_cast %61 : vector<1x16x16x16xbf16> to vector<256x16xbf16>
    %63 = vector.extract_strided_slice %52 {offsets = [0, 1, 2, 0], sizes = [1, 16, 16, 16], strides = [1, 1, 1, 1]} : vector<1x18x18x16xbf16> to vector<1x16x16x16xbf16>
    %64 = vector.shape_cast %63 : vector<1x16x16x16xbf16> to vector<256x16xbf16>
    %65 = vector.extract_strided_slice %52 {offsets = [0, 2, 0, 0], sizes = [1, 16, 16, 16], strides = [1, 1, 1, 1]} : vector<1x18x18x16xbf16> to vector<1x16x16x16xbf16>
    %66 = vector.shape_cast %65 : vector<1x16x16x16xbf16> to vector<256x16xbf16>
    %67 = vector.extract_strided_slice %52 {offsets = [0, 2, 1, 0], sizes = [1, 16, 16, 16], strides = [1, 1, 1, 1]} : vector<1x18x18x16xbf16> to vector<1x16x16x16xbf16>
    %68 = vector.shape_cast %67 : vector<1x16x16x16xbf16> to vector<256x16xbf16>
    %69 = vector.extract_strided_slice %52 {offsets = [0, 2, 2, 0], sizes = [1, 16, 16, 16], strides = [1, 1, 1, 1]} : vector<1x18x18x16xbf16> to vector<1x16x16x16xbf16>
    %70 = vector.shape_cast %69 : vector<1x16x16x16xbf16> to vector<256x16xbf16>
    %71 = tpu.concatenate %54, %56, %58, %60, %62, %64, %66, %68, %70 in 1 : vector<256x16xbf16>, vector<256x16xbf16>, vector<256x16xbf16>, vector<256x16xbf16>, vector<256x16xbf16>, vector<256x16xbf16>, vector<256x16xbf16>, vector<256x16xbf16>, vector<256x16xbf16> -> vector<256x144xbf16>
    %c0_58 = arith.constant 0 : index
    %c0_59 = arith.constant 0 : index
    %72 = vector.load %arg4[%c0_58, %c0_59] : memref<144x16xbf16, #tpu.memory_space<vmem>>, vector<144x16xbf16>
    %cst_60 = arith.constant dense<0.000000e+00> : vector<256x16xf32>
    %73 = tpu.matmul %71, %72, %cst_60 {dimension_numbers = #tpu.dot_dimension_numbers<[1], [0], [0], [1], [0, 0, 1, 1], [], []>} : vector<256x144xbf16>, vector<144x16xbf16>, vector<256x16xf32> -> vector<256x16xf32>
    %c0_61 = arith.constant 0 : index
    %c0_62 = arith.constant 0 : index
    %74 = vector.load %arg5[%c0_61, %c0_62] : memref<1x16xf32, #tpu.memory_space<vmem>>, vector<1x16xf32>
    %75 = vector.broadcast %74 : vector<1x16xf32> to vector<256x16xf32>
    %76 = arith.addf %73, %75 : vector<256x16xf32>
    %cst_63 = arith.constant 0.000000e+00 : f32
    %77 = vector.broadcast %cst_63 : f32 to vector<256x16xf32>
    %78 = arith.maximumf %76, %77 : vector<256x16xf32>
    %c0_64 = arith.constant 0 : index
    %c0_65 = arith.constant 0 : index
    %79 = vector.load %arg6[%c0_64, %c0_65] : memref<1x16xf32, #tpu.memory_space<vmem>>, vector<1x16xf32>
    %80 = vector.broadcast %79 : vector<1x16xf32> to vector<256x16xf32>
    %81 = arith.mulf %78, %80 : vector<256x16xf32>
    %c0_66 = arith.constant 0 : index
    %c0_67 = arith.constant 0 : index
    %82 = vector.load %arg7[%c0_66, %c0_67] : memref<1x16xf32, #tpu.memory_space<vmem>>, vector<1x16xf32>
    %83 = vector.broadcast %82 : vector<1x16xf32> to vector<256x16xf32>
    %84 = arith.addf %81, %83 : vector<256x16xf32>
    %85 = vector.shape_cast %84 : vector<256x16xf32> to vector<1x16x16x16xf32>
    %c0_68 = arith.constant 0 : index
    %c0_69 = arith.constant 0 : index
    %c0_70 = arith.constant 0 : index
    %c0_71 = arith.constant 0 : index
    %86 = vector.load %arg9[%c0_68, %c0_69, %c0_70, %c0_71] : memref<1x16x16x16xf32, #tpu.memory_space<vmem>>, vector<1x16x16x16xf32>
    tpu.vector_store %arg9[%c0_68, %c0_69, %c0_70, %c0_71], %85 {strides = array<i32>} : memref<1x16x16x16xf32, #tpu.memory_space<vmem>>, vector<1x16x16x16xf32>,
    return
  }
  func.func @transform_0(%arg0: i32) -> (i32, i32, i32, i32) {
    %c0_i32 = arith.constant 0 : i32
    %c0_i32_0 = arith.constant 0 : i32
    %c0_i32_1 = arith.constant 0 : i32
    %c0_i32_2 = arith.constant 0 : i32
    return %arg0, %c0_i32, %c0_i32_0, %c0_i32_1 : i32, i32, i32, i32
  }
  func.func @transform_1(%arg0: i32) -> (i32, i32) {
    %c0_i32 = arith.constant 0 : i32
    %c0_i32_0 = arith.constant 0 : i32
    %c0_i32_1 = arith.constant 0 : i32
    return %c0_i32, %c0_i32_0 : i32, i32
  }
  func.func @transform_2(%arg0: i32) -> (i32, i32) {
    %c0_i32 = arith.constant 0 : i32
    %c0_i32_0 = arith.constant 0 : i32
    %c0_i32_1 = arith.constant 0 : i32
    return %c0_i32, %c0_i32_0 : i32, i32
  }
  func.func @transform_3(%arg0: i32) -> (i32, i32) {
    %c0_i32 = arith.constant 0 : i32
    %c0_i32_0 = arith.constant 0 : i32
    %c0_i32_1 = arith.constant 0 : i32
    return %c0_i32, %c0_i32_0 : i32, i32
  }
  func.func @transform_4(%arg0: i32) -> (i32, i32) {
    %c0_i32 = arith.constant 0 : i32
    %c0_i32_0 = arith.constant 0 : i32
    %c0_i32_1 = arith.constant 0 : i32
    return %c0_i32, %c0_i32_0 : i32, i32
  }
  func.func @transform_5(%arg0: i32) -> (i32, i32) {
    %c0_i32 = arith.constant 0 : i32
    %c0_i32_0 = arith.constant 0 : i32
    %c0_i32_1 = arith.constant 0 : i32
    return %c0_i32, %c0_i32_0 : i32, i32
  }
  func.func @transform_6(%arg0: i32) -> (i32, i32) {
    %c0_i32 = arith.constant 0 : i32
    %c0_i32_0 = arith.constant 0 : i32
    %c0_i32_1 = arith.constant 0 : i32
    return %c0_i32, %c0_i32_0 : i32, i32
  }
  func.func @transform_7(%arg0: i32) -> (i32, i32) {
    %c0_i32 = arith.constant 0 : i32
    %c0_i32_0 = arith.constant 0 : i32
    %c0_i32_1 = arith.constant 0 : i32
    return %c0_i32, %c0_i32_0 : i32, i32
  }
  func.func @transform_8(%arg0: i32) -> (i32, i32, i32, i32) {
    %c0_i32 = arith.constant 0 : i32
    %c0_i32_0 = arith.constant 0 : i32
    %c0_i32_1 = arith.constant 0 : i32
    %c0_i32_2 = arith.constant 0 : i32
    return %arg0, %c0_i32, %c0_i32_0, %c0_i32_1 : i32, i32, i32, i32
  }
}

</mosaic_0001>

<bundles_post_ra>
// kernel: double_conv_forward.1
= control target key start
LH: loop header
LB: loop body
LE: loop exit
PB: predicated region body
PF: predicated region fallthrough
CT: control target
= control target key end

     0   :  { %s5492_s27 = smov 0   ;;  %s8384_s0 = inlined_call_operand.vmem [shape: bf16[2,16,16,4], index: 0, kind: input, shape index: {}]   ;;  %s8385_s1 = inlined_call_operand.vmem [shape: bf16[36,16], index: 1, kind: input, shape index: {}]   ;;  %s8386_s2 = inlined_call_operand.vmem [shape: f32[1,16], index: 2, kind: input, shape index: {}]   ;;  %s8387_s3 = inlined_call_operand.vmem [shape: bf16[144,16], index: 3, kind: input, shape index: {}]   ;;  %s8388_s4 = inlined_call_operand.vmem [shape: f32[1,16], index: 4, kind: input, shape index: {}]   ;;  %s8389_s5 = inlined_call_operand.vmem [shape: f32[1,16], index: 5, kind: input, shape index: {}]   ;;  %s8390_s6 = inlined_call_operand.vmem [shape: f32[1,16], index: 6, kind: input, shape index: {}]   ;;  %s8391_s7 = inlined_call_operand.vmem [shape: bf16[1,16], index: 7, kind: input, shape index: {}]   ;;  %s8392_s8 = inlined_call_operand.vmem [shape: f32[2,16,16,16], index: 8, kind: output, shape index: {}]  }
   0x1 LB: > { %s5005_s28 = sadd.s32 4294967295, %s5430_s27   ;;  %p5009_p0 = scmp.ge.s32.totalorder %s5430_s27, 1  ;;  %s5430_s27 = sphi %s5492_s27, %s18_s27  }
   0x2   : > { %p262_p1 = scmp.lt.s32.totalorder %s5430_s27, 3 }
   0x4   : > { %p263_p2 = pnand %p5009_p0, %p262_p1 }
   0x6   : > { %266 = sbr.rel (%p263_p2) target bundleno = 1090 (0x442), region = 52 }
   0xd   : > { %vm307_vm0 = vcmask 27648   ;;  %vm310_vm1 = vcmask 24576   ;;  %vm317_vm2 = vsmask.f32 256  ;;  %v8393_v0 = vmov 0   ;;  %p296_p3 = scmp.lt.s32.totalorder %s5005_s28, 1 }
   0xe   : > { %308 = vst.msk [vmem:[#allocation2] sm:$0xf] %vm307_vm0, %v8393_v0  ;;  %309 = vst.msk [vmem:[#allocation2 + $0x4] sm:$0xf] %vm307_vm0, %v8393_v0  ;;  %5332 = vmatprep.subr.bf16.mxu1 %v8393_v0  ;;  %vm373_vm4 = vsmask.f32 7938 }
   0xf   : > { %311 = vst.msk [vmem:[#allocation2 + $0x8] sm:$0x1] %vm310_vm1, %v8393_v0  ;;  %vm5508_vm3 = vmand %vm310_vm1, %vm317_vm2  ;;  %v322_v2 = vld [vmem:[#allocation2 + $0xc] sm:$0x1]  ;;  %s8474_s28 = smov (!%p296_p3, %s5005_s28), 1  ;;  %vm1387_vm6 = vcmask 1042432  }
  0x10   : > { %313 = vst.msk [vmem:[#allocation2 + $0xcc] sm:$0xf] %vm307_vm0, %v8393_v0  ;;  %314 = vst.msk [vmem:[#allocation2 + $0xd0] sm:$0xf] %vm307_vm0, %v8393_v0  ;;  %v323_v3 = vsel %vm5508_vm3, 0, %v322_v2  ;;  %s5241_s29 = sshll.u32 %s8474_s28, 7 }
  0x11   : > { %315 = vst.msk [vmem:[#allocation2 + $0xd4] sm:$0x1] %vm310_vm1, %v8393_v0  ;;  %v325_v4 = vld [vmem:[#allocation2 + $0x18] sm:$0x1]  ;;  %v328_v5 = vld [vmem:[#allocation2 + $0x24] sm:$0x1]  ;;  %vm5529_vm5 = vmand %vm310_vm1, %vm373_vm4  ;;  %s5537_s10 = scalar_lea.vmem %s8384_s0, %s5241_s29 }
  0x12   : > { %324 = vst [vmem:[#allocation2 + $0xc] sm:$0x1] %v323_v3  ;;  %v326_v6 = vsel %vm5508_vm3, 0, %v325_v4  ;;  %v329_v7 = vsel %vm5508_vm3, 0, %v328_v5  ;;  %v378_v9 = vld [vmem:[#allocation2 + $0x14] sm:$0x1]  ;;  %vm5559_vm9 = vmand %vm307_vm0, %vm373_vm4 }
  0x13   : > { %327 = vst [vmem:[#allocation2 + $0x18] sm:$0x1] %v326_v6  ;;  %330 = vst [vmem:[#allocation2 + $0x24] sm:$0x1] %v329_v7  ;;  %v381_v10 = vld [vmem:[#allocation2 + $0x20] sm:$0x1] }
  0x14   : > { %vm1388_vm7 = vcmask 1046532   ;;  %vm461_vm8 = vsmask.f32 4368  ;;  %v379_v11 = vsel %vm5529_vm5, 0, %v378_v9  ;;  %v382_v12 = vsel %vm5529_vm5, 0, %v381_v10  ;;  %s5433_s11 = smov 8  }
  0x15   : > { %v429_v13 = vld [vmem:[%s5537_s10] sm:$0xf]  ;;  %v430_v14 = vld [vmem:[%s5537_s10 + $0x4] sm:$0xf]  ;;  %v431_v15 = vld [vmem:[%s5537_s10 + $0x8] sm:$0xf] }
  0x16   : > { %380 = vst [vmem:[#allocation2 + $0x14] sm:$0x1] %v379_v11  ;;  %383 = vst [vmem:[#allocation2 + $0x20] sm:$0x1] %v382_v12  ;;  %v319_v16 = vld [vmem:[#allocation2] sm:$0x1] }
  0x17   : > { %v375_v17 = vld [vmem:[#allocation2 + $0x8] sm:$0x1]  ;;  %v5546_v18 = vld [vmem:[#allocation2 + $0x4] sm:$0xf]  ;;  %v320_v19 = vsel %vm5508_vm3, 0, %v319_v16  ;;  %v464_v22 = vshrl.u32 %v429_v13, 16  ;;  %vm5565_vm10 = vmor %vm317_vm2, %vm461_vm8 }
  0x18   : > { %v376_v20 = vsel %vm5529_vm5, 0, %v375_v17  ;;  %v1392_v21 = vrot.slane %v5546_v18, 5  ;;  %v432_v23 = vld [vmem:[%s5537_s10 + $0xc] sm:$0xf]  ;;  %321 = vst [vmem:[#allocation2] sm:$0x1] %v320_v19  ;;  %vm5580_vm13 = vmor %vm1387_vm6, %vm1388_vm7 }
  0x19   : > { %377 = vst [vmem:[#allocation2 + $0x8] sm:$0x1] %v376_v20  ;;  %v467_v24 = vshll.u32 %v429_v13, 16  ;;  %v472_v25 = vshrl.u32 %v430_v14, 16  ;;  %v475_v26 = vshll.u32 %v430_v14, 16  ;;  %v481_v27 = vshrl.u32 %v431_v15, 16 }
  0x1a   : > { %v433_v28 = vld [vmem:[%s5537_s10 + $0x10] sm:$0xf]  ;;  %v1394_v29 = vrot.slane %v1392_v21, 4  ;;  %v466_v30 = vrot.slane %v464_v22, 7  ;;  %v786_v31 = vld [vmem:[#allocation2 + $0xc] sm:$0xf] }
  0x1b   : > { %v484_v32 = vshll.u32 %v431_v15, 16  ;;  %v489_v33 = vshrl.u32 %v432_v23, 16  ;;  %v474_v35 = vrot.slane %v472_v25, 7  ;;  %v483_v36 = vrot.slane %v481_v27, 7  ;;  %v793_v38 = vld [vmem:[#allocation2 + $0x18] sm:$0xf] }
  0x1c   : > { %v492_v37 = vshll.u32 %v432_v23, 16  ;;  %v498_v39 = vshrl.u32 %v433_v28, 16  ;;  %v469_v41 = vor.u32 %v467_v24, %v466_v30  ;;  %v470_v42 = vrot.slane %v466_v30, 4  ;;  %v434_v44 = vld [vmem:[%s5537_s10 + $0x14] sm:$0xf]  ;;  %s5434_s12 = smov 12  }
  0x1d   : > { %v491_v43 = vrot.slane %v489_v33, 7  ;;  %v501_v45 = vshll.u32 %v433_v28, 16  ;;  %v477_v46 = vor.u32 %v475_v26, %v474_v35  ;;  %v479_v47 = vrot.slane %v474_v35, 4  ;;  %v800_v58 = vld [vmem:[#allocation2 + $0x24] sm:$0xf]  ;;  %s5435_s13 = smov 24  }
  0x1e   : > { %v486_v48 = vor.u32 %v484_v32, %v483_v36  ;;  %v487_v49 = vrot.slane %v483_v36, 4  ;;  %v787_v50 = vsel %vm5559_vm9, %v469_v41, %v786_v31  ;;  %v500_v53 = vrot.slane %v498_v39, 7  ;;  %v790_v9 = vld [vmem:[#allocation2 + $0x14] sm:$0x1]  ;;  %v797_v14 = vld [vmem:[#allocation2 + $0x20] sm:$0x1] }
  0x1f   : > { %v494_v51 = vor.u32 %v492_v37, %v491_v43  ;;  %v496_v52 = vrot.slane %v491_v43, 4  ;;  %vm952_vm11 = vsmask.f32 3328  ;;  %vm953_vm12 = vsmask.f32 7440  ;;  %s5436_s14 = smov 4  }
  0x20   : > { %v478_v54 = vsel %vm5565_vm10, %v470_v42, %v477_v46  ;;  %788 = vst [vmem:[#allocation2 + $0xc] sm:$0xf] %v787_v50  ;;  %v794_v55 = vsel %vm5559_vm9, %v486_v48, %v793_v38  ;;  %v506_v56 = vshrl.u32 %v434_v44, 16  ;;  %v509_v57 = vshll.u32 %v434_v44, 16  ;;  %v5576_v59 = vld [vmem:[#allocation2] sm:$0xf]  ;;  %vm5636_vm14 = vmor %vm952_vm11, %vm953_vm12 }
  0x21   : > { %v900_v60 = vld [vmem:[#allocation2 + $0x8] sm:$0x1]  ;;  %789 = vst.msk [vmem:[#allocation2 + $0x10] sm:$0xf] %vm307_vm0, %v478_v54  ;;  %v495_v62 = vsel %vm5565_vm10, %v487_v49, %v494_v51  ;;  %795 = vst [vmem:[#allocation2 + $0x18] sm:$0xf] %v794_v55  ;;  %v503_v63 = vor.u32 %v501_v45, %v500_v53  ;;  %v5032_v41 = vcombine.low %v5576_v59, %v5546_v18 }
  0x22   : > { %v504_v2 = vrot.slane %v500_v53, 4  ;;  %v965_v3 = vshll.u32 %v5546_v18, 16  ;;  %v975_v4 = vshll.u32 %v900_v60, 16  ;;  %v5014_v5 = vrot.slane %v5576_v59, 9  ;;  %796 = vst.msk [vmem:[#allocation2 + $0x1c] sm:$0xf] %vm307_vm0, %v495_v62 }
  0x23   : > { %v1395_v6 = vrot.slane %v900_v60, 5  ;;  %v5590_v7 = vrot.slane %v506_v56, 7  ;;  %v801_v10 = vsel %vm5559_vm9, %v503_v63, %v800_v58  ;;  %v956_v11 = vshrl.u32 %v5576_v59, 16  ;;  %v384_v20 = vld [vmem:[#allocation2 + $0x2c] sm:$0x1]  ;;  %s5437_s17 = smov 20  }
  0x24   : > { %v959_v12 = vshll.u32 %v5576_v59, 16  ;;  %v5596_v13 = vrot.slane %v965_v3, 5  ;;  %v1393_v15 = vsel %vm5580_vm13, %v5014_v5, %v1392_v21  ;;  %802 = vst [vmem:[#allocation2 + $0x24] sm:$0xf] %v801_v10  ;;  %v331_v22 = vld [vmem:[#allocation2 + $0x30] sm:$0x1]  ;;  %v791_v21 = vsel %vm5508_vm3, %v479_v47, %v790_v9 }
  0x25   : > { %v1396_v16 = vsel %vm5580_vm13, %v1394_v29, %v1395_v6  ;;  %v511_v17 = vor.u32 %v509_v57, %v5590_v7  ;;  %v513_v19 = vrot.slane %v5590_v7, 4  ;;  %v958_v24 = vrot.slane %v956_v11, 4  ;;  %792 = vst [vmem:[#allocation2 + $0x14] sm:$0x1] %v791_v21  ;;  %s5438_s18 = smov 32   ;;  %s5439_s21 = smov 16  }
  0x26   : > { %v5064_v23 = vcombine.low %v1393_v15, %v1396_v16  ;;  %v961_v25 = vrot.slane %v959_v12, 5  ;;  %v969_v26 = vshrl.u32 %v5546_v18, 16  ;;  %v977_v28 = vrot.slane %v975_v4, 5  ;;  %s5440_s22 = smov 28   ;;  %s5442_s9 = smov 96  }
  0x27   : > { %v512_v27 = vsel %vm5565_vm10, %v504_v2, %v511_v17  ;;  %v798_v29 = vsel %vm5508_vm3, %v496_v52, %v797_v14  ;;  %v901_v30 = vld [vmem:[#allocation2 + $0xc] sm:$0xf]  ;;  %v385_v33 = vsel %vm5529_vm5, 0, %v384_v20  ;;  %v332_v35 = vsel %vm5508_vm3, 0, %v331_v22  ;;  %s5445_s24 = smov 112  }
  0x28   : > { %1746 = vrot.lane.b32.xlu1 %v5064_v23, %s5433_s11  ;;  %803 = vst.msk [vmem:[#allocation2 + $0x28] sm:$0xf] %vm307_vm0, %v512_v27  ;;  %v962_v31 = vor.u32 %v961_v25, %v958_v24  ;;  %v971_v32 = vrot.slane %v969_v26, 4  ;;  %799 = vst [vmem:[#allocation2 + $0x20] sm:$0x1] %v798_v29  ;;  %v980_v37 = vshrl.u32 %v901_v30, 16 }
  0x29   : > { %v5619_v36 = vld [vmem:[#allocation2 + $0x10] sm:$0xf]  ;;  %v983_v38 = vshll.u32 %v901_v30, 16  ;;  %v904_v39 = vld [vmem:[#allocation2 + $0x18] sm:$0xf]  ;;  %v5015_v60 = vrot.slane %v901_v30, 9 }
  0x2a   : > { %386 = vst [vmem:[#allocation2 + $0x2c] sm:$0x1] %v385_v33  ;;  %333 = vst [vmem:[#allocation2 + $0x30] sm:$0x1] %v332_v35  ;;  %v989_v42 = vshll.u32 %v5619_v36, 16  ;;  %v993_v43 = vshrl.u32 %v5619_v36, 16  ;;  %v5626_v44 = vcombine.low %v901_v30, %v5619_v36  ;;  %v972_v56 = vor.u32 %v971_v32, %v5596_v13 }
  0x2b   : > { %v905_v45 = vld [vmem:[#allocation2 + $0x1c] sm:$0xf]  ;;  %v1004_v46 = vshrl.u32 %v904_v39, 16  ;;  %v5628_v47 = vrot.slane %v980_v37, 4  ;;  %v5630_v48 = vrot.slane %v983_v38, 5  ;;  %v1007_v53 = vshll.u32 %v904_v39, 16 }
  0x2c   : > { %v1017_v49 = vshrl.u32 %v905_v45, 16  ;;  %v5632_v50 = vcombine.low %v904_v39, %v905_v45  ;;  %v5640_v52 = vrot.slane %v993_v43, 4  ;;  %1781 = vrot.lane.b32.xlu0 %v5626_v44, %s5434_s12  ;;  %v907_v54 = vld [vmem:[#allocation2 + $0x24] sm:$0xf]  ;;  %v963_v55 = vrot.slane %v962_v31, 4 }
  0x2d   : > { %v1028_v57 = vshrl.u32 %v907_v54, 16  ;;  %v1031_v58 = vshll.u32 %v907_v54, 16  ;;  %v1399_v62 = vrot.slane %v5619_v36, 5  ;;  %v973_v2 = vrot.slane %v972_v56, 4  ;;  %v5651_v6 = vld [vmem:[#allocation2 + $0x14] sm:$0x1] }
  0x2e   : > { %1783 = vrot.lane.b32.xlu1 %v5632_v50, %s5434_s12  ;;  %v968_v63 = vsel %vm5636_vm14, %v963_v55, %v5596_v13  ;;  %v5016_v3 = vrot.slane %v904_v39, 9  ;;  %v1406_v4 = vrot.slane %v905_v45, 5  ;;  %v1006_v11 = vrot.slane %v1004_v46, 4 }
  0x2f   : > { %v908_v5 = vld [vmem:[#allocation2 + $0x28] sm:$0xf]  ;;  %v1400_v9 = vsel %vm5580_vm13, %v5015_v60, %v1399_v62  ;;  %v1401_v10 = vrot.slane %v1399_v62, 4  ;;  %v986_v12 = vor.u32 %v5630_v48, %v5628_v47  ;;  %v978_v15 = vsel %vm5636_vm14, %v973_v2, %v977_v28  ;;  %v906_v17 = vld [vmem:[#allocation2 + $0x20] sm:$0x1] }
  0x30   : > { %1886 = vrot.lane.b32.xlu0 %v5632_v50, %s5435_s13  ;;  %v1041_v14 = vshrl.u32 %v908_v5, 16  ;;  %v5659_v13 = vcombine.low %v907_v54, %v908_v5  ;;  %v1402_v16 = vrot.slane %v5651_v6, 5  ;;  %v5048_v22 = vcombine.low %v968_v63, %v978_v15 }
  0x31   : > { %v804_v20 = vld [vmem:[#allocation2 + $0x2c] sm:$0x1]  ;;  %v1407_v23 = vsel %vm5580_vm13, %v5016_v3, %v1406_v4  ;;  %v1408_v24 = vrot.slane %v1406_v4, 4  ;;  %v1409_v25 = vrot.slane %v906_v17, 5  ;;  %v1009_v27 = vrot.slane %v1007_v53, 5  ;;  %v5384_v53 = vld [vmem:[%s8385_s1] sm:$0xff]  }
  0x32   : > { %1888 = vrot.lane.b32.xlu1 %v5659_v13, %s5435_s13  ;;  %v1403_v26 = vsel %vm5580_vm13, %v1401_v10, %v1402_v16  ;;  %v1013_v21 = vshll.u32 %v905_v45, 16  ;;  %v1019_v29 = vrot.slane %v1017_v49, 4  ;;  %v1023_v31 = vshll.u32 %v906_v17, 16  ;;  %v435_v49 = vld [vmem:[%s5537_s10 + $0x18] sm:$0xf]  ;;  %5294 = vmatprep.subr.bf16.mxu0 %v5384_v53 }
  0x33   : > { %v5065_v28 = vcombine.low %v1400_v9, %v1403_v26  ;;  %v1410_v30 = vsel %vm5580_vm13, %v1408_v24, %v1409_v25  ;;  %v805_v32 = vsel %vm5508_vm3, %v513_v19, %v804_v20  ;;  %v1010_v35 = vor.u32 %v1009_v27, %v1006_v11  ;;  %5295 = vmatpush3.bf16.msra.mxu0 %v5384_v53  ;;  %v438_v27 = vld [vmem:[%s5537_s10 + $0x24] sm:$0xf] }
  0x34   : > { %1666 = vrot.lane.b32.xlu0 %v5048_v22, %s5436_s14  ;;  %v5677_v33 = vcombine.low %v1407_v23, %v1410_v30  ;;  %v1015_v37 = vrot.slane %v1013_v21, 5  ;;  %806 = vst [vmem:[#allocation2 + $0x2c] sm:$0x1] %v805_v32  ;;  %v5017_v38 = vrot.slane %v907_v54, 9  ;;  %v1025_v39 = vrot.slane %v1023_v31, 5  ;;  %v5385_v32 = vld [vmem:[%s8385_s1 + $0x8] sm:$0xff]  }
  0x35   : > { %v1413_v43 = vrot.slane %v908_v5, 5  ;;  %v1030_v45 = vrot.slane %v1028_v57, 4  ;;  %v1033_v46 = vrot.slane %v1031_v58, 5  ;;  %v1011_v7 = vrot.slane %v1010_v35, 4  ;;  %v334_v22 = vld [vmem:[#allocation2 + $0x3c] sm:$0x1]  ;;  %5296 = vmatprep.subr.bf16.mxu0 %v5385_v32 }
  0x36   : > { %1748 = vrot.lane.b32.xlu1 %v5065_v28, %s5433_s11  ;;  %v1020_v47 = vor.u32 %v1019_v29, %v1015_v37  ;;  %v1037_v48 = vshll.u32 %v908_v5, 16  ;;  %v1043_v19 = vrot.slane %v1041_v14, 4  ;;  %v987_v60 = vrot.slane %v986_v12, 4  ;;  %v807_v12 = vld [vmem:[#allocation2 + $0x30] sm:$0xf] }
  0x37   : > { %v1414_v55 = vsel %vm5580_vm13, %v5017_v38, %v1413_v43  ;;  %v1415_v56 = vrot.slane %v1413_v43, 4  ;;  %v1034_v54 = vor.u32 %v1033_v46, %v1030_v45  ;;  %v1016_v57 = vsel %vm5636_vm14, %v1011_v7, %v1015_v37  ;;  %v437_v23 = vld [vmem:[%s5537_s10 + $0x20] sm:$0xf]  ;;  %v390_v31 = vld [vmem:[#allocation2 + $0x44] sm:$0x1]  ;;  %5297 = vmatpush3.bf16.msra.mxu0 %v5385_v32 }
  0x38   : > { %1851 = vrot.lane.b32.xlu0 %v5065_v28, %s5437_s17  ;;  %v1021_v58 = vrot.slane %v1020_v47, 4  ;;  %v1039_v62 = vrot.slane %v1037_v48, 5  ;;  %v991_v63 = vrot.slane %v989_v42, 5  ;;  %v999_v3 = vshll.u32 %v5651_v6, 16  ;;  %v436_v42 = vld [vmem:[%s5537_s10 + $0x1c] sm:$0xf] }
  0x39   : > { %v1035_v2 = vrot.slane %v1034_v54, 4  ;;  %v515_v4 = vshrl.u32 %v435_v49, 16  ;;  %v518_v5 = vshll.u32 %v435_v49, 16  ;;  %v387_v6 = vld [vmem:[#allocation2 + $0x38] sm:$0x1]  ;;  %v523_v28 = vshrl.u32 %v436_v42, 16 }
  0x3a   : > { %1853 = vrot.lane.b32.xlu1 %v5677_v33, %s5437_s17  ;;  %v1026_v9 = vsel %vm5636_vm14, %v1021_v58, %v1025_v39  ;;  %v1044_v10 = vor.u32 %v1043_v19, %v1039_v62  ;;  %v992_v11 = vsel %vm5636_vm14, %v987_v60, %v991_v63  ;;  %v996_v36 = vor.u32 %v5640_v52, %v991_v63  ;;  %v337_v47 = vld [vmem:[#allocation2 + $0x48] sm:$0x1]  ;;  %v440_v58 = vld [vmem:[%s5537_s10 + $0x2c] sm:$0xf] }
  0x3b   : > { %v5700_v14 = vcombine.low %v1016_v57, %v1026_v9  ;;  %v909_v15 = vld [vmem:[#allocation2 + $0x2c] sm:$0x1]  ;;  %v1040_v16 = vsel %vm5636_vm14, %v1035_v2, %v1039_v62  ;;  %v1001_v17 = vrot.slane %v999_v3, 5  ;;  %v517_v20 = vrot.slane %v515_v4, 7  ;;  %v393_v62 = vld [vmem:[#allocation2 + $0x50] sm:$0x1] }
  0x3c   : > { %1956 = vrot.lane.b32.xlu0 %v5677_v33, %s5438_s18  ;;  %v1416_v24 = vrot.slane %v909_v15, 5  ;;  %v1045_v52 = vrot.slane %v1044_v10, 4  ;;  %v1047_v25 = vshll.u32 %v909_v15, 16  ;;  %v997_v26 = vrot.slane %v996_v36, 4 }
  0x3d   : > { %v520_v21 = vor.u32 %v518_v5, %v517_v20  ;;  %v521_v29 = vrot.slane %v517_v20, 4  ;;  %v526_v30 = vshll.u32 %v436_v42, 16  ;;  %v388_v39 = vsel %vm5529_vm5, 0, %v387_v6  ;;  %v340_v5 = vld [vmem:[#allocation2 + $0x54] sm:$0x1] }
  0x3e   : > { %1818 = vrot.lane.b32.xlu1 %v5700_v14, %s5439_s21  ;;  %v1417_v35 = vsel %vm5580_vm13, %v1415_v56, %v1416_v24  ;;  %v1049_v37 = vrot.slane %v1047_v25, 5  ;;  %v1002_v38 = vsel %vm5636_vm14, %v997_v26, %v1001_v17  ;;  %v525_v46 = vrot.slane %v523_v28, 7  ;;  %389 = vst [vmem:[#allocation2 + $0x38] sm:$0x1] %v388_v39  ;;  %v5744_v42 = vld [vmem:[%s5537_s10 + $0x30] sm:$0xf] }
  0x3f   : > { %v5719_v43 = vcombine.low %v1414_v55, %v1417_v35  ;;  %v5721_v45 = vcombine.low %v992_v11, %v1002_v38  ;;  %v808_v7 = vsel %vm5559_vm9, %v520_v21, %v807_v12  ;;  %v335_v19 = vsel %vm5508_vm3, 0, %v334_v22  ;;  %v439_v55 = vld [vmem:[%s5537_s10 + $0x28] sm:$0xf] }
  0x40   : > { %v1050_v48 = vsel %vm5636_vm14, %v1045_v52, %v1049_v37  ;;  %809 = vst [vmem:[#allocation2 + $0x30] sm:$0xf] %v808_v7  ;;  %v532_v49 = vshrl.u32 %v437_v23, 16  ;;  %v535_v53 = vshll.u32 %v437_v23, 16  ;;  %v528_v54 = vor.u32 %v526_v30, %v525_v46  ;;  %336 = vst [vmem:[#allocation2 + $0x3c] sm:$0x1] %v335_v19 }
  0x41   : > { %1958 = vrot.lane.b32.xlu0 %v5719_v43, %s5438_s18  ;;  %v5732_v56 = vcombine.low %v1040_v16, %v1050_v48  ;;  %v530_v60 = vrot.slane %v525_v46, 4  ;;  %v540_v57 = vshrl.u32 %v438_v27, 16  ;;  %v543_v2 = vshll.u32 %v438_v27, 16  ;;  %v442_v23 = vld [vmem:[%s5537_s10 + $0x34] sm:$0xf] }
  0x42   : > { %v534_v63 = vrot.slane %v532_v49, 7  ;;  %v391_v3 = vsel %vm5529_vm5, 0, %v390_v31  ;;  %v338_v4 = vsel %vm5508_vm3, 0, %v337_v47  ;;  %v529_v9 = vsel %vm5565_vm10, %v521_v29, %v528_v54  ;;  %v396_v48 = vld [vmem:[#allocation2 + $0x5c] sm:$0x1] }
  0x43   : > { %1923 = vrot.lane.b32.xlu1 %v5732_v56, %s5440_s22  ;;  %v542_v10 = vrot.slane %v540_v57, 7  ;;  %392 = vst [vmem:[#allocation2 + $0x44] sm:$0x1] %v391_v3  ;;  %339 = vst [vmem:[#allocation2 + $0x48] sm:$0x1] %v338_v4  ;;  %v549_v11 = vshrl.u32 %v439_v55, 16 }
  0x44   : > { %v552_v36 = vshll.u32 %v439_v55, 16  ;;  %810 = vst.msk [vmem:[#allocation2 + $0x34] sm:$0xf] %vm307_vm0, %v529_v9  ;;  %v538_v12 = vrot.slane %v534_v63, 4  ;;  %v557_v6 = vshrl.u32 %v440_v58, 16  ;;  %v560_v15 = vshll.u32 %v440_v58, 16 }
  0x45   : > { %1668 = vrot.lane.b32.xlu0 %v5721_v45, %s5436_s14  ;;  %v537_v16 = vor.u32 %v535_v53, %v534_v63  ;;  %v545_v17 = vor.u32 %v543_v2, %v542_v10  ;;  %v551_v20 = vrot.slane %v549_v11, 7  ;;  %v394_v22 = vsel %vm5529_vm5, 0, %v393_v62  ;;  %v811_v24 = vld [vmem:[#allocation2 + $0x38] sm:$0x1] }
  0x46   : > { %v547_v52 = vrot.slane %v542_v10, 4  ;;  %v559_v25 = vrot.slane %v557_v6, 7  ;;  %395 = vst [vmem:[#allocation2 + $0x50] sm:$0x1] %v394_v22  ;;  %v341_v26 = vsel %vm5508_vm3, 0, %v340_v5  ;;  %v566_v27 = vshrl.u32 %v5744_v42, 16 }
  0x47   : > { %1670 = vrot.lane.b32.xlu1 %v5700_v14, %s5436_s14  ;;  %v5757_v21 = vld [vmem:[#allocation2 + $0x30] sm:$0xf]  ;;  %v812_v29 = vsel %vm5508_vm3, %v530_v60, %v811_v24  ;;  %v546_v28 = vsel %vm5565_vm10, %v538_v12, %v545_v17  ;;  %v554_v30 = vor.u32 %v552_v36, %v551_v20  ;;  %v555_v31 = vrot.slane %v551_v20, 4  ;;  %342 = vst [vmem:[#allocation2 + $0x54] sm:$0x1] %v341_v26 }
  0x48   : > { %v1052_v32 = vshrl.u32 %v5757_v21, 16  ;;  %v1055_v35 = vshll.u32 %v5757_v21, 16  ;;  %813 = vst [vmem:[#allocation2 + $0x38] sm:$0x1] %v812_v29  ;;  %v814_v37 = vld [vmem:[#allocation2 + $0x3c] sm:$0xf]  ;;  %v562_v38 = vor.u32 %v560_v15, %v559_v25 }
  0x49   : > { %817 = vst.msk [vmem:[#allocation2 + $0x40] sm:$0xf] %vm307_vm0, %v546_v28  ;;  %1816 = vrot.lane.b32.xlu0 %v5721_v45, %s5439_s21  ;;  %v815_v39 = vsel %vm5559_vm9, %v537_v16, %v814_v37  ;;  %v564_v46 = vrot.slane %v559_v25, 4  ;;  %v5770_v7 = vrot.slane %v566_v27, 7  ;;  %v574_v47 = vshrl.u32 %v442_v23, 16 }
  0x4a   : > { %v1054_v19 = vrot.slane %v1052_v32, 4  ;;  %v1057_v49 = vrot.slane %v1055_v35, 5  ;;  %816 = vst [vmem:[#allocation2 + $0x3c] sm:$0xf] %v815_v39  ;;  %v818_v53 = vld [vmem:[#allocation2 + $0x44] sm:$0x1]  ;;  %v563_v55 = vsel %vm5565_vm10, %v555_v31, %v562_v38 }
  0x4b   : > { %v821_v54 = vld [vmem:[#allocation2 + $0x48] sm:$0xf]  ;;  %1672 = vrot.lane.b32.xlu1 %v5732_v56, %s5436_s14  ;;  %v911_v45 = vld [vmem:[#allocation2 + $0x34] sm:$0xf]  ;;  %v819_v60 = vsel %vm5508_vm3, %v547_v52, %v818_v53  ;;  %824 = vst.msk [vmem:[#allocation2 + $0x4c] sm:$0xf] %vm307_vm0, %v563_v55 }
  0x4c   : > { %v822_v57 = vsel %vm5559_vm9, %v554_v30, %v821_v54  ;;  %v1065_v58 = vshrl.u32 %v911_v45, 16  ;;  %v1058_v62 = vor.u32 %v1057_v49, %v1054_v19  ;;  %v1061_v63 = vshll.u32 %v911_v45, 16  ;;  %820 = vst [vmem:[#allocation2 + $0x44] sm:$0x1] %v819_v60 }
  0x4d   : > { %823 = vst [vmem:[#allocation2 + $0x48] sm:$0xf] %v822_v57  ;;  %v572_v2 = vrot.slane %v5770_v7, 4  ;;  %1921 = vrot.lane.b32.xlu0 %v5700_v14, %s5440_s22  ;;  %v1420_v3 = vrot.slane %v911_v45, 5  ;;  %v825_v4 = vld [vmem:[#allocation2 + $0x50] sm:$0x1]  ;;  %v5793_v14 = vcombine.low %v5757_v21, %v911_v45 }
  0x4e   : > { %v5784_v5 = vrot.slane %v574_v47, 7  ;;  %v577_v9 = vshll.u32 %v442_v23, 16  ;;  %v397_v10 = vsel %vm5529_vm5, 0, %v396_v48  ;;  %v1059_v11 = vrot.slane %v1058_v62, 4 }
  0x4f   : > { %v1063_v36 = vrot.slane %v1061_v63, 5  ;;  %v1067_v12 = vrot.slane %v1065_v58, 4  ;;  %v826_v6 = vsel %vm5508_vm3, %v564_v46, %v825_v4  ;;  %398 = vst [vmem:[#allocation2 + $0x5c] sm:$0x1] %v397_v10  ;;  %1752 = vrot.lane.b32.xlu1 %v5719_v43, %s5433_s11  ;;  %v912_v15 = vld [vmem:[#allocation2 + $0x38] sm:$0x1] }
  0x50   : > { %v5018_v16 = vrot.slane %v5757_v21, 9  ;;  %v1422_v17 = vrot.slane %v1420_v3, 4  ;;  %v5796_v20 = vld [vmem:[#allocation2 + $0x40] sm:$0xf]  ;;  %827 = vst [vmem:[#allocation2 + $0x50] sm:$0x1] %v826_v6  ;;  %v579_v22 = vor.u32 %v577_v9, %v5784_v5 }
  0x51   : > { %v1068_v23 = vor.u32 %v1067_v12, %v1063_v36  ;;  %v1071_v24 = vshll.u32 %v912_v15, 16  ;;  %v1423_v52 = vrot.slane %v912_v15, 5  ;;  %1750 = vrot.lane.b32.xlu0 %v5677_v33, %s5433_s11  ;;  %v5801_v25 = vld [vmem:[#allocation2 + $0x3c] sm:$0xf]  ;;  %v1089_v26 = vshrl.u32 %v5796_v20, 16 }
  0x52   : > { %v1085_v27 = vshll.u32 %v5796_v20, 16  ;;  %v569_v21 = vshll.u32 %v5744_v42, 16  ;;  %v580_v29 = vsel %vm5565_vm10, %v572_v2, %v579_v22  ;;  %v1064_v28 = vsel %vm5636_vm14, %v1059_v11, %v1063_v36  ;;  %v828_v63 = vld [vmem:[#allocation2 + $0x54] sm:$0xf]  ;;  %v343_v10 = vld [vmem:[#allocation2 + $0x60] sm:$0x1] }
  0x53   : > { %v1069_v30 = vrot.slane %v1068_v23, 4  ;;  %v1073_v31 = vrot.slane %v1071_v24, 5  ;;  %v1076_v32 = vshrl.u32 %v5801_v25, 16  ;;  %831 = vst.msk [vmem:[#allocation2 + $0x58] sm:$0xf] %vm307_vm0, %v580_v29  ;;  %1787 = vrot.lane.b32.xlu1 %v5793_v14, %s5434_s12  ;;  %v1421_v33 = vsel %vm5580_vm13, %v5018_v16, %v1420_v3 }
  0x54   : > { %v1424_v42 = vsel %vm5580_vm13, %v1422_v17, %v1423_v52  ;;  %v1079_v35 = vshll.u32 %v5801_v25, 16  ;;  %v5819_v37 = vld [vmem:[#allocation2 + $0x44] sm:$0x1]  ;;  %v1087_v38 = vrot.slane %v1085_v27, 5  ;;  %v1091_v47 = vrot.slane %v1089_v26, 4 }
  0x55   : > { %v1074_v39 = vsel %vm5636_vm14, %v1069_v30, %v1073_v31  ;;  %v1078_v46 = vrot.slane %v1076_v32, 4  ;;  %v1095_v48 = vshll.u32 %v5819_v37, 16  ;;  %1785 = vrot.lane.b32.xlu0 %v5659_v13, %s5434_s12  ;;  %v5830_v55 = vcombine.low %v1421_v33, %v1424_v42  ;;  %v5832_v45 = vld [vmem:[#allocation2 + $0x48] sm:$0xf]  ;;  %v5838_v3 = vld [vmem:[#allocation2 + $0x4c] sm:$0xf] }
  0x56   : > { %v5826_v19 = vcombine.low %v1064_v28, %v1074_v39  ;;  %v1081_v49 = vrot.slane %v1079_v35, 5  ;;  %v1092_v53 = vor.u32 %v1091_v47, %v1087_v38  ;;  %v571_v58 = vor.u32 %v569_v21, %v5770_v7  ;;  %v832_v9 = vld [vmem:[#allocation2 + $0x5c] sm:$0x1]  ;;  %v443_v6 = vld [vmem:[%s5537_s10 + $0x38] sm:$0xf] }
  0x57   : > { %v1097_v57 = vrot.slane %v1095_v48, 5  ;;  %v1427_v2 = vrot.slane %v5796_v20, 5  ;;  %v581_v4 = vrot.slane %v5784_v5, 4  ;;  %v5845_v7 = vcombine.low %v5801_v25, %v5796_v20  ;;  %v444_v16 = vld [vmem:[%s5537_s10 + $0x3c] sm:$0xf] }
  0x58   : > { %1822 = vrot.lane.b32.xlu1 %v5826_v19, %s5439_s21  ;;  %v1082_v54 = vor.u32 %v1081_v49, %v1078_v46  ;;  %v1093_v60 = vrot.slane %v1092_v53, 4  ;;  %v1103_v12 = vshll.u32 %v5832_v45, 16  ;;  %v829_v5 = vsel %vm5559_vm9, %v571_v58, %v828_v63  ;;  %v399_v17 = vld [vmem:[#allocation2 + $0x68] sm:$0x1]  ;;  %v346_v52 = vld [vmem:[#allocation2 + $0x6c] sm:$0x1] }
  0x59   : > { %1820 = vrot.lane.b32.xlu0 %v5732_v56, %s5439_s21  ;;  %v1100_v56 = vshrl.u32 %v5832_v45, 16  ;;  %v1113_v15 = vshrl.u32 %v5838_v3, 16  ;;  %830 = vst [vmem:[#allocation2 + $0x54] sm:$0xf] %v829_v5  ;;  %v5019_v20 = vrot.slane %v5801_v25, 9  ;;  %v1429_v22 = vrot.slane %v1427_v2, 4 }
  0x5a   : > { %v1083_v62 = vrot.slane %v1082_v54, 4  ;;  %v1098_v36 = vsel %vm5636_vm14, %v1093_v60, %v1097_v57  ;;  %v1430_v23 = vrot.slane %v5819_v37, 5  ;;  %v833_v24 = vsel %vm5508_vm3, %v581_v4, %v832_v9  ;;  %v445_v21 = vld [vmem:[%s5537_s10 + $0x40] sm:$0xf]  ;;  %v5872_v25 = vld [vmem:[#allocation2 + $0x50] sm:$0x1] }
  0x5b   : > { %834 = vst [vmem:[#allocation2 + $0x5c] sm:$0x1] %v833_v24  ;;  %v344_v27 = vsel %vm5508_vm3, 0, %v343_v10  ;;  %v1102_v29 = vrot.slane %v1100_v56, 4  ;;  %v1105_v28 = vrot.slane %v1103_v12, 5  ;;  %v1115_v31 = vrot.slane %v1113_v15, 4 }
  0x5c   : > { %1857 = vrot.lane.b32.xlu1 %v5830_v55, %s5437_s17  ;;  %v1088_v11 = vsel %vm5636_vm14, %v1083_v62, %v1087_v38  ;;  %345 = vst [vmem:[#allocation2 + $0x60] sm:$0x1] %v344_v27  ;;  %v446_v30 = vld [vmem:[%s5537_s10 + $0x44] sm:$0xf]  ;;  %v583_v32 = vshrl.u32 %v443_v6, 16  ;;  %v586_v33 = vshll.u32 %v443_v6, 16  ;;  %v1428_v49 = vsel %vm5580_vm13, %v5019_v20, %v1427_v2 }
  0x5d   : > { %1855 = vrot.lane.b32.xlu0 %v5719_v43, %s5437_s17  ;;  %v5866_v26 = vcombine.low %v1088_v11, %v1098_v36  ;;  %v1109_v43 = vshll.u32 %v5838_v3, 16  ;;  %v591_v42 = vshrl.u32 %v444_v16, 16  ;;  %v594_v35 = vshll.u32 %v444_v16, 16  ;;  %v402_v4 = vld [vmem:[#allocation2 + $0x74] sm:$0x1] }
  0x5e   : > { %v400_v37 = vsel %vm5529_vm5, 0, %v399_v17  ;;  %v585_v39 = vrot.slane %v583_v32, 7  ;;  %v347_v47 = vsel %vm5508_vm3, 0, %v346_v52  ;;  %v600_v48 = vshrl.u32 %v445_v21, 16  ;;  %v5895_v56 = vld [vmem:[#allocation2 + $0x58] sm:$0xf] }
  0x5f   : > { %v5881_v38 = vrot.slane %v1109_v43, 5  ;;  %v593_v46 = vrot.slane %v591_v42, 7  ;;  %401 = vst [vmem:[#allocation2 + $0x68] sm:$0x1] %v400_v37  ;;  %348 = vst [vmem:[#allocation2 + $0x6c] sm:$0x1] %v347_v47  ;;  %v1431_v53 = vsel %vm5580_vm13, %v1429_v22, %v1430_v23  ;;  %v1106_v9 = vor.u32 %v1105_v28, %v1102_v29 }
  0x60   : > { %1892 = vrot.lane.b32.xlu1 %v5845_v7, %s5435_s13  ;;  %v1119_v54 = vshll.u32 %v5872_v25, 16  ;;  %v608_v60 = vshrl.u32 %v446_v30, 16  ;;  %v588_v57 = vor.u32 %v586_v33, %v585_v39  ;;  %v589_v58 = vrot.slane %v585_v39, 4  ;;  %v5897_v36 = vld [vmem:[#allocation2 + $0x54] sm:$0xf] }
  0x61   : > { %1890 = vrot.lane.b32.xlu0 %v5793_v14, %s5435_s13  ;;  %v596_v62 = vor.u32 %v594_v35, %v593_v46  ;;  %v603_v63 = vshll.u32 %v445_v21, 16  ;;  %v1116_v10 = vor.u32 %v1115_v31, %v5881_v38  ;;  %v598_v2 = vrot.slane %v593_v46, 4  ;;  %v349_v22 = vld [vmem:[#allocation2 + $0x78] sm:$0x1]  ;;  %v405_v37 = vld [vmem:[#allocation2 + $0x80] sm:$0x1] }
  0x62   : > { %v602_v6 = vrot.slane %v600_v48, 7  ;;  %v611_v15 = vshll.u32 %v446_v30, 16  ;;  %v1434_v16 = vrot.slane %v5838_v3, 5  ;;  %v610_v17 = vrot.slane %v608_v60, 7  ;;  %v447_v48 = vld [vmem:[%s5537_s10 + $0x48] sm:$0xf] }
  0x63   : > { %v835_v11 = vld [vmem:[#allocation2 + $0x60] sm:$0xf]  ;;  %v597_v12 = vsel %vm5565_vm10, %v589_v58, %v596_v62  ;;  %v403_v20 = vsel %vm5529_vm5, 0, %v402_v4  ;;  %v1121_v23 = vrot.slane %v1119_v54, 5  ;;  %v1133_v24 = vshll.u32 %v5895_v56, 16 }
  0x64   : > { %1927 = vrot.lane.b32.xlu1 %v5866_v26, %s5440_s22  ;;  %v836_v5 = vsel %vm5559_vm9, %v588_v57, %v835_v11  ;;  %838 = vst.msk [vmem:[#allocation2 + $0x64] sm:$0xf] %vm307_vm0, %v597_v12  ;;  %v605_v43 = vor.u32 %v603_v63, %v602_v6  ;;  %v606_v27 = vrot.slane %v602_v6, 4  ;;  %404 = vst [vmem:[#allocation2 + $0x74] sm:$0x1] %v403_v20  ;;  %v1124_v21 = vshrl.u32 %v5897_v36, 16 }
  0x65   : > { %1925 = vrot.lane.b32.xlu0 %v5826_v19, %s5440_s22  ;;  %837 = vst [vmem:[#allocation2 + $0x60] sm:$0xf] %v836_v5  ;;  %v1127_v29 = vshll.u32 %v5897_v36, 16  ;;  %v1137_v28 = vshrl.u32 %v5895_v56, 16  ;;  %v1107_v32 = vrot.slane %v1106_v9, 4  ;;  %v1117_v33 = vrot.slane %v1116_v10, 4 }
  0x66   : > { %v839_v52 = vld [vmem:[#allocation2 + $0x68] sm:$0x1]  ;;  %v842_v31 = vld [vmem:[#allocation2 + $0x6c] sm:$0xf]  ;;  %v613_v42 = vor.u32 %v611_v15, %v610_v17  ;;  %v5925_v39 = vcombine.low %v5832_v45, %v5838_v3  ;;  %v5020_v46 = vrot.slane %v5832_v45, 9  ;;  %v350_v47 = vsel %vm5508_vm3, 0, %v349_v22 }
  0x67   : > { %v840_v30 = vsel %vm5508_vm3, %v598_v2, %v839_v52  ;;  %v843_v35 = vsel %vm5559_vm9, %v605_v43, %v842_v31  ;;  %v615_v60 = vrot.slane %v610_v17, 4  ;;  %351 = vst [vmem:[#allocation2 + $0x78] sm:$0x1] %v350_v47  ;;  %v1126_v3 = vrot.slane %v1124_v21, 4  ;;  %v448_v58 = vld [vmem:[%s5537_s10 + $0x4c] sm:$0xf] }
  0x68   : > { %1674 = vrot.lane.b32.xlu1 %v5826_v19, %s5436_s14  ;;  %v5905_v19 = vcombine.low %v1428_v49, %v1431_v53  ;;  %841 = vst [vmem:[#allocation2 + $0x68] sm:$0x1] %v840_v30  ;;  %844 = vst [vmem:[#allocation2 + $0x6c] sm:$0xf] %v843_v35  ;;  %v1437_v49 = vrot.slane %v5872_v25, 5  ;;  %v5932_v53 = vrot.slane %v1133_v24, 5  ;;  %v614_v54 = vsel %vm5565_vm10, %v606_v27, %v613_v42 }
  0x69   : > { %1960 = vrot.lane.b32.xlu0 %v5830_v55, %s5438_s18  ;;  %v1129_v57 = vrot.slane %v1127_v29, 5  ;;  %v1139_v45 = vrot.slane %v1137_v28, 4  ;;  %845 = vst.msk [vmem:[#allocation2 + $0x70] sm:$0xf] %vm307_vm0, %v614_v54  ;;  %v406_v62 = vsel %vm5529_vm5, 0, %v405_v37  ;;  %v1112_v25 = vsel %vm5636_vm14, %v1107_v32, %v5881_v38 }
  0x6a   : > { %v1122_v63 = vsel %vm5636_vm14, %v1117_v33, %v1121_v23  ;;  %v1436_v4 = vrot.slane %v1434_v16, 4  ;;  %v5947_v9 = vld [vmem:[#allocation2 + $0x5c] sm:$0x1]  ;;  %v617_v10 = vshrl.u32 %v447_v48, 16  ;;  %407 = vst [vmem:[#allocation2 + $0x80] sm:$0x1] %v406_v62  ;;  %v1435_v17 = vsel %vm5580_vm13, %v5020_v46, %v1434_v16 }
  0x6b   : > { %v846_v2 = vld [vmem:[#allocation2 + $0x74] sm:$0x1]  ;;  %v625_v12 = vshrl.u32 %v448_v58, 16  ;;  %v5955_v38 = vcombine.low %v1112_v25, %v1122_v63  ;;  %v1130_v5 = vor.u32 %v1129_v57, %v1126_v3  ;;  %v1140_v6 = vor.u32 %v1139_v45, %v5932_v53  ;;  %v5386_v37 = vld [vmem:[%s8385_s1 + $0x10] ss:$0 sps:$4 sm:$0x33]  }
  0x6c   : > { %1676 = vrot.lane.b32.xlu1 %v5866_v26, %s5436_s14  ;;  %v847_v11 = vsel %vm5508_vm3, %v615_v60, %v846_v2  ;;  %v1143_v15 = vshll.u32 %v5947_v9, 16  ;;  %v619_v20 = vrot.slane %v617_v10, 7  ;;  %v620_v22 = vshll.u32 %v447_v48, 16  ;;  %v5986_v46 = vld [vmem:[#allocation2 + $0x60] sm:$0xf] }
  0x6d   : > { %1962 = vrot.lane.b32.xlu0 %v5905_v19, %s5438_s18  ;;  %848 = vst [vmem:[#allocation2 + $0x74] sm:$0x1] %v847_v11  ;;  %v627_v23 = vrot.slane %v625_v12, 7  ;;  %v628_v24 = vshll.u32 %v448_v58, 16  ;;  %v1131_v43 = vrot.slane %v1130_v5, 4  ;;  %v1141_v27 = vrot.slane %v1140_v6, 4 }
  0x6e   : > { %v1145_v21 = vrot.slane %v1143_v15, 5  ;;  %v623_v29 = vrot.slane %v619_v20, 4  ;;  %v1441_v16 = vrot.slane %v5895_v56, 5  ;;  %v622_v28 = vor.u32 %v620_v22, %v619_v20  ;;  %v849_v32 = vld [vmem:[#allocation2 + $0x78] sm:$0xf] }
  0x6f   : > { %v630_v30 = vor.u32 %v628_v24, %v627_v23  ;;  %v632_v31 = vrot.slane %v627_v23, 4  ;;  %v5976_v42 = vcombine.low %v5897_v36, %v5895_v56  ;;  %v5988_v47 = vld [vmem:[#allocation2 + $0x64] sm:$0xf]  ;;  %v449_v60 = vld [vmem:[%s5537_s10 + $0x50] sm:$0xf]  ;;  %v5021_v45 = vrot.slane %v5897_v36, 9 }
  0x70   : > { %1756 = vrot.lane.b32.xlu1 %v5905_v19, %s5433_s11  ;;  %v1146_v35 = vsel %vm5636_vm14, %v1141_v27, %v1145_v21  ;;  %v352_v56 = vld [vmem:[#allocation2 + $0x84] sm:$0x1]  ;;  %v450_v3 = vld [vmem:[%s5537_s10 + $0x54] sm:$0xf]  ;;  %v1444_v58 = vrot.slane %v5947_v9, 5  ;;  %vm2328_vm15 = vcmask 1041408  }
  0x71   : > { %1754 = vrot.lane.b32.xlu0 %v5830_v55, %s5433_s11  ;;  %v1438_v55 = vsel %vm5580_vm13, %v1436_v4, %v1437_v49  ;;  %v853_v33 = vld [vmem:[#allocation2 + $0x80] sm:$0x1]  ;;  %v631_v48 = vsel %vm5565_vm10, %v623_v29, %v630_v30  ;;  %v1443_v49 = vrot.slane %v1441_v16, 4  ;;  %v1151_v62 = vshll.u32 %v5986_v46, 16  ;;  %5350 = vmatprep.subr.msk.bf16.mxu0 %vm2328_vm15, %v5386_v37  ;;  %v408_v4 = vld [vmem:[#allocation2 + $0x8c] sm:$0x1] }
  0x72   : > { %v5967_v52 = vcombine.low %v1435_v17, %v1438_v55  ;;  %852 = vst.msk [vmem:[#allocation2 + $0x7c] sm:$0xf] %vm307_vm0, %v631_v48  ;;  %v854_v54 = vsel %vm5508_vm3, %v632_v31, %v853_v33  ;;  %v1161_v25 = vshrl.u32 %v5988_v47, 16  ;;  %v2330_v63 = vsel %vm2328_vm15, %v5386_v37, 0  ;;  %v355_v11 = vld [vmem:[#allocation2 + $0x90] sm:$0x1] }
  0x73   : > { %855 = vst [vmem:[#allocation2 + $0x80] sm:$0x1] %v854_v54  ;;  %v1157_v10 = vshll.u32 %v5988_v47, 16  ;;  %5299 = vmatpush3.bf16.msra.mxu0 %v2330_v63  ;;  %v353_v36 = vsel %vm5508_vm3, 0, %v352_v56  ;;  %v634_v9 = vshrl.u32 %v449_v60, 16  ;;  %v642_v2 = vshrl.u32 %v450_v3, 16 }
  0x74   : > { %1791 = vrot.lane.b32.xlu1 %v5925_v39, %s5434_s12  ;;  %354 = vst [vmem:[#allocation2 + $0x84] sm:$0x1] %v353_v36  ;;  %v645_v12 = vshll.u32 %v450_v3, 16  ;;  %4647 = vmatprep.subr.bf16.mxu0 %v8393_v0  ;;  %v637_v6 = vshll.u32 %v449_v60, 16  ;;  %v409_v17 = vsel %vm5529_vm5, 0, %v408_v4  ;;  %v1442_v55 = vsel %vm5580_vm13, %v5021_v45, %v1441_v16 }
  0x75   : > { %1789 = vrot.lane.b32.xlu0 %v5845_v7, %s5434_s12  ;;  %v636_v5 = vrot.slane %v634_v9, 7  ;;  %v644_v15 = vrot.slane %v642_v2, 7  ;;  %v1445_v20 = vsel %vm5580_vm13, %v1443_v49, %v1444_v58  ;;  %410 = vst [vmem:[#allocation2 + $0x8c] sm:$0x1] %v409_v17  ;;  %v356_v22 = vsel %vm5508_vm3, 0, %v355_v11 }
  0x76   : > { %v451_v23 = vld [vmem:[%s5537_s10 + $0x58] sm:$0xf]  ;;  %v452_v24 = vld [vmem:[%s5537_s10 + $0x5c] sm:$0xf]  ;;  %v1153_v21 = vrot.slane %v1151_v62, 5  ;;  %v6030_v29 = vrot.slane %v1157_v10, 5  ;;  %v6040_v37 = vcombine.low %v1442_v55, %v1445_v20  ;;  %v6045_v49 = vcombine.low %v5986_v46, %v5988_v47 }
  0x77   : > { %357 = vst [vmem:[#allocation2 + $0x90] sm:$0x1] %v356_v22  ;;  %v640_v16 = vrot.slane %v636_v5, 4  ;;  %v647_v30 = vor.u32 %v645_v12, %v644_v15  ;;  %v6034_v31 = vld [vmem:[#allocation2 + $0x6c] sm:$0xf]  ;;  %v639_v33 = vor.u32 %v637_v6, %v636_v5  ;;  %v649_v56 = vrot.slane %v644_v15, 4 }
  0x78   : > { %1826 = vrot.lane.b32.xlu1 %v5955_v38, %s5439_s21  ;;  %v654_v3 = vshll.u32 %v451_v23, 16  ;;  %v411_v45 = vld [vmem:[#allocation2 + $0x98] sm:$0x1]  ;;  %v1175_v58 = vshll.u32 %v6034_v31, 16  ;;  %v1448_v11 = vrot.slane %v5988_v47, 5  ;;  %v662_v5 = vshll.u32 %v452_v24, 16 }
  0x79   : > { %1824 = vrot.lane.b32.xlu0 %v5866_v26, %s5439_s21  ;;  %v1136_v26 = vsel %vm5636_vm14, %v1131_v43, %v5932_v53  ;;  %v850_v53 = vsel %vm5559_vm9, %v622_v28, %v849_v32  ;;  %v6028_v43 = vld [vmem:[#allocation2 + $0x68] sm:$0x1]  ;;  %v1163_v28 = vrot.slane %v1161_v25, 4  ;;  %v6036_v32 = vld [vmem:[#allocation2 + $0x70] sm:$0xf]  ;;  %v648_v62 = vsel %vm5565_vm10, %v640_v16, %v647_v30 }
  0x7a   : > { %v6001_v57 = vcombine.low %v1136_v26, %v1146_v35  ;;  %851 = vst [vmem:[#allocation2 + $0x78] sm:$0xf] %v850_v53  ;;  %v651_v26 = vshrl.u32 %v451_v23, 16  ;;  %v659_v35 = vshrl.u32 %v452_v24, 16  ;;  %v1167_v48 = vshll.u32 %v6028_v43, 16 }
  0x7b   : > { %v1164_v54 = vor.u32 %v1163_v28, %v6030_v29  ;;  %v856_v60 = vld [vmem:[#allocation2 + $0x84] sm:$0xf]  ;;  %v358_v25 = vld [vmem:[#allocation2 + $0x9c] sm:$0x1]  ;;  %v1181_v63 = vshll.u32 %v6036_v32, 16  ;;  %vm1988_vm1 = vcmask 31744  }
  0x7c   : > { %1861 = vrot.lane.b32.xlu1 %v5967_v52, %s5437_s17  ;;  %v857_v4 = vsel %vm5559_vm9, %v639_v33, %v856_v60  ;;  %859 = vst.msk [vmem:[#allocation2 + $0x88] sm:$0xf] %vm307_vm0, %v648_v62  ;;  %v860_v10 = vld [vmem:[#allocation2 + $0x8c] sm:$0x1]  ;;  %v653_v36 = vrot.slane %v651_v26, 7  ;;  %v6059_v9 = vrot.slane %v659_v35, 7 }
  0x7d   : > { %1859 = vrot.lane.b32.xlu0 %v5905_v19, %s5437_s17  ;;  %v1148_v19 = vshrl.u32 %v5986_v46, 16  ;;  %v1169_v2 = vrot.slane %v1167_v48, 5  ;;  %858 = vst [vmem:[#allocation2 + $0x84] sm:$0xf] %v857_v4  ;;  %v861_v12 = vsel %vm5508_vm3, %v649_v56, %v860_v10  ;;  %v1165_v17 = vrot.slane %v1164_v54, 4 }
  0x7e   : > { %v863_v6 = vld [vmem:[#allocation2 + $0x90] sm:$0xf]  ;;  %862 = vst [vmem:[#allocation2 + $0x8c] sm:$0x1] %v861_v12  ;;  %v656_v55 = vor.u32 %v654_v3, %v653_v36  ;;  %v657_v20 = vrot.slane %v653_v36, 4  ;;  %v664_v47 = vor.u32 %v662_v5, %v6059_v9  ;;  %v6071_v24 = vrot.slane %v1181_v63, 5 }
  0x7f   : > { %v1150_v27 = vrot.slane %v1148_v19, 4  ;;  %v1185_v19 = vshrl.u32 %v6036_v32, 16  ;;  %v414_v22 = vld [vmem:[#allocation2 + $0xa4] sm:$0x1]  ;;  %v361_v28 = vld [vmem:[#allocation2 + $0xa8] sm:$0x1]  ;;  %v1170_v3 = vsel %vm5636_vm14, %v1165_v17, %v1169_v2 }
  0x80   : > { %1896 = vrot.lane.b32.xlu1 %v5976_v42, %s5435_s13  ;;  %v864_v30 = vsel %vm5559_vm9, %v656_v55, %v863_v6  ;;  %v359_v33 = vsel %vm5508_vm3, 0, %v358_v25  ;;  %v453_v26 = vld [vmem:[%s5537_s10 + $0x60] sm:$0xf]  ;;  %v5022_v35 = vrot.slane %v5986_v46, 9  ;;  %v1450_v48 = vrot.slane %v1448_v11, 4 }
  0x81   : > { %1894 = vrot.lane.b32.xlu0 %v5925_v39, %s5435_s13  ;;  %v1154_v53 = vor.u32 %v1153_v21, %v1150_v27  ;;  %v1177_v27 = vrot.slane %v1175_v58, 5  ;;  %v412_v21 = vsel %vm5529_vm5, 0, %v411_v45  ;;  %v1187_v16 = vrot.slane %v1185_v19, 4  ;;  %865 = vst [vmem:[#allocation2 + $0x90] sm:$0xf] %v864_v30 }
  0x82   : > { %413 = vst [vmem:[#allocation2 + $0x98] sm:$0x1] %v412_v21  ;;  %v1451_v56 = vrot.slane %v6028_v43, 5  ;;  %v665_v54 = vsel %vm5565_vm10, %v657_v20, %v664_v47  ;;  %360 = vst [vmem:[#allocation2 + $0x9c] sm:$0x1] %v359_v33  ;;  %v415_v43 = vsel %vm5529_vm5, 0, %v414_v22  ;;  %v1449_v4 = vsel %vm5580_vm13, %v5022_v35, %v1448_v11 }
  0x83   : > { %v1155_v15 = vrot.slane %v1154_v53, 4  ;;  %v6082_v53 = vld [vmem:[#allocation2 + $0x74] sm:$0x1]  ;;  %866 = vst.msk [vmem:[#allocation2 + $0x94] sm:$0xf] %vm307_vm0, %v665_v54  ;;  %v362_v45 = vsel %vm5508_vm3, 0, %v361_v28 }
  0x84   : > { %1931 = vrot.lane.b32.xlu1 %v6001_v57, %s5440_s22  ;;  %v454_v46 = vld [vmem:[%s5537_s10 + $0x64] sm:$0xf]  ;;  %416 = vst [vmem:[#allocation2 + $0xa4] sm:$0x1] %v415_v43  ;;  %363 = vst [vmem:[#allocation2 + $0xa8] sm:$0x1] %v362_v45 }
  0x85   : > { %1929 = vrot.lane.b32.xlu0 %v5955_v38, %s5440_s22  ;;  %v1160_v60 = vsel %vm5636_vm14, %v1155_v15, %v6030_v29  ;;  %v1188_v29 = vor.u32 %v1187_v16, %v6071_v24  ;;  %v1191_v19 = vshll.u32 %v6082_v53, 16  ;;  %v666_v62 = vrot.slane %v6059_v9, 4  ;;  %v455_v20 = vld [vmem:[%s5537_s10 + $0x68] sm:$0xf]  ;;  %v456_v22 = vld [vmem:[%s5537_s10 + $0x6c] sm:$0xf] }
  0x86   : > { %v6104_v25 = vcombine.low %v1160_v60, %v1170_v3  ;;  %v676_v63 = vshrl.u32 %v454_v46, 16  ;;  %v1455_v10 = vrot.slane %v6036_v32, 5  ;;  %v671_v2 = vshll.u32 %v453_v26, 16  ;;  %v6140_v60 = vld [vmem:[#allocation2 + $0x78] sm:$0xf] }
  0x87   : > { %v1189_v5 = vrot.slane %v1188_v29, 4  ;;  %v1193_v6 = vrot.slane %v1191_v19, 5  ;;  %v679_v55 = vshll.u32 %v454_v46, 16  ;;  %v1458_v47 = vrot.slane %v6082_v53, 5 }
  0x88   : > { %1678 = vrot.lane.b32.xlu1 %v5955_v38, %s5436_s14  ;;  %v1172_v38 = vshrl.u32 %v6034_v31, 16  ;;  %v678_v17 = vrot.slane %v676_v63, 7  ;;  %v685_v35 = vshrl.u32 %v455_v20, 16  ;;  %v688_v46 = vshll.u32 %v455_v20, 16  ;;  %v364_v63 = vld [vmem:[#allocation2 + $0xb4] sm:$0x1] }
  0x89   : > { %1964 = vrot.lane.b32.xlu0 %v5967_v52, %s5438_s18  ;;  %v867_v36 = vld [vmem:[#allocation2 + $0x98] sm:$0x1]  ;;  %v1194_v33 = vsel %vm5636_vm14, %v1189_v5, %v1193_v6  ;;  %v367_v20 = vld [vmem:[#allocation2 + $0xc0] sm:$0x1]  ;;  %vm2037_vm6 = vcmask 64512   ;;  %vm2070_vm7 = vcmask 97280  }
  0x8a   : > { %v1174_v23 = vrot.slane %v1172_v38, 4  ;;  %v668_v38 = vshrl.u32 %v453_v26, 16  ;;  %v868_v15 = vsel %vm5508_vm3, %v666_v62, %v867_v36  ;;  %v870_v26 = vld [vmem:[#allocation2 + $0x9c] sm:$0xf]  ;;  %v683_v3 = vrot.slane %v678_v17, 4 }
  0x8b   : > { %869 = vst [vmem:[#allocation2 + $0x98] sm:$0x1] %v868_v15  ;;  %v874_v53 = vld [vmem:[#allocation2 + $0xa4] sm:$0x1]  ;;  %v687_v29 = vrot.slane %v685_v35, 7  ;;  %v696_v62 = vshll.u32 %v456_v22, 16 }
  0x8c   : > { %1680 = vrot.lane.b32.xlu1 %v6001_v57, %s5436_s14  ;;  %v1178_v58 = vor.u32 %v1177_v27, %v1174_v23  ;;  %v670_v9 = vrot.slane %v668_v38, 7  ;;  %v5023_v23 = vrot.slane %v6034_v31, 9  ;;  %v1457_v27 = vrot.slane %v1455_v10, 4  ;;  %v417_v38 = vld [vmem:[#allocation2 + $0xb0] sm:$0x1] }
  0x8d   : > { %1966 = vrot.lane.b32.xlu0 %v6040_v37, %s5438_s18  ;;  %v691_v5 = vrot.slane %v687_v29, 4  ;;  %v418_v15 = vsel %vm5529_vm5, 0, %v417_v38  ;;  %vm2103_vm8 = vcmask 130048   ;;  %vm2136_vm11 = vcmask 162816  }
  0x8e   : > { %v1179_v12 = vrot.slane %v1178_v58, 4  ;;  %v673_v21 = vor.u32 %v671_v2, %v670_v9  ;;  %v674_v28 = vrot.slane %v670_v9, 4  ;;  %v1456_v54 = vsel %vm5580_vm13, %v5023_v23, %v1455_v10  ;;  %v877_v2 = vld [vmem:[#allocation2 + $0xa8] sm:$0xf]  ;;  %419 = vst [vmem:[#allocation2 + $0xb0] sm:$0x1] %v418_v15 }
  0x8f   : > { %v1199_v10 = vshll.u32 %v6140_v60, 16  ;;  %vm2169_vm12 = vcmask 195584   ;;  %vm2202_vm15 = vcmask 228352  }
  0x90   : > { %1760 = vrot.lane.b32.xlu1 %v6040_v37, %s5433_s11  ;;  %v1184_v30 = vsel %vm5636_vm14, %v1179_v12, %v6071_v24  ;;  %v6142_v24 = vld [vmem:[#allocation2 + $0x7c] sm:$0xf]  ;;  %v871_v45 = vsel %vm5559_vm9, %v673_v21, %v870_v26  ;;  %v690_v12 = vor.u32 %v688_v46, %v687_v29  ;;  %v457_v21 = vld [vmem:[%s5537_s10 + $0x70] sm:$0xf]  ;;  %v6206_v29 = vld [vmem:[#allocation2 + $0x88] sm:$0xf] }
  0x91   : > { %1758 = vrot.lane.b32.xlu0 %v5967_v52, %s5433_s11  ;;  %v1452_v52 = vsel %vm5580_vm13, %v1450_v48, %v1451_v56  ;;  %v693_v48 = vshrl.u32 %v456_v22, 16  ;;  %v681_v56 = vor.u32 %v679_v55, %v678_v17  ;;  %v6146_v43 = vcombine.low %v1184_v30, %v1194_v33  ;;  %872 = vst [vmem:[#allocation2 + $0x9c] sm:$0xf] %v871_v45  ;;  %v420_v55 = vld [vmem:[#allocation2 + $0xbc] sm:$0x1] }
  0x92   : > { %v6117_v11 = vcombine.low %v1449_v4, %v1452_v52  ;;  %v1196_v52 = vshrl.u32 %v6140_v60, 16  ;;  %v1209_v36 = vshrl.u32 %v6142_v24, 16  ;;  %v1205_v9 = vshll.u32 %v6142_v24, 16 }
  0x93   : > { %v695_v19 = vrot.slane %v693_v48, 7  ;;  %v365_v17 = vsel %vm5508_vm3, 0, %v364_v63  ;;  %v1201_v33 = vrot.slane %v1199_v10, 5  ;;  %v1462_v63 = vrot.slane %v6142_v24, 5 }
  0x94   : > { %1795 = vrot.lane.b32.xlu1 %v6045_v49, %s5434_s12  ;;  %366 = vst [vmem:[#allocation2 + $0xb4] sm:$0x1] %v365_v17  ;;  %v1198_v30 = vrot.slane %v1196_v52, 4  ;;  %v6186_v26 = vrot.slane %v1205_v9, 5  ;;  %v1211_v35 = vrot.slane %v1209_v36, 4  ;;  %v1233_v15 = vshrl.u32 %v6206_v29, 16 }
  0x95   : > { %1793 = vrot.lane.b32.xlu0 %v5976_v42, %s5434_s12  ;;  %v698_v6 = vor.u32 %v696_v62, %v695_v19  ;;  %v6211_v52 = vld [vmem:[#allocation2 + $0x84] sm:$0xf]  ;;  %v1229_v17 = vshll.u32 %v6206_v29, 16 }
  0x96   : > { %v1202_v45 = vor.u32 %v1201_v33, %v1198_v30  ;;  %v1212_v38 = vor.u32 %v1211_v35, %v6186_v26  ;;  %v6232_v33 = vcombine.low %v6140_v60, %v6142_v24  ;;  %v5024_v35 = vrot.slane %v6140_v60, 9  ;;  %v6246_v60 = vld [vmem:[#allocation2 + $0x8c] sm:$0x1] }
  0x97   : > { %v5025_v8 = vrot.slane %v6211_v52, 9  ;;  %v6322_v34 = vcombine.low %v6211_v52, %v6206_v29 }
  0x98   : > { %1830 = vrot.lane.b32.xlu1 %v6104_v25, %s5439_s21  ;;  %v6388_v1 = vld [vmem:[#allocation2 + $0x9c] sm:$0xf] }
  0x99   : > { %1828 = vrot.lane.b32.xlu0 %v6001_v57, %s5439_s21  ;;  %v6136_v57 = vcombine.low %v6034_v31, %v6036_v32  ;;  %v1459_v31 = vsel %vm5580_vm13, %v1457_v27, %v1458_v47  ;;  %v682_v32 = vsel %vm5565_vm10, %v674_v28, %v681_v56  ;;  %v699_v27 = vsel %vm5565_vm10, %v691_v5, %v698_v6  ;;  %v6184_v28 = vld [vmem:[#allocation2 + $0x80] sm:$0x1] }
  0x9a   : > { %v6125_v16 = vpop.permute.xlu1 %1746  ;;  %873 = vst.msk [vmem:[#allocation2 + $0xa0] sm:$0xf] %vm307_vm0, %v682_v32  ;;  %v6175_v23 = vcombine.low %v1456_v54, %v1459_v31  ;;  %v878_v47 = vsel %vm5559_vm9, %v690_v12, %v877_v2  ;;  %880 = vst.msk [vmem:[#allocation2 + $0xac] sm:$0xf] %vm307_vm0, %v699_v27  ;;  %v421_v56 = vsel %vm5529_vm5, 0, %v420_v55  ;;  %v1215_v46 = vshll.u32 %v6184_v28, 16 }
  0x9b   : > { %879 = vst [vmem:[#allocation2 + $0xa8] sm:$0xf] %v878_v47  ;;  %v458_v54 = vld [vmem:[%s5537_s10 + $0x74] sm:$0xf]  ;;  %422 = vst [vmem:[#allocation2 + $0xbc] sm:$0x1] %v421_v56 }
  0x9c   : > { %1865 = vrot.lane.b32.xlu1 %v6117_v11, %s5437_s17  ;;  %v700_v31 = vrot.slane %v695_v19, 4  ;;  %v702_v32 = vshrl.u32 %v457_v21, 16  ;;  %v710_v62 = vshrl.u32 %v458_v54, 16  ;;  %v881_v19 = vld [vmem:[#allocation2 + $0xb0] sm:$0x1]  ;;  %v1217_v36 = vrot.slane %v1215_v46, 5 }
  0x9d   : > { %1863 = vrot.lane.b32.xlu0 %v6040_v37, %s5437_s17  ;;  %v875_v37 = vsel %vm5508_vm3, %v683_v3, %v874_v53  ;;  %v368_v53 = vsel %vm5508_vm3, 0, %v367_v20  ;;  %v705_v12 = vshll.u32 %v457_v21, 16  ;;  %v1203_v5 = vrot.slane %v1202_v45, 4  ;;  %v6222_v55 = vld [vmem:[%s5537_s10 + $0x78] sm:$0xf] }
  0x9e   : > { %v6154_v58 = vpop.permute.xlu0 %1781  ;;  %876 = vst [vmem:[#allocation2 + $0xa4] sm:$0x1] %v875_v37  ;;  %369 = vst [vmem:[#allocation2 + $0xc0] sm:$0x1] %v368_v53  ;;  %v882_v9 = vsel %vm5508_vm3, %v700_v31, %v881_v19  ;;  %v704_v2 = vrot.slane %v702_v32, 7  ;;  %v1213_v6 = vrot.slane %v1212_v38, 4 }
  0x9f   : > { %883 = vst [vmem:[#allocation2 + $0xb0] sm:$0x1] %v882_v9  ;;  %v1220_v27 = vshrl.u32 %v6211_v52, 16  ;;  %v1223_v47 = vshll.u32 %v6211_v52, 16  ;;  %v712_v30 = vrot.slane %v710_v62, 7  ;;  %v713_v21 = vshll.u32 %v458_v54, 16 }
  0xa0   : > { %1900 = vrot.lane.b32.xlu1 %v6136_v57, %s5435_s13  ;;  %v6161_v4 = vpop.permute.xlu1 %1783  ;;  %v1464_v53 = vrot.slane %v1462_v63, 4  ;;  %v1465_v46 = vrot.slane %v6184_v28, 5  ;;  %v707_v31 = vor.u32 %v705_v12, %v704_v2  ;;  %v719_v32 = vshrl.u32 %v6222_v55, 16  ;;  %v884_v28 = vld [vmem:[#allocation2 + $0xb4] sm:$0xf] }
  0xa1   : > { %1898 = vrot.lane.b32.xlu0 %v6045_v49, %s5435_s13  ;;  %v1218_v24 = vsel %vm5636_vm14, %v1213_v6, %v1217_v36  ;;  %v6248_v54 = vrot.slane %v1229_v17, 5  ;;  %v1235_v45 = vrot.slane %v1233_v15, 4  ;;  %v1222_v62 = vrot.slane %v1220_v27, 4  ;;  %v460_v36 = vld [vmem:[%s5537_s10 + $0x7c] sm:$0xf]  ;;  %s5443_s10 = smov 48  }
  0xa2   : > { %v6173_v22 = vpop.permute.xlu0 %1886  ;;  %v1225_v19 = vrot.slane %v1223_v47, 5  ;;  %v708_v9 = vrot.slane %v704_v2, 4  ;;  %v715_v12 = vor.u32 %v713_v21, %v712_v30  ;;  %v888_v0 = vld [vmem:[#allocation2 + $0xbc] sm:$0x1]  ;;  %v885_v2 = vsel %vm5559_vm9, %v707_v31, %v884_v28  ;;  %v423_v17 = vld [vmem:[#allocation2 + $0xc8] sm:$0x1] }
  0xa3   : > { %v721_v15 = vrot.slane %v719_v32, 7  ;;  %v1236_v47 = vor.u32 %v1235_v45, %v6248_v54  ;;  %886 = vst [vmem:[#allocation2 + $0xb4] sm:$0xf] %v885_v2  ;;  %v370_v21 = vld [vmem:[#allocation2 + $0xcc] sm:$0x1]  ;;  %v722_v32 = vshll.u32 %v6222_v55, 16 }
  0xa4   : > { %1935 = vrot.lane.b32.xlu1 %v6146_v43, %s5440_s22  ;;  %v6189_v48 = vpop.permute.xlu1 %1888  ;;  %v716_v6 = vsel %vm5565_vm10, %v708_v9, %v715_v12  ;;  %v1226_v31 = vor.u32 %v1225_v19, %v1222_v62  ;;  %v1469_v28 = vrot.slane %v6206_v29, 5  ;;  %v730_v9 = vshll.u32 %v460_v36, 16 }
  0xa5   : > { %1933 = vrot.lane.b32.xlu0 %v6104_v25, %s5440_s22  ;;  %887 = vst.msk [vmem:[#allocation2 + $0xb8] sm:$0xf] %vm307_vm0, %v716_v6  ;;  %v725_v55 = vrot.slane %v721_v15, 4  ;;  %v891_v19 = vld [vmem:[#allocation2 + $0xc0] sm:$0xf]  ;;  %v371_v18 = vsel %vm5508_vm3, 0, %v370_v21 }
  0xa6   : > { %v6198_v3 = vpop.permute.xlu0 %1666  ;;  %372 = vst [vmem:[#allocation2 + $0xcc] sm:$0x1] %v371_v18  ;;  %v1227_v2 = vrot.slane %v1226_v31, 4  ;;  %v6335_v31 = vld [vmem:[#allocation2 + $0x94] sm:$0xf] }
  0xa7   : > { %v1991_v45 = vsel %vm1988_vm1, %v5032_v41, %v6198_v3  ;;  %v1237_v3 = vrot.slane %v1236_v47, 4  ;;  %v1471_v47 = vrot.slane %v1469_v28, 4 }
  0xa8   : > { %1970 = vrot.lane.b32.xlu1 %v6175_v23, %s5438_s18  ;;  %v6204_v37 = vpop.permute.xlu1 %1748 }
  0xa9   : > { %1968 = vrot.lane.b32.xlu0 %v6117_v11, %s5438_s18 }
  0xaa   : > { %v6213_v10 = vpop.permute.xlu0 %1851 }
  0xac   : > { %1684 = vrot.lane.b32.xlu1 %v6146_v43, %s5436_s14  ;;  %v6224_v20 = vpop.permute.xlu1 %1853 }
  0xad   : > { %1682 = vrot.lane.b32.xlu0 %v6104_v25, %s5436_s14  ;;  %v1208_v25 = vsel %vm5636_vm14, %v1203_v5, %v6186_v26  ;;  %v717_v26 = vrot.slane %v712_v30, 4  ;;  %v1463_v5 = vsel %vm5580_vm13, %v5024_v35, %v1462_v63  ;;  %v1239_v63 = vshll.u32 %v6246_v60, 16 }
  0xae   : > { %v6235_v56 = vpop.permute.xlu0 %1956  ;;  %v1466_v35 = vsel %vm5580_vm13, %v1464_v53, %v1465_v46  ;;  %v424_v53 = vsel %vm5529_vm5, 0, %v423_v17  ;;  %v724_v46 = vor.u32 %v722_v32, %v721_v15 }
  0xaf   : > { %v889_v30 = vsel %vm5508_vm3, %v717_v26, %v888_v0  ;;  %425 = vst [vmem:[#allocation2 + $0xc8] sm:$0x1] %v424_v53  ;;  %v6291_v41 = vcombine.low %v1463_v5, %v1466_v35  ;;  %v1241_v12 = vrot.slane %v1239_v63, 5  ;;  %v1472_v63 = vrot.slane %v6246_v60, 5 }
  0xb0   : > { %1764 = vrot.lane.b32.xlu1 %v6175_v23, %s5433_s11  ;;  %v6250_v38 = vpop.permute.xlu1 %1818  ;;  %890 = vst [vmem:[#allocation2 + $0xbc] sm:$0x1] %v889_v30 }
  0xb1   : > { %1762 = vrot.lane.b32.xlu0 %v6117_v11, %s5433_s11  ;;  %v6265_v11 = vcombine.low %v1208_v25, %v1218_v24  ;;  %v727_v25 = vshrl.u32 %v460_v36, 16  ;;  %v426_v24 = vld [vmem:[#allocation2 + $0xd4] sm:$0x1]  ;;  %v2039_v36 = vsel %vm2037_vm6, %v1991_v45, %v6125_v16  ;;  %v892_v16 = vsel %vm5559_vm9, %v724_v46, %v891_v19 }
  0xb2   : > { %v427_v26 = vsel %vm5529_vm5, 0, %v426_v24  ;;  %893 = vst [vmem:[#allocation2 + $0xc0] sm:$0xf] %v892_v16  ;;  %v2072_v30 = vsel %vm2070_vm7, %v2039_v36, %v6154_v58  ;;  %vm2235_vm5 = vcmask 261120   ;;  %v1232_v58 = vsel %vm5636_vm14, %v1227_v2, %v6248_v54  ;;  %v936_v36 = vld [vmem:[#allocation2 + $0x98] sm:$0x1] }
  0xb3   : > { %v6261_v27 = vpop.permute.xlu0 %1958  ;;  %v6285_v62 = vrot.slane %v727_v25, 7  ;;  %428 = vst [vmem:[#allocation2 + $0xd4] sm:$0x1] %v427_v26  ;;  %v1242_v35 = vsel %vm5636_vm14, %v1237_v3, %v1241_v12  ;;  %v1470_v54 = vsel %vm5580_vm13, %v5025_v8, %v1469_v28  ;;  %v1473_v25 = vsel %vm5580_vm13, %v1471_v47, %v1472_v63  ;;  %v6390_v16 = vld [vmem:[#allocation2 + $0xa0] sm:$0xf] }
  0xb4   : > { %1799 = vrot.lane.b32.xlu1 %v6232_v33, %s5434_s12  ;;  %v1257_v28 = vshrl.u32 %v6335_v31, 16  ;;  %v6371_v18 = vcombine.low %v1470_v54, %v1473_v25  ;;  %vm2540_vm9 = vcmask 122880  }
  0xb5   : > { %1797 = vrot.lane.b32.xlu0 %v6136_v57, %s5434_s12  ;;  %v1924_v0 = vpop.permute.xlu1 %1923  ;;  %v732_v15 = vor.u32 %v730_v9, %v6285_v62  ;;  %v1253_v9 = vshll.u32 %v6335_v31, 16  ;;  %v734_v53 = vrot.slane %v6285_v62, 4 }
  0xb6   : > { %v895_v19 = vld [vmem:[#allocation2 + $0xc8] sm:$0x1]  ;;  %v1259_v26 = vrot.slane %v1257_v28, 4 }
  0xb7   : > { %v1669_v59 = vpop.permute.xlu0 %1668  ;;  %v1255_v12 = vrot.slane %v1253_v9, 5 }
  0xb8   : > { %1834 = vrot.lane.b32.xlu1 %v6265_v11, %s5439_s21  ;;  %v1994_v6 = vsel %vm1988_vm1, %v5626_v44, %v1669_v59 }
  0xb9   : > { %v2041_v5 = vsel %vm2037_vm6, %v1994_v6, %v6204_v37  ;;  %1832 = vrot.lane.b32.xlu0 %v6146_v43, %s5439_s21  ;;  %v6304_v17 = vpop.permute.xlu1 %1670  ;;  %v733_v37 = vsel %vm5565_vm10, %v725_v55, %v732_v15  ;;  %v1260_v15 = vor.u32 %v1259_v26, %v1255_v12 }
  0xba   : > { %v2074_v44 = vsel %vm2070_vm7, %v2041_v5, %v6161_v4  ;;  %v6324_v4 = vld [vmem:[#allocation2 + $0x90] sm:$0xf]  ;;  %894 = vst.msk [vmem:[#allocation2 + $0xc4] sm:$0xf] %vm307_vm0, %v733_v37  ;;  %vm2295_vm0 = vcmask 293888   ;;  %v1263_v5 = vshll.u32 %v936_v36, 16 }
  0xbb   : > { %v2107_v43 = vsel %vm2103_vm8, %v2074_v44, %v6250_v38  ;;  %v1817_v21 = vpop.permute.xlu0 %1816  ;;  %v1247_v24 = vshll.u32 %v6324_v4, 16  ;;  %v1261_v63 = vrot.slane %v1260_v15, 4 }
  0xbc   : > { %1869 = vrot.lane.b32.xlu1 %v6291_v41, %s5437_s17  ;;  %v2105_v60 = vsel %vm2103_vm8, %v2072_v30, %v1817_v21  ;;  %v2140_v38 = vsel %vm2136_vm11, %v2107_v43, %v6224_v20  ;;  %v1265_v37 = vrot.slane %v1263_v5, 5  ;;  %v1476_v43 = vrot.slane %v6335_v31, 5 }
  0xbd   : > { %v2138_v29 = vsel %vm2136_vm11, %v2105_v60, %v6213_v10  ;;  %1867 = vrot.lane.b32.xlu0 %v6175_v23, %s5437_s17  ;;  %v6341_v52 = vpop.permute.xlu1 %1672  ;;  %v2173_v20 = vsel %vm2169_vm12, %v2140_v38, %v6189_v48  ;;  %v1244_v10 = vshrl.u32 %v6324_v4, 16  ;;  %v6356_v48 = vcombine.low %v1232_v58, %v1242_v35 }
  0xbe   : > { %v2171_v32 = vsel %vm2169_vm12, %v2138_v29, %v6173_v22  ;;  %v2206_v45 = vsel %vm2202_vm15, %v2173_v20, %v1924_v0  ;;  %v1249_v3 = vrot.slane %v1247_v24, 5  ;;  %v1268_v30 = vshrl.u32 %v6388_v1, 16 }
  0xbf   : > { %v1922_v23 = vpop.permute.xlu0 %1921  ;;  %v2239_v0 = vsel %vm2235_vm5, %v2206_v45, %v6261_v27  ;;  %v1246_v62 = vrot.slane %v1244_v10, 4  ;;  %v1271_v21 = vshll.u32 %v6388_v1, 16  ;;  %v1281_v60 = vshrl.u32 %v6390_v16, 16 }
  0xc0   : > { %1904 = vrot.lane.b32.xlu1 %v6322_v34, %s5435_s13  ;;  %v2204_v22 = vsel %vm2202_vm15, %v2171_v32, %v1922_v23  ;;  %v1277_v38 = vshll.u32 %v6390_v16, 16  ;;  %v6403_v35 = vcombine.low %v6324_v4, %v6335_v31  ;;  %v5026_v29 = vrot.slane %v6324_v4, 9  ;;  %v939_v31 = vld [vmem:[#allocation2 + $0xa4] sm:$0x1] }
  0xc1   : > { %1902 = vrot.lane.b32.xlu0 %v6232_v33, %s5435_s13  ;;  %v6364_v46 = vpop.permute.xlu1 %1752  ;;  %v2237_v55 = vsel %vm2235_vm5, %v2204_v22, %v6235_v56  ;;  %v896_v56 = vsel %vm5508_vm3, %v734_v53, %v895_v19  ;;  %v1250_v2 = vor.u32 %v1249_v3, %v1246_v62  ;;  %v1266_v32 = vsel %vm5636_vm14, %v1261_v63, %v1265_v37 }
  0xc2   : > { %5300 = vmatprep.mubr.msk.bf16.mxu0 %vm2295_vm0, %v2237_v55  ;;  %897 = vst [vmem:[#allocation2 + $0xc8] sm:$0x1] %v896_v56  ;;  %v1478_v25 = vrot.slane %v1476_v43, 4  ;;  %v1479_v10 = vrot.slane %v936_v36, 5  ;;  %v1273_v24 = vrot.slane %v1271_v21, 5  ;;  %v1279_v23 = vrot.slane %v1277_v38, 5 }
  0xc3   : > { %5301 = vmatmul.mubr.msk.bf16.vlgmr.msra.gmra.mrb[0].mxu0 %vm2295_vm0, %v2239_v0  ;;  %v1751_v59 = vpop.permute.xlu0 %1750  ;;  %v1251_v47 = vrot.slane %v1250_v2, 4  ;;  %v1283_v45 = vrot.slane %v1281_v60, 4  ;;  %v1477_v22 = vsel %vm5580_vm13, %v5026_v29, %v1476_v43  ;;  %v1287_v0 = vshll.u32 %v939_v31, 16  ;;  %v6465_v60 = vld [vmem:[#allocation2 + $0xac] sm:$0xf] }
  0xc4   : > { %1939 = vrot.lane.b32.xlu1 %v6356_v48, %s5440_s22  ;;  %v1480_v53 = vsel %vm5580_vm13, %v1478_v25, %v1479_v10  ;;  %v1301_v10 = vshll.u32 %v6465_v60, 16  ;;  %vm8395_vm3 = vcmask 125952  }
  0xc5   : > { %1937 = vrot.lane.b32.xlu0 %v6265_v11, %s5440_s22  ;;  %v6380_v27 = vpop.permute.xlu1 %1787  ;;  %v1256_v54 = vsel %vm5636_vm14, %v1251_v47, %v1255_v12  ;;  %v1284_v19 = vor.u32 %v1283_v45, %v1279_v23  ;;  %v2000_v12 = vsel %vm1988_vm1, %v5659_v13, %v6341_v52  ;;  %v6434_v56 = vcombine.low %v1477_v22, %v1480_v53 }
  0xc6   : > { %v6416_v9 = vcombine.low %v1256_v54, %v1266_v32  ;;  %v1289_v5 = vrot.slane %v1287_v0, 5  ;;  %v2045_v52 = vsel %vm2037_vm6, %v2000_v12, %v6364_v46  ;;  %v6448_v47 = vcombine.low %v6388_v1, %v6390_v16  ;;  %v6456_v46 = vld [vmem:[#allocation2 + $0xa8] sm:$0xf] }
  0xc7   : > { %v1786_v6 = vpop.permute.xlu0 %1785  ;;  %v1285_v15 = vrot.slane %v1284_v19, 4  ;;  %v2078_v63 = vsel %vm2070_vm7, %v2045_v52, %v6380_v27  ;;  %v1295_v54 = vshll.u32 %v6456_v46, 16  ;;  %v1303_v53 = vrot.slane %v1301_v10, 5  ;;  %v942_v19 = vld [vmem:[#allocation2 + $0xb0] sm:$0x1] }
  0xc8   : > { %1974 = vrot.lane.b32.xlu1 %v6371_v18, %s5438_s18  ;;  %v1311_v12 = vshll.u32 %v942_v19, 16 }
  0xc9   : > { %1972 = vrot.lane.b32.xlu0 %v6291_v41, %s5438_s18  ;;  %v1290_v27 = vsel %vm5636_vm14, %v1285_v15, %v1289_v5  ;;  %v1297_v22 = vrot.slane %v1295_v54, 5 }
  0xca   : > { %v6386_v8 = vpop.permute.xlu1 %1822  ;;  %v1313_v5 = vrot.slane %v1311_v12, 5 }
  0xcb   : > { %v1821_v44 = vpop.permute.xlu0 %1820  ;;  %v2111_v21 = vsel %vm2103_vm8, %v2078_v63, %v6386_v8 }
  0xcc   : > { %1688 = vrot.lane.b32.xlu1 %v6356_v48, %s5436_s14 }
  0xcd   : > { %1686 = vrot.lane.b32.xlu0 %v6265_v11, %s5436_s14  ;;  %v1270_v11 = vrot.slane %v1268_v30, 4  ;;  %v1486_v30 = vrot.slane %v939_v31, 5 }
  0xce   : > { %v1858_v58 = vpop.permute.xlu1 %1857 }
  0xcf   : > { %v1856_v20 = vpop.permute.xlu0 %1855  ;;  %v1274_v55 = vor.u32 %v1273_v24, %v1270_v11  ;;  %v2144_v38 = vsel %vm2136_vm11, %v2111_v21, %v1858_v58 }
  0xd0   : > { %1768 = vrot.lane.b32.xlu1 %v6371_v18, %s5433_s11 }
  0xd1   : > { %1766 = vrot.lane.b32.xlu0 %v6291_v41, %s5433_s11  ;;  %v1997_v41 = vsel %vm1988_vm1, %v5632_v50, %v6304_v17  ;;  %v1483_v50 = vrot.slane %v6390_v16, 5  ;;  %v1275_v2 = vrot.slane %v1274_v55, 4 }
  0xd2   : > { %v1893_v4 = vpop.permute.xlu1 %1892  ;;  %v2043_v3 = vsel %vm2037_vm6, %v1997_v41, %v1751_v59 }
  0xd3   : > { %v1891_v28 = vpop.permute.xlu0 %1890  ;;  %v2076_v26 = vsel %vm2070_vm7, %v2043_v3, %v1786_v6  ;;  %v2177_v8 = vsel %vm2169_vm12, %v2144_v38, %v1893_v4 }
  0xd4   : > { %1803 = vrot.lane.b32.xlu1 %v6403_v35, %s5434_s12  ;;  %v2109_v17 = vsel %vm2103_vm8, %v2076_v26, %v1821_v44  ;;  %v5027_v44 = vrot.slane %v6388_v1, 9  ;;  %v1280_v1 = vsel %vm5636_vm14, %v1275_v2, %v1279_v23 }
  0xd5   : > { %1801 = vrot.lane.b32.xlu0 %v6322_v34, %s5434_s12  ;;  %v2142_v59 = vsel %vm2136_vm11, %v2109_v17, %v1856_v20  ;;  %v1292_v20 = vshrl.u32 %v6456_v46, 16  ;;  %v6479_v58 = vcombine.low %v1280_v1, %v1290_v27  ;;  %v1493_v27 = vrot.slane %v942_v19, 5 }
  0xd6   : > { %v1928_v62 = vpop.permute.xlu1 %1927  ;;  %v2175_v6 = vsel %vm2169_vm12, %v2142_v59, %v1891_v28  ;;  %v1484_v24 = vsel %vm5580_vm13, %v5027_v44, %v1483_v50  ;;  %v1490_v59 = vrot.slane %v6465_v60, 5 }
  0xd7   : > { %v1926_v36 = vpop.permute.xlu0 %1925  ;;  %v2210_v32 = vsel %vm2202_vm15, %v2177_v8, %v1928_v62  ;;  %v1294_v4 = vrot.slane %v1292_v20, 4 }
  0xd8   : > { %1838 = vrot.lane.b32.xlu1 %v6416_v9, %s5439_s21  ;;  %v2208_v37 = vsel %vm2202_vm15, %v2175_v6, %v1926_v36  ;;  %v6507_v36 = vld [vmem:[#allocation2 + $0xb4] sm:$0xf]  ;;  %v1492_v1 = vrot.slane %v1490_v59, 4 }
  0xd9   : > { %1836 = vrot.lane.b32.xlu0 %v6356_v48, %s5439_s21  ;;  %v1485_v48 = vrot.slane %v1483_v50, 4  ;;  %v1298_v62 = vor.u32 %v1297_v22, %v1294_v4  ;;  %v6509_v50 = vld [vmem:[#allocation2 + $0xb8] sm:$0xf]  ;;  %v1316_v52 = vshrl.u32 %v6507_v36, 16  ;;  %v1319_v6 = vshll.u32 %v6507_v36, 16 }
  0xda   : > { %v6441_v13 = vpop.permute.xlu1 %1674  ;;  %v1329_v44 = vshrl.u32 %v6509_v50, 16  ;;  %v1325_v63 = vshll.u32 %v6509_v50, 16 }
  0xdb   : > { %v1961_v43 = vpop.permute.xlu0 %1960  ;;  %v1487_v23 = vsel %vm5580_vm13, %v1485_v48, %v1486_v30  ;;  %v1299_v2 = vrot.slane %v1298_v62, 4  ;;  %v5028_v48 = vrot.slane %v6456_v46, 9  ;;  %v1321_v38 = vrot.slane %v1319_v6, 5 }
  0xdc   : > { %1873 = vrot.lane.b32.xlu1 %v6434_v56, %s5437_s17  ;;  %v2241_v16 = vsel %vm2235_vm5, %v2208_v37, %v1961_v43  ;;  %v6495_v28 = vcombine.low %v1484_v24, %v1487_v23  ;;  %v6522_v43 = vcombine.low %v6456_v46, %v6465_v60  ;;  %v1327_v8 = vrot.slane %v1325_v63, 5 }
  0xdd   : > { %1871 = vrot.lane.b32.xlu0 %v6371_v18, %s5437_s17  ;;  %5304 = vmatprep.mubr.msk.bf16.mxu0 %vm2295_vm0, %v2241_v16  ;;  %v1305_v18 = vshrl.u32 %v6465_v60, 16  ;;  %v1304_v21 = vsel %vm5636_vm14, %v1299_v2, %v1303_v53  ;;  %v1331_v20 = vrot.slane %v1329_v44, 4  ;;  %v945_v60 = vld [vmem:[#allocation2 + $0xbc] sm:$0x1]  ;;  %v6567_v2 = vcombine.low %v6507_v36, %v6509_v50 }
  0xde   : > { %v6471_v29 = vpop.permute.xlu1 %1676  ;;  %v1335_v24 = vshll.u32 %v945_v60, 16 }
  0xdf   : > { %v1963_v25 = vpop.permute.xlu0 %1962  ;;  %v1307_v55 = vrot.slane %v1305_v18, 4  ;;  %v1494_v18 = vsel %vm5580_vm13, %v1492_v1, %v1493_v27  ;;  %v2006_v22 = vsel %vm1988_vm1, %v5845_v7, %v6471_v29 }
  0xe0   : > { %1908 = vrot.lane.b32.xlu1 %v6448_v47, %s5435_s13  ;;  %v2243_v11 = vsel %vm2235_vm5, %v2210_v32, %v1963_v25  ;;  %v1491_v25 = vsel %vm5580_vm13, %v5028_v48, %v1490_v59  ;;  %v1337_v12 = vrot.slane %v1335_v24, 5 }
  0xe1   : > { %1906 = vrot.lane.b32.xlu0 %v6403_v35, %s5435_s13  ;;  %5305 = vmatmul.mubr.msk.bf16.gmra.mrb[4].mxu0 %vm2295_vm0, %v2243_v11  ;;  %v1308_v3 = vor.u32 %v1307_v55, %v1303_v53  ;;  %v1332_v11 = vor.u32 %v1331_v20, %v1327_v8  ;;  %v6553_v19 = vcombine.low %v1491_v25, %v1494_v18 }
  0xe2   : > { %v6491_v45 = vpop.permute.xlu1 %1756 }
  0xe3   : > { %v1755_v31 = vpop.permute.xlu0 %1754  ;;  %v1309_v15 = vrot.slane %v1308_v3, 4  ;;  %v1333_v3 = vrot.slane %v1332_v11, 4  ;;  %v2049_v29 = vsel %vm2037_vm6, %v2006_v22, %v6491_v45  ;;  %v6631_v22 = vld [vmem:[#allocation2 + $0xd0] sm:$0xf] }
  0xe4   : > { %1943 = vrot.lane.b32.xlu1 %v6479_v58, %s5440_s22 }
  0xe5   : > { %1941 = vrot.lane.b32.xlu0 %v6416_v9, %s5440_s22  ;;  %v1314_v16 = vsel %vm5636_vm14, %v1309_v15, %v1313_v5 }
  0xe6   : > { %v6499_v0 = vpop.permute.xlu1 %1791  ;;  %v6535_v32 = vcombine.low %v1304_v21, %v1314_v16 }
  0xe7   : > { %v1790_v41 = vpop.permute.xlu0 %1789  ;;  %v2082_v15 = vsel %vm2070_vm7, %v2049_v29, %v6499_v0  ;;  %v6582_v0 = vld [vmem:[#allocation2 + $0xc0] sm:$0xf] }
  0xe8   : > { %1978 = vrot.lane.b32.xlu1 %v6495_v28, %s5438_s18  ;;  %v1506_v1 = vshll.u32 %v6582_v0, 16 }
  0xe9   : > { %1976 = vrot.lane.b32.xlu0 %v6434_v56, %s5438_s18 }
  0xea   : > { %v6505_v26 = vpop.permute.xlu1 %1826  ;;  %v1508_v18 = vrot.slane %v1506_v1, 5 }
  0xeb   : > { %v1825_v17 = vpop.permute.xlu0 %1824  ;;  %v2115_v45 = vsel %vm2103_vm8, %v2082_v15, %v6505_v26  ;;  %v6590_v26 = vld [vmem:[#allocation2 + $0xc4] sm:$0xf] }
  0xec   : > { %1692 = vrot.lane.b32.xlu1 %v6479_v58, %s5436_s14 }
  0xed   : > { %1690 = vrot.lane.b32.xlu0 %v6416_v9, %s5436_s14  ;;  %v1318_v9 = vrot.slane %v1316_v52, 4  ;;  %v1500_v52 = vrot.slane %v945_v60, 5 }
  0xee   : > { %v1862_v37 = vpop.permute.xlu1 %1861 }
  0xef   : > { %v1860_v30 = vpop.permute.xlu0 %1859  ;;  %v1322_v10 = vor.u32 %v1321_v38, %v1318_v9  ;;  %v2148_v44 = vsel %vm2136_vm11, %v2115_v45, %v1862_v37  ;;  %v1516_v38 = vshrl.u32 %v6590_v26, 16 }
  0xf0   : > { %1772 = vrot.lane.b32.xlu1 %v6495_v28, %s5433_s11 }
  0xf1   : > { %1770 = vrot.lane.b32.xlu0 %v6434_v56, %s5433_s11  ;;  %v2003_v56 = vsel %vm1988_vm1, %v5793_v14, %v6441_v13  ;;  %v1497_v14 = vrot.slane %v6509_v50, 5  ;;  %v1323_v62 = vrot.slane %v1322_v10, 4  ;;  %v1518_v11 = vrot.slane %v1516_v38, 4 }
  0xf2   : > { %v1897_v46 = vpop.permute.xlu1 %1896  ;;  %v2047_v4 = vsel %vm2037_vm6, %v2003_v56, %v1755_v31 }
  0xf3   : > { %v1895_v54 = vpop.permute.xlu0 %1894  ;;  %v2080_v53 = vsel %vm2070_vm7, %v2047_v4, %v1790_v41  ;;  %v1328_v50 = vsel %vm5636_vm14, %v1323_v62, %v1327_v8  ;;  %v2181_v48 = vsel %vm2169_vm12, %v2148_v44, %v1897_v46  ;;  %v1512_v8 = vshll.u32 %v6590_v26, 16  ;;  %v6629_v4 = vld [vmem:[%s8391_s7] sm:$0x1] }
  0xf4   : > { %1807 = vrot.lane.b32.xlu1 %v6522_v43, %s5434_s12  ;;  %v2113_v13 = vsel %vm2103_vm8, %v2080_v53, %v1825_v17  ;;  %v5029_v17 = vrot.slane %v6507_v36, 9  ;;  %v1338_v36 = vsel %vm5636_vm14, %v1333_v3, %v1337_v12  ;;  %v2529_v46 = vlaneseq  ;;  %v6641_v12 = vld [vmem:[#allocation2 + $0xcc] sm:$0xf] }
  0xf5   : > { %1805 = vrot.lane.b32.xlu0 %v6448_v47, %s5434_s12  ;;  %v2146_v31 = vsel %vm2136_vm11, %v2113_v13, %v1860_v30  ;;  %v6598_v37 = vcombine.low %v1328_v50, %v1338_v36  ;;  %v6618_v10 = vrot.slane %v1512_v8, 5  ;;  %v2527_v53 = vpack.i.b16 %v6629_v4, %v6629_v4 }
  0xf6   : > { %v1932_v23 = vpop.permute.xlu1 %1931  ;;  %v2179_v41 = vsel %vm2169_vm12, %v2146_v31, %v1895_v54  ;;  %v1498_v30 = vsel %vm5580_vm13, %v5029_v17, %v1497_v14  ;;  %v2530_v24 = vshrl.u32 %v2529_v46, 7  ;;  %v1550_v17 = vshrl.u32 %v6631_v22, 16 }
  0xf7   : > { %v1930_v55 = vpop.permute.xlu0 %1929  ;;  %v2214_v21 = vsel %vm2202_vm15, %v2181_v48, %v1932_v23  ;;  %v6624_v23 = vld [vmem:[#allocation2 + $0xc8] sm:$0x1]  ;;  %v1519_v62 = vor.u32 %v1518_v11, %v6618_v10  ;;  %v5441_v36 = vmov 1935823168  }
  0xf8   : > { %1842 = vrot.lane.b32.xlu1 %v6535_v32, %s5439_s21  ;;  %v2212_v5 = vsel %vm2202_vm15, %v2179_v41, %v1930_v55  ;;  %v2531_v55 = vsub.s32 0, %v2530_v24  ;;  %v1522_v3 = vshll.u32 %v6624_v23, 16  ;;  %v1546_v41 = vshll.u32 %v6631_v22, 16 }
  0xf9   : > { %1840 = vrot.lane.b32.xlu0 %v6479_v58, %s5439_s21  ;;  %v1499_v58 = vrot.slane %v1497_v14, 4  ;;  %v2604_v44 = vunpack.c.l.s4 %v5441_v36  ;;  %v1534_v46 = vrot.slane %v6624_v23, 5 }
  0xfa   : > { %v6560_v7 = vpop.permute.xlu1 %1678  ;;  %v2532_v31 = vrot.slane %v2527_v53, %v2531_v55  ;;  %v1524_v50 = vrot.slane %v1522_v3, 5 }
  0xfb   : > { %v1965_v59 = vpop.permute.xlu0 %1964  ;;  %v1501_v9 = vsel %vm5580_vm13, %v1499_v58, %v1500_v52  ;;  %v1537_v58 = vshrl.u32 %v6641_v12, 16  ;;  %v1540_v52 = vshll.u32 %v6641_v12, 16  ;;  %v2605_v1 = vunpack.c.0.s8 %v2604_v44 }
  0xfc   : > { %1877 = vrot.lane.b32.xlu1 %v6553_v19, %s5437_s17  ;;  %v2245_v6 = vsel %vm2235_vm5, %v2212_v5, %v1965_v59  ;;  %v6616_v54 = vcombine.low %v1498_v30, %v1501_v9  ;;  %v5106_v15 = vcombine.low %v2532_v31, %v2532_v31  ;;  %v1531_v59 = vrot.slane %v6590_v26, 5 }
  0xfd   : > { %1875 = vrot.lane.b32.xlu0 %v6495_v28, %s5437_s17  ;;  %5308 = vmatprep.mubr.msk.bf16.mxu0 %vm2295_vm0, %v2245_v6  ;;  %v1503_v28 = vshrl.u32 %v6582_v0, 16  ;;  %v1520_v6 = vrot.slane %v1519_v62, 4  ;;  %v6662_v30 = vrot.slane %v1546_v41, 5  ;;  %v1539_v38 = vrot.slane %v1537_v58, 4 }
  0xfe   : > { %v6588_v63 = vpop.permute.xlu1 %1680  ;;  %2538 = vst.msk [vmem:[#allocation3] sm:$0xf] %vm8395_vm3, %v5106_v15  ;;  %2539 = vst.msk [vmem:[#allocation3 + $0x4] sm:$0xf] %vm8395_vm3, %v5106_v15  ;;  %v1533_v9 = vrot.slane %v1531_v59, 4  ;;  %v1542_v8 = vrot.slane %v1540_v52, 5  ;;  %v2009_v41 = vsel %vm1988_vm1, %v5925_v39, %v6560_v7 }
  0xff   : > { %v1967_v16 = vpop.permute.xlu0 %1966  ;;  %v1505_v25 = vrot.slane %v1503_v28, 4  ;;  %2543 = vst.msk [vmem:[#allocation3 + $0xcc] sm:$0xf] %vm8395_vm3, %v5106_v15  ;;  %2544 = vst.msk [vmem:[#allocation3 + $0xd0] sm:$0xf] %vm8395_vm3, %v5106_v15  ;;  %v1552_v28 = vrot.slane %v1550_v17, 4  ;;  %v2012_v53 = vsel %vm1988_vm1, %v5976_v42, %v6588_v63 }
 0x100   : > { %1912 = vrot.lane.b32.xlu1 %v6567_v2, %s5435_s13  ;;  %v2247_v27 = vsel %vm2235_vm5, %v2214_v21, %v1967_v16  ;;  %v6666_v21 = vcombine.low %v6582_v0, %v6590_v26  ;;  %v5030_v16 = vrot.slane %v6582_v0, 9  ;;  %v1525_v26 = vsel %vm5636_vm14, %v1520_v6, %v1524_v50  ;;  %v6677_v0 = vld [vmem:[#allocation2 + $0xd4] sm:$0x1]  ;;  %2541 = vst.msk [vmem:[#allocation3 + $0x8] sm:$0x1] %vm2540_vm9, %v5106_v15  ;;  %vm6697_vm3 = vmand %vm2540_vm9, %vm317_vm2 }
 0x101   : > { %1910 = vrot.lane.b32.xlu0 %v6522_v43, %s5435_s13  ;;  %5309 = vmatmul.mubr.msk.bf16.gmra.mrb[8].mxu0 %vm2295_vm0, %v2247_v27  ;;  %v1509_v13 = vor.u32 %v1508_v18, %v1505_v25  ;;  %v2608_v25 = vsub.s32 %v2605_v1, %v2530_v24  ;;  %2545 = vst.msk [vmem:[#allocation3 + $0xd4] sm:$0x1] %vm2540_vm9, %v5106_v15  ;;  %vm6730_vm2 = vmand %vm2540_vm9, %vm373_vm4 }
 0x102   : > { %v6610_v20 = vpop.permute.xlu1 %1760  ;;  %v1553_v11 = vor.u32 %v1552_v28, %v6662_v30  ;;  %v1532_v55 = vsel %vm5580_vm13, %v5030_v16, %v1531_v59  ;;  %v1535_v42 = vsel %vm5580_vm13, %v1533_v9, %v1534_v46  ;;  %v1543_v63 = vor.u32 %v1542_v8, %v1539_v38 }
 0x103   : > { %v6612_v60 = vpop.permute.xlu0 %1758  ;;  %v1510_v45 = vrot.slane %v1509_v13, 4  ;;  %v5083_v15 = vcombine.low %v6641_v12, %v6631_v22  ;;  %v1565_v59 = vrot.slane %v6631_v22, 5  ;;  %v2053_v58 = vsel %vm2037_vm6, %v2012_v53, %v6610_v20 }
 0x104   : > { %1947 = vrot.lane.b32.xlu1 %v6598_v37, %s5440_s22  ;;  %v2051_v52 = vsel %vm2037_vm6, %v2009_v41, %v6612_v60  ;;  %v6726_v36 = vcombine.low %v1532_v55, %v1535_v42  ;;  %v1544_v16 = vrot.slane %v1543_v63, 4  ;;  %v5031_v8 = vrot.slane %v6641_v12, 9 }
 0x105   : > { %1945 = vrot.lane.b32.xlu0 %v6535_v32, %s5440_s22  ;;  %v2548_v62 = vld [vmem:[#allocation3] sm:$0x1]  ;;  %v1568_v46 = vrot.slane %v6677_v0, 5  ;;  %v3208_v42 = vld [vmem:[#allocation3 + $0x4] sm:$0xf] }
 0x106   : > { %v6622_v56 = vpop.permute.xlu1 %1795  ;;  %v2549_v31 = vsel %vm6697_vm3, %v6629_v4, %v2548_v62  ;;  %v3271_v41 = vshll.u32 %v3208_v42, 16 }
 0x107   : > { %v6635_v14 = vpop.permute.xlu0 %1793  ;;  %2550 = vst [vmem:[#allocation3] sm:$0x1] %v2549_v31  ;;  %v2086_v39 = vsel %vm2070_vm7, %v2053_v58, %v6622_v56  ;;  %v2622_v60 = vld [vmem:[#allocation3 + $0x8] sm:$0x1] }
 0x108   : > { %1982 = vrot.lane.b32.xlu1 %v6616_v54, %s5438_s18  ;;  %v2084_v7 = vsel %vm2070_vm7, %v2051_v52, %v6635_v14 }
 0x109   : > { %1980 = vrot.lane.b32.xlu0 %v6553_v19, %s5438_s18 }
 0x10a   : > { %v6645_v29 = vpop.permute.xlu1 %1830 }
 0x10b   : > { %v6649_v5 = vpop.permute.xlu0 %1828  ;;  %v2119_v56 = vsel %vm2103_vm8, %v2086_v39, %v6645_v29  ;;  %v1567_v29 = vrot.slane %v1565_v59, 4  ;;  %v3273_v39 = vrot.slane %v3271_v41, 5 }
 0x10c   : > { %1696 = vrot.lane.b32.xlu1 %v6598_v37, %s5436_s14  ;;  %v2117_v14 = vsel %vm2103_vm8, %v2084_v7, %v6649_v5  ;;  %v1566_v7 = vsel %vm5580_vm13, %v5031_v8, %v1565_v59  ;;  %v3695_v8 = vrot.slane %v3208_v42, 5 }
 0x10d   : > { %1694 = vrot.lane.b32.xlu0 %v6535_v32, %s5436_s14  ;;  %v1515_v32 = vsel %vm5636_vm14, %v1510_v45, %v6618_v10  ;;  %v2609_v10 = vrot.slane %v6629_v4, %v2608_v25  ;;  %v1554_v45 = vrot.slane %v1553_v11, 4  ;;  %v2628_v11 = vld [vmem:[#allocation3 + $0x20] sm:$0x1] }
 0x10e   : > { %v1866_v48 = vpop.permute.xlu1 %1865  ;;  %v6690_v24 = vcombine.low %v1515_v32, %v1525_v26  ;;  %v2554_v32 = vld [vmem:[#allocation3 + $0x18] sm:$0x1]  ;;  %v3207_v62 = vld [vmem:[#allocation3] sm:$0xf] }
 0x10f   : > { %v1864_v27 = vpop.permute.xlu0 %1863  ;;  %v2616_v3 = vrot.slane %v2609_v10, %v2608_v25  ;;  %v2152_v1 = vsel %vm2136_vm11, %v2119_v56, %v1866_v48  ;;  %v2555_v48 = vsel %vm6697_vm3, %v6629_v4, %v2554_v32  ;;  %v3265_v31 = vshll.u32 %v3207_v62, 16 }
 0x110   : > { %1776 = vrot.lane.b32.xlu1 %v6616_v54, %s5433_s11  ;;  %v2150_v9 = vsel %vm2136_vm11, %v2117_v14, %v1864_v27  ;;  %v2551_v27 = vld [vmem:[#allocation3 + $0xc] sm:$0x1]  ;;  %2556 = vst [vmem:[#allocation3 + $0x18] sm:$0x1] %v2555_v48 }
 0x111   : > { %1774 = vrot.lane.b32.xlu0 %v6553_v19, %s5433_s11  ;;  %v1556_v19 = vshll.u32 %v6677_v0, 16  ;;  %v6718_v6 = vshll.u32 %v2616_v3, 16  ;;  %v2552_v0 = vsel %vm6697_vm3, %v6629_v4, %v2551_v27  ;;  %s5444_s11 = smov 80  }
 0x112   : > { %v1901_v18 = vpop.permute.xlu1 %1900  ;;  %2553 = vst [vmem:[#allocation3 + $0xc] sm:$0x1] %v2552_v0 }
 0x113   : > { %v1899_v23 = vpop.permute.xlu0 %1898  ;;  %v1558_v44 = vrot.slane %v1556_v19, 5  ;;  %v2623_v28 = vsel %vm6730_vm2, %v6718_v6, %v2622_v60  ;;  %v2185_v5 = vsel %vm2169_vm12, %v2152_v1, %v1901_v18  ;;  %v2629_v55 = vsel %vm6730_vm2, %v6718_v6, %v2628_v11  ;;  %v2625_v19 = vld [vmem:[#allocation3 + $0x14] sm:$0x1] }
 0x114   : > { %1811 = vrot.lane.b32.xlu1 %v6666_v21, %s5434_s12  ;;  %2624 = vst [vmem:[#allocation3 + $0x8] sm:$0x1] %v2623_v28  ;;  %v2183_v26 = vsel %vm2169_vm12, %v2150_v9, %v1899_v23  ;;  %v1549_v23 = vsel %vm5636_vm14, %v1544_v16, %v6662_v30  ;;  %2630 = vst [vmem:[#allocation3 + $0x20] sm:$0x1] %v2629_v55  ;;  %v2626_v3 = vsel %vm6730_vm2, %v6718_v6, %v2625_v19 }
 0x115   : > { %1809 = vrot.lane.b32.xlu0 %v6567_v2, %s5434_s12  ;;  %v1559_v18 = vsel %vm5636_vm14, %v1554_v45, %v1558_v44  ;;  %v3262_v30 = vshrl.u32 %v3207_v62, 16  ;;  %2627 = vst [vmem:[#allocation3 + $0x14] sm:$0x1] %v2626_v3  ;;  %v3267_v45 = vrot.slane %v3265_v31, 5  ;;  %v2560_v3 = vld [vmem:[#allocation3 + $0x30] sm:$0x1] }
 0x116   : > { %v1936_v17 = vpop.permute.xlu1 %1935  ;;  %v5084_v52 = vcombine.low %v1549_v23, %v1559_v18  ;;  %s5446_s12 = smov 64  }
 0x117   : > { %v1934_v50 = vpop.permute.xlu0 %1933 }
 0x118   : > { %1846 = vrot.lane.b32.xlu1 %v6690_v24, %s5439_s21  ;;  %v2216_v12 = vsel %vm2202_vm15, %v2183_v26, %v1934_v50  ;;  %v1569_v50 = vsel %vm5580_vm13, %v1567_v29, %v1568_v46  ;;  %v3697_v26 = vrot.slane %v3695_v8, 4 }
 0x119   : > { %1844 = vrot.lane.b32.xlu0 %v6598_v37, %s5439_s21  ;;  %v2218_v37 = vsel %vm2202_vm15, %v2185_v5, %v1936_v17  ;;  %v3275_v17 = vshrl.u32 %v3208_v42, 16  ;;  %v5085_v1 = vcombine.low %v1566_v7, %v1569_v50  ;;  %v5139_v5 = vrot.slane %v3207_v62, 9  ;;  %v2631_v7 = vld [vmem:[#allocation3 + $0x2c] sm:$0x1] }
 0x11a   : > { %v1971_v38 = vpop.permute.xlu1 %1970 }
 0x11b   : > { %v1969_v25 = vpop.permute.xlu0 %1968  ;;  %v2251_v10 = vsel %vm2235_vm5, %v2218_v37, %v1971_v38  ;;  %v3209_v44 = vld [vmem:[#allocation3 + $0x8] sm:$0x1]  ;;  %v3277_v60 = vrot.slane %v3275_v17, 4 }
 0x11c   : > { %1881 = vrot.lane.b32.xlu1 %v6726_v36, %s5437_s17  ;;  %v2249_v53 = vsel %vm2235_vm5, %v2216_v12, %v1969_v25  ;;  %v3698_v46 = vrot.slane %v3209_v44, 5 }
 0x11d   : > { %1879 = vrot.lane.b32.xlu0 %v6616_v54, %s5437_s17  ;;  %5312 = vmatprep.mubr.msk.bf16.mxu0 %vm2295_vm0, %v2249_v53  ;;  %v3264_v54 = vrot.slane %v3262_v30, 4  ;;  %v3278_v16 = vor.u32 %v3277_v60, %v3273_v39 }
 0x11e   : > { %v1685_v63 = vpop.permute.xlu1 %1684  ;;  %5313 = vmatmul.mubr.msk.bf16.gmra.mrb[12].mxu0 %vm2295_vm0, %v2251_v10  ;;  %v3699_v37 = vsel %vm5580_vm13, %v3697_v26, %v3698_v46 }
 0x11f   : > { %v1683_v58 = vpop.permute.xlu0 %1682  ;;  %v3268_v14 = vor.u32 %v3267_v45, %v3264_v54  ;;  %v3279_v38 = vrot.slane %v3278_v16, 4 }
 0x120   : > { %1916 = vrot.lane.b32.xlu1 %v5083_v15, %s5435_s13  ;;  %v3281_v15 = vshll.u32 %v3209_v44, 16  ;;  %v2015_v53 = vsel %vm1988_vm1, %v6045_v49, %v1683_v58 }
 0x121   : > { %1914 = vrot.lane.b32.xlu0 %v6666_v21, %s5435_s13  ;;  %v3269_v22 = vrot.slane %v3268_v14, 4 }
 0x122   : > { %v1765_v56 = vpop.permute.xlu1 %1764  ;;  %v3283_v9 = vrot.slane %v3281_v15, 5 }
 0x123   : > { %v1763_v28 = vpop.permute.xlu0 %1762  ;;  %v3274_v29 = vsel %vm5636_vm14, %v3269_v22, %v3273_v39 }
 0x124   : > { %1951 = vrot.lane.b32.xlu1 %v5084_v52, %s5440_s22  ;;  %v3284_v21 = vsel %vm5636_vm14, %v3279_v38, %v3283_v9  ;;  %v2055_v55 = vsel %vm2037_vm6, %v2015_v53, %v1763_v28  ;;  %v2634_v52 = vld [vmem:[#allocation3 + $0x38] sm:$0x1] }
 0x125   : > { %1949 = vrot.lane.b32.xlu0 %v6690_v24, %s5440_s22  ;;  %v5173_v27 = vcombine.low %v3274_v29, %v3284_v21  ;;  %v3696_v24 = vsel %vm5580_vm13, %v5139_v5, %v3695_v8  ;;  %v2635_v39 = vsel %vm6730_vm2, %v6718_v6, %v2634_v52 }
 0x126   : > { %v1800_v59 = vpop.permute.xlu1 %1799  ;;  %v5189_v18 = vcombine.low %v3696_v24, %v3699_v37  ;;  %2636 = vst [vmem:[#allocation3 + $0x38] sm:$0x1] %v2635_v39 }
 0x127   : > { %v1798_v32 = vpop.permute.xlu0 %1797 }
 0x128   : > { %1986 = vrot.lane.b32.xlu1 %v5085_v1, %s5438_s18  ;;  %v2088_v62 = vsel %vm2070_vm7, %v2055_v55, %v1798_v32 }
 0x129   : > { %1984 = vrot.lane.b32.xlu0 %v6726_v36, %s5438_s18  ;;  %v2018_v36 = vsel %vm1988_vm1, %v6136_v57, %v1685_v63  ;;  %v2561_v57 = vsel %vm6697_vm3, %v6629_v4, %v2560_v3  ;;  %v2557_v63 = vld [vmem:[#allocation3 + $0x24] sm:$0x1] }
 0x12a   : > { %v1835_v48 = vpop.permute.xlu1 %1834  ;;  %v2057_v19 = vsel %vm2037_vm6, %v2018_v36, %v1765_v56  ;;  %2562 = vst [vmem:[#allocation3 + $0x30] sm:$0x1] %v2561_v57  ;;  %v2558_v58 = vsel %vm6697_vm3, %v6629_v4, %v2557_v63  ;;  %v2632_v56 = vsel %vm6730_vm2, %v6718_v6, %v2631_v7 }
 0x12b   : > { %v1833_v12 = vpop.permute.xlu0 %1832  ;;  %v2090_v30 = vsel %vm2070_vm7, %v2057_v19, %v1800_v59  ;;  %2559 = vst [vmem:[#allocation3 + $0x24] sm:$0x1] %v2558_v58  ;;  %2633 = vst [vmem:[#allocation3 + $0x2c] sm:$0x1] %v2632_v56 }
 0x12c   : > { %v2121_v31 = vsel %vm2103_vm8, %v2088_v62, %v1833_v12  ;;  %v2123_v49 = vsel %vm2103_vm8, %v2090_v30, %v1835_v48  ;;  %v2563_v30 = vld [vmem:[#allocation3 + $0x3c] sm:$0x1] }
 0x12d   : > { %3969 = vrot.lane.b32.xlu0 %v5173_v27, %s5439_s21  ;;  %v2564_v63 = vsel %vm6697_vm3, %v6629_v4, %v2563_v30 }
 0x12e   : > { %v1870_v25 = vpop.permute.xlu1 %1869  ;;  %2565 = vst [vmem:[#allocation3 + $0x3c] sm:$0x1] %v2564_v63 }
 0x12f   : > { %v1868_v0 = vpop.permute.xlu0 %1867  ;;  %v2156_v54 = vsel %vm2136_vm11, %v2123_v49, %v1870_v25  ;;  %v2640_v49 = vld [vmem:[#allocation3 + $0x50] sm:$0x1] }
 0x130   : > { %v2154_v41 = vsel %vm2136_vm11, %v2121_v31, %v1868_v0 }
 0x131   : > { %4049 = vrot.lane.b32.xlu0 %v5189_v18, %s5438_s18  ;;  %v2566_v18 = vld [vmem:[#allocation3 + $0x48] sm:$0x1] }
 0x132   : > { %v1905_v11 = vpop.permute.xlu1 %1904 }
 0x133   : > { %v1903_v10 = vpop.permute.xlu0 %1902  ;;  %v2189_v50 = vsel %vm2169_vm12, %v2156_v54, %v1905_v11 }
 0x134   : > { %v2187_v45 = vsel %vm2169_vm12, %v2154_v41, %v1903_v10  ;;  %v2641_v41 = vsel %vm6730_vm2, %v6718_v6, %v2640_v49 }
 0x135   : > { %2642 = vst [vmem:[#allocation3 + $0x50] sm:$0x1] %v2641_v41 }
 0x136   : > { %v1940_v23 = vpop.permute.xlu1 %1939 }
 0x137   : > { %v1938_v42 = vpop.permute.xlu0 %1937  ;;  %v2222_v14 = vsel %vm2202_vm15, %v2189_v50, %v1940_v23 }
 0x138   : > { %v2220_v44 = vsel %vm2202_vm15, %v2187_v45, %v1938_v42 }
 0x13a   : > { %v1975_v17 = vpop.permute.xlu1 %1974 }
 0x13b   : > { %v1973_v60 = vpop.permute.xlu0 %1972  ;;  %v2255_v16 = vsel %vm2235_vm5, %v2222_v14, %v1975_v17  ;;  %v2637_v17 = vld [vmem:[#allocation3 + $0x44] sm:$0x1] }
 0x13c   : > { %v2253_v15 = vsel %vm2235_vm5, %v2220_v44, %v1973_v60  ;;  %v2638_v52 = vsel %vm6730_vm2, %v6718_v6, %v2637_v17 }
 0x13d   : > { %5316 = vmatprep.mubr.msk.bf16.mxu0 %vm2295_vm0, %v2253_v15  ;;  %2639 = vst [vmem:[#allocation3 + $0x44] sm:$0x1] %v2638_v52 }
 0x13e   : > { %v1689_v28 = vpop.permute.xlu1 %1688  ;;  %5317 = vmatmul.mubr.msk.bf16.gmra.mrb[16].mxu0 %vm2295_vm0, %v2255_v16 }
 0x13f   : > { %v1687_v1 = vpop.permute.xlu0 %1686  ;;  %v2024_v46 = vsel %vm1988_vm1, %v6322_v34, %v1689_v28  ;;  %v2567_v34 = vsel %vm6697_vm3, %v6629_v4, %v2566_v18 }
 0x140   : > { %v2021_v48 = vsel %vm1988_vm1, %v6232_v33, %v1687_v1  ;;  %2568 = vst [vmem:[#allocation3 + $0x48] sm:$0x1] %v2567_v34  ;;  %v2646_v34 = vld [vmem:[#allocation3 + $0x68] sm:$0x1] }
 0x142   : > { %v1769_v22 = vpop.permute.xlu1 %1768 }
 0x143   : > { %v1767_v9 = vpop.permute.xlu0 %1766  ;;  %v2061_v37 = vsel %vm2037_vm6, %v2024_v46, %v1769_v22 }
 0x144   : > { %v2059_v24 = vsel %vm2037_vm6, %v2021_v48, %v1767_v9  ;;  %v2572_v9 = vld [vmem:[#allocation3 + $0x60] sm:$0x1] }
 0x146   : > { %v1804_v38 = vpop.permute.xlu1 %1803 }
 0x147   : > { %v1802_v59 = vpop.permute.xlu0 %1801  ;;  %v2094_v0 = vsel %vm2070_vm7, %v2061_v37, %v1804_v38 }
 0x148   : > { %v2092_v12 = vsel %vm2070_vm7, %v2059_v24, %v1802_v59 }
 0x14a   : > { %v1839_v8 = vpop.permute.xlu1 %1838 }
 0x14b   : > { %v1837_v29 = vpop.permute.xlu0 %1836  ;;  %v2127_v10 = vsel %vm2103_vm8, %v2094_v0, %v1839_v8  ;;  %v2573_v8 = vsel %vm6697_vm3, %v6629_v4, %v2572_v9  ;;  %v2569_v0 = vld [vmem:[#allocation3 + $0x54] sm:$0x1] }
 0x14c   : > { %v2125_v11 = vsel %vm2103_vm8, %v2092_v12, %v1837_v29  ;;  %2574 = vst [vmem:[#allocation3 + $0x60] sm:$0x1] %v2573_v8 }
 0x14e   : > { %v1874_v21 = vpop.permute.xlu1 %1873 }
 0x14f   : > { %v1872_v32 = vpop.permute.xlu0 %1871  ;;  %v2160_v53 = vsel %vm2136_vm11, %v2127_v10, %v1874_v21 }
 0x150   : > { %v2158_v33 = vsel %vm2136_vm11, %v2125_v11, %v1872_v32  ;;  %v2570_v11 = vsel %vm6697_vm3, %v6629_v4, %v2569_v0 }
 0x151   : > { %2571 = vst [vmem:[#allocation3 + $0x54] sm:$0x1] %v2570_v11 }
 0x152   : > { %v1909_v5 = vpop.permute.xlu1 %1908 }
 0x153   : > { %v1907_v26 = vpop.permute.xlu0 %1906  ;;  %v2193_v55 = vsel %vm2169_vm12, %v2160_v53, %v1909_v5 }
 0x154   : > { %v2191_v23 = vsel %vm2169_vm12, %v2158_v33, %v1907_v26  ;;  %v2647_v33 = vsel %vm6730_vm2, %v6718_v6, %v2646_v34 }
 0x155   : > { %2648 = vst [vmem:[#allocation3 + $0x68] sm:$0x1] %v2647_v33 }
 0x156   : > { %v1944_v27 = vpop.permute.xlu1 %1943 }
 0x157   : > { %v1942_v25 = vpop.permute.xlu0 %1941  ;;  %v2226_v42 = vsel %vm2202_vm15, %v2193_v55, %v1944_v27 }
 0x158   : > { %v2224_v19 = vsel %vm2202_vm15, %v2191_v23, %v1942_v25 }
 0x15a   : > { %v1979_v36 = vpop.permute.xlu1 %1978 }
 0x15b   : > { %v1977_v62 = vpop.permute.xlu0 %1976  ;;  %v2259_v31 = vsel %vm2235_vm5, %v2226_v42, %v1979_v36  ;;  %v2643_v36 = vld [vmem:[#allocation3 + $0x5c] sm:$0x1] }
 0x15c   : > { %v2257_v3 = vsel %vm2235_vm5, %v2224_v19, %v1977_v62  ;;  %v2644_v53 = vsel %vm6730_vm2, %v6718_v6, %v2643_v36 }
 0x15d   : > { %5320 = vmatprep.mubr.msk.bf16.mxu0 %vm2295_vm0, %v2257_v3  ;;  %2645 = vst [vmem:[#allocation3 + $0x5c] sm:$0x1] %v2644_v53 }
 0x15e   : > { %v1693_v57 = vpop.permute.xlu1 %1692  ;;  %5321 = vmatmul.mubr.msk.bf16.gmra.mrb[20].mxu0 %vm2295_vm0, %v2259_v31 }
 0x15f   : > { %v1691_v58 = vpop.permute.xlu0 %1690  ;;  %v2030_v15 = vsel %vm1988_vm1, %v6448_v47, %v1693_v57 }
 0x160   : > { %v2027_v56 = vsel %vm1988_vm1, %v6403_v35, %v1691_v58 }
 0x162   : > { %v1773_v54 = vpop.permute.xlu1 %1772 }
 0x163   : > { %v1771_v45 = vpop.permute.xlu0 %1770  ;;  %v2065_v1 = vsel %vm2037_vm6, %v2030_v15, %v1773_v54 }
 0x164   : > { %v2063_v28 = vsel %vm2037_vm6, %v2027_v56, %v1771_v45 }
 0x166   : > { %v1808_v39 = vpop.permute.xlu1 %1807 }
 0x167   : > { %v1806_v7 = vpop.permute.xlu0 %1805  ;;  %v2098_v35 = vsel %vm2070_vm7, %v2065_v1, %v1808_v39 }
 0x168   : > { %v2096_v38 = vsel %vm2070_vm7, %v2063_v28, %v1806_v7  ;;  %v6914_v7 = vld [vmem:[%s8386_s2] ss:$0 sm:$0xff] }
 0x16a   : > { %v1843_v50 = vpop.permute.xlu1 %1842 }
 0x16b   : > { %v1841_v44 = vpop.permute.xlu0 %1840  ;;  %v2131_v21 = vsel %vm2103_vm8, %v2098_v35, %v1843_v50  ;;  %v2578_v50 = vld [vmem:[#allocation3 + $0x78] sm:$0x1] }
 0x16c   : > { %v2129_v47 = vsel %vm2103_vm8, %v2096_v38, %v1841_v44  ;;  %v2579_v56 = vsel %vm6697_vm3, %v6629_v4, %v2578_v50  ;;  %v3099_v50 = vld [vmem:[#allocation3 + $0x14] sm:$0x1] }
 0x16d   : > { %2580 = vst [vmem:[#allocation3 + $0x78] sm:$0x1] %v2579_v56 }
 0x16e   : > { %v1878_v60 = vpop.permute.xlu1 %1877 }
 0x16f   : > { %v1876_v14 = vpop.permute.xlu0 %1875  ;;  %v2164_v26 = vsel %vm2136_vm11, %v2131_v21, %v1878_v60 }
 0x170   : > { %v2162_v32 = vsel %vm2136_vm11, %v2129_v47, %v1876_v14 }
 0x172   : > { %v1913_v16 = vpop.permute.xlu1 %1912 }
 0x173   : > { %v1911_v22 = vpop.permute.xlu0 %1910  ;;  %v2197_v48 = vsel %vm2169_vm12, %v2164_v26, %v1913_v16 }
 0x174   : > { %v2195_v46 = vsel %vm2169_vm12, %v2162_v32, %v1911_v22 }
 0x176   : > { %v1948_v59 = vpop.permute.xlu1 %1947 }
 0x177   : > { %v1946_v29 = vpop.permute.xlu0 %1945  ;;  %v2230_v37 = vsel %vm2202_vm15, %v2197_v48, %v1948_v59 }
 0x178   : > { %v2228_v27 = vsel %vm2202_vm15, %v2195_v46, %v1946_v29 }
 0x17a   : > { %v1983_v5 = vpop.permute.xlu1 %1982 }
 0x17b   : > { %v1981_v24 = vpop.permute.xlu0 %1980  ;;  %v2263_v25 = vsel %vm2235_vm5, %v2230_v37, %v1983_v5 }
 0x17c   : > { %v2261_v12 = vsel %vm2235_vm5, %v2228_v27, %v1981_v24 }
 0x17d   : > { %5324 = vmatprep.mubr.msk.bf16.mxu0 %vm2295_vm0, %v2261_v12 }
 0x17e   : > { %v1697_v18 = vpop.permute.xlu1 %1696  ;;  %5325 = vmatmul.mubr.msk.bf16.gmra.mrb[24].mxu0 %vm2295_vm0, %v2263_v25 }
 0x17f   : > { %v1695_v10 = vpop.permute.xlu0 %1694  ;;  %v2036_v62 = vsel %vm1988_vm1, %v6567_v2, %v1697_v18  ;;  %v2575_v18 = vld [vmem:[#allocation3 + $0x6c] sm:$0x1] }
 0x180   : > { %v2033_v42 = vsel %vm1988_vm1, %v6522_v43, %v1695_v10  ;;  %v2576_v34 = vsel %vm6697_vm3, %v6629_v4, %v2575_v18  ;;  %v2652_v10 = vld [vmem:[#allocation3 + $0x80] sm:$0x1]  ;;  %vm8427_vm1 = vcmask 125952  }
 0x181   : > { %2577 = vst [vmem:[#allocation3 + $0x6c] sm:$0x1] %v2576_v34 }
 0x182   : > { %v1777_v23 = vpop.permute.xlu1 %1776 }
 0x183   : > { %v1775_v55 = vpop.permute.xlu0 %1774  ;;  %v2069_v30 = vsel %vm2037_vm6, %v2036_v62, %v1777_v23  ;;  %v2653_v23 = vsel %vm6730_vm2, %v6718_v6, %v2652_v10  ;;  %v3102_v62 = vld [vmem:[#allocation3 + $0x18] sm:$0xf] }
 0x184   : > { %v2067_v57 = vsel %vm2037_vm6, %v2033_v42, %v1775_v55  ;;  %v2649_v55 = vld [vmem:[#allocation3 + $0x74] sm:$0x1]  ;;  %vm6939_vm6 = vmand %vm8427_vm1, %vm373_vm4  ;;  %2654 = vst [vmem:[#allocation3 + $0x80] sm:$0x1] %v2653_v23 }
 0x185   : > { %vm8430_vm4 = vmmov %vm8427_vm1 }
 0x186   : > { %v1812_v19 = vpop.permute.xlu1 %1811 }
 0x187   : > { %v1810_v3 = vpop.permute.xlu0 %1809  ;;  %v2102_v49 = vsel %vm2070_vm7, %v2069_v30, %v1812_v19 }
 0x188   : > { %v2100_v41 = vsel %vm2070_vm7, %v2067_v57, %v1810_v3  ;;  %vm8431_vm7 = vmmov %vm8427_vm1 }
 0x18a   : > { %v1847_v31 = vpop.permute.xlu1 %1846 }
 0x18b   : > { %v1845_v63 = vpop.permute.xlu0 %1844  ;;  %v2135_v58 = vsel %vm2103_vm8, %v2102_v49, %v1847_v31  ;;  %v2650_v31 = vsel %vm6730_vm2, %v6718_v6, %v2649_v55 }
 0x18c   : > { %v2133_v2 = vsel %vm2103_vm8, %v2100_v41, %v1845_v63  ;;  %v3095_v63 = vld [vmem:[#allocation3 + $0xc] sm:$0xf]  ;;  %2651 = vst [vmem:[#allocation3 + $0x74] sm:$0x1] %v2650_v31 }
 0x18e   : > { %v1882_v17 = vpop.permute.xlu1 %1881 }
 0x18f   : > { %v1880_v52 = vpop.permute.xlu0 %1879  ;;  %v2168_v43 = vsel %vm2136_vm11, %v2135_v58, %v1882_v17  ;;  %v3106_v58 = vld [vmem:[#allocation3 + $0x20] sm:$0x1] }
 0x190   : > { %v2166_v45 = vsel %vm2136_vm11, %v2133_v2, %v1880_v52  ;;  %vm8432_vm11 = vmmov %vm8427_vm1 }
 0x192   : > { %v1917_v54 = vpop.permute.xlu1 %1916 }
 0x193   : > { %v1915_v39 = vpop.permute.xlu0 %1914  ;;  %v2201_v44 = vsel %vm2169_vm12, %v2168_v43, %v1917_v54 }
 0x194   : > { %v2199_v14 = vsel %vm2169_vm12, %v2166_v45, %v1915_v39  ;;  %vm8433_vm12 = vmmov %vm8427_vm1 }
 0x196   : > { %v1952_v60 = vpop.permute.xlu1 %1951  ;;  %v5302_v15 = vpop.f32.mrb[0].mxu0 }
 0x197   : > { %v2375_v16 = vadd.f32 %v5302_v15, %v6914_v7  ;;  %v2366_v28 = vpop.f32.mrb[1].mxu0  ;;  %v1950_v1 = vpop.permute.xlu0 %1949  ;;  %v2234_v9 = vsel %vm2202_vm15, %v2201_v44, %v1952_v60 }
 0x198   : > { %v2367_v22 = vadd.f32 %v6914_v7, %v2366_v28  ;;  %v5303_v38 = vpop.f32.mrb[2].mxu0  ;;  %v2232_v8 = vsel %vm2202_vm15, %v2199_v14, %v1950_v1  ;;  %vm8435_vm15 = vmmov %vm8427_vm1 }
 0x199   : > { %v2495_v59 = vmax.f32 %v2375_v16, 0.0  ;;  %v2378_v35 = vadd.f32 %v5303_v38, %v6914_v7  ;;  %v2369_v29 = vpop.f32.mrb[3].mxu0 }
 0x19a   : > { %v1987_v47 = vpop.permute.xlu1 %1986  ;;  %v2493_v21 = vmax.f32 %v2367_v22, 0.0  ;;  %v2370_v32 = vadd.f32 %v6914_v7, %v2369_v29 }
 0x19b   : > { %v5245_v5 = vpack.c.bf16 %v2495_v59, %v2495_v59  ;;  %v2496_v26 = vmax.f32 %v2378_v35, 0.0  ;;  %v1985_v46 = vpop.permute.xlu0 %1984  ;;  %v2267_v48 = vsel %vm2235_vm5, %v2234_v9, %v1987_v47 }
 0x19c   : > { %v5243_v27 = vpack.c.bf16 %v2493_v21, %v2493_v21  ;;  %v2494_v24 = vmax.f32 %v2370_v32, 0.0  ;;  %v2265_v37 = vsel %vm2235_vm5, %v2232_v8, %v1985_v46 }
 0x19d   : > { %v2790_v12 = vshrl.u32 %v5245_v5, 16  ;;  %v5246_v25 = vpack.c.bf16 %v2496_v26, %v2496_v26  ;;  %5328 = vmatprep.mubr.msk.bf16.mxu0 %vm2295_vm0, %v2265_v37  ;;  %v2793_v36 = vshll.u32 %v5245_v5, 16 }
 0x19e   : > { %v2773_v0 = vshrl.u32 %v5243_v27, 16  ;;  %v5244_v11 = vpack.c.bf16 %v2494_v24, %v2494_v24  ;;  %5329 = vmatmul.mubr.msk.bf16.gmra.mrb[28].mxu0 %vm2295_vm0, %v2267_v48  ;;  %v2776_v3 = vshll.u32 %v5243_v27, 16  ;;  %vm8436_vm0 = vmmov %vm8427_vm1 }
 0x19f   : > { %v2792_v33 = vrot.slane %v2790_v12, 7  ;;  %v2798_v53 = vshrl.u32 %v5246_v25, 16  ;;  %v2801_v41 = vshll.u32 %v5246_v25, 16  ;;  %vm8440_vm9 = vmmov %vm8436_vm0 }
 0x1a0   : > { %v2775_v42 = vrot.slane %v2773_v0, 7  ;;  %v2781_v30 = vshrl.u32 %v5244_v11, 16  ;;  %v2784_v2 = vshll.u32 %v5244_v11, 16  ;;  %vm8441_vm1 = vmmov %vm8436_vm0 }
 0x1a1   : > { %v2795_v57 = vor.u32 %v2793_v36, %v2792_v33  ;;  %v2800_v49 = vrot.slane %v2798_v53, 7  ;;  %v2796_v54 = vrot.slane %v2792_v33, 4 }
 0x1a2   : > { %v2778_v17 = vor.u32 %v2776_v3, %v2775_v42  ;;  %v2783_v52 = vrot.slane %v2781_v30, 7  ;;  %v2779_v44 = vrot.slane %v2775_v42, 4 }
 0x1a3   : > { %v3103_v43 = vsel %vm6939_vm6, %v2795_v57, %v3102_v62  ;;  %v2803_v45 = vor.u32 %v2801_v41, %v2800_v49  ;;  %v2805_v39 = vrot.slane %v2800_v49, 4  ;;  %v2584_v49 = vld [vmem:[#allocation3 + $0x90] sm:$0x1] }
 0x1a4   : > { %3104 = vst [vmem:[#allocation3 + $0x18] sm:$0xf] %v3103_v43  ;;  %v3096_v60 = vsel %vm6939_vm6, %v2778_v17, %v3095_v63  ;;  %v2786_v56 = vor.u32 %v2784_v2, %v2783_v52  ;;  %v2788_v14 = vrot.slane %v2783_v52, 4 }
 0x1a5   : > { %3097 = vst [vmem:[#allocation3 + $0xc] sm:$0xf] %v3096_v60  ;;  %v2804_v15 = vsel %vm5565_vm10, %v2796_v54, %v2803_v45  ;;  %v3107_v16 = vsel %vm6697_vm3, %v2805_v39, %v3106_v58  ;;  %v2585_v60 = vsel %vm6697_vm3, %v6629_v4, %v2584_v49  ;;  %v5404_v49 = vld [vmem:[%s8387_s3 + $0x8] sm:$0xff]  }
 0x1a6   : > { %3105 = vst.msk [vmem:[#allocation3 + $0x1c] sm:$0xf] %vm8430_vm4, %v2804_v15  ;;  %3108 = vst [vmem:[#allocation3 + $0x20] sm:$0x1] %v3107_v16  ;;  %v2787_v28 = vsel %vm5565_vm10, %v2779_v44, %v2786_v56  ;;  %v3100_v1 = vsel %vm6697_vm3, %v2788_v14, %v3099_v50  ;;  %v3116_v15 = vld [vmem:[#allocation3 + $0x30] sm:$0xf] }
 0x1a7   : > { %3098 = vst.msk [vmem:[#allocation3 + $0x10] sm:$0xf] %vm8431_vm7, %v2787_v28  ;;  %3101 = vst [vmem:[#allocation3 + $0x14] sm:$0x1] %v3100_v1 }
 0x1a8   : > { %2586 = vst [vmem:[#allocation3 + $0x90] sm:$0x1] %v2585_v60  ;;  %vm8446_vm4 = vmmov %vm8436_vm0 }
 0x1a9   : > { %vm8447_vm7 = vmmov %vm8436_vm0 }
 0x1ab   : > { %v3213_v22 = vld [vmem:[#allocation3 + $0x18] sm:$0xf] }
 0x1ac   : > { %v5141_v29 = vrot.slane %v3213_v22, 9  ;;  %v6976_v27 = vld [vmem:[#allocation3 + $0xc] sm:$0xf]  ;;  %v3310_v24 = vshrl.u32 %v3213_v22, 16  ;;  %v3313_v18 = vshll.u32 %v3213_v22, 16 }
 0x1ad   : > { %v3214_v9 = vld [vmem:[#allocation3 + $0x1c] sm:$0xf]  ;;  %v6960_v38 = vld [vmem:[#allocation3 + $0x20] sm:$0x1]  ;;  %v5140_v55 = vrot.slane %v6976_v27, 9 }
 0x1ae   : > { %v6962_v59 = vcombine.low %v3213_v22, %v3214_v9  ;;  %v3709_v8 = vrot.slane %v3214_v9, 5  ;;  %v6964_v35 = vld [vmem:[#allocation3 + $0x10] sm:$0xf]  ;;  %v3712_v21 = vrot.slane %v6960_v38, 5  ;;  %v6980_v25 = vld [vmem:[#allocation3 + $0x14] sm:$0x1] }
 0x1af   : > { %v3702_v26 = vrot.slane %v6964_v35, 5  ;;  %v6985_v34 = vcombine.low %v6976_v27, %v6964_v35  ;;  %v3323_v33 = vshrl.u32 %v3214_v9, 16  ;;  %v3705_v3 = vrot.slane %v6980_v25, 5 }
 0x1b0   : > { %4189 = vrot.lane.b32.xlu0 %v6962_v59, %s5442_s9  ;;  %v3711_v47 = vrot.slane %v3709_v8, 4  ;;  %v3710_v32 = vsel %vm5580_vm13, %v5141_v29, %v3709_v8  ;;  %v3319_v30 = vshll.u32 %v3214_v9, 16  ;;  %v6993_v63 = vrot.slane %v3310_v24, 4  ;;  %v3109_v9 = vld [vmem:[#allocation3 + $0x24] sm:$0xf] }
 0x1b1   : > { %v3704_v10 = vrot.slane %v3702_v26, 4  ;;  %v3703_v58 = vsel %vm5580_vm13, %v5140_v55, %v3702_v26  ;;  %v6999_v43 = vrot.slane %v3313_v18, 5  ;;  %v7001_v45 = vrot.slane %v3323_v33, 4  ;;  %v2581_v26 = vld [vmem:[#allocation3 + $0x84] sm:$0x1] }
 0x1b2   : > { %v3713_v5 = vsel %vm5580_vm13, %v3711_v47, %v3712_v21  ;;  %v7004_v44 = vrot.slane %v3319_v30, 5  ;;  %v2582_v18 = vsel %vm6697_vm3, %v6629_v4, %v2581_v26 }
 0x1b3   : > { %v5191_v46 = vcombine.low %v3710_v32, %v3713_v5  ;;  %v3706_v52 = vsel %vm5580_vm13, %v3704_v10, %v3705_v3  ;;  %2583 = vst [vmem:[#allocation3 + $0x84] sm:$0x1] %v2582_v18 }
 0x1b4   : > { %v5306_v48 = vpop.f32.mrb[4].mxu0  ;;  %4086 = vrot.lane.b32.xlu0 %v6962_v59, %s5443_s10  ;;  %v5190_v28 = vcombine.low %v3703_v58, %v3706_v52  ;;  %v3316_v58 = vor.u32 %v6999_v43, %v6993_v63  ;;  %v3329_v52 = vshll.u32 %v6960_v38, 16 }
 0x1b5   : > { %v2391_v37 = vadd.f32 %v5306_v48, %v6914_v7  ;;  %v2382_v12 = vpop.f32.mrb[5].mxu0  ;;  %5221 = vmatprep.mubr.msk.bf16.mxu0 %vm2103_vm8, %v5191_v46 }
 0x1b6   : > { %v2383_v0 = vadd.f32 %v6914_v7, %v2382_v12  ;;  %v5307_v11 = vpop.f32.mrb[6].mxu0  ;;  %v3317_v38 = vrot.slane %v3316_v58, 4  ;;  %v3331_v43 = vrot.slane %v3329_v52, 5 }
 0x1b7   : > { %v2499_v36 = vmax.f32 %v2391_v37, 0.0  ;;  %v2394_v53 = vadd.f32 %v5307_v11, %v6914_v7  ;;  %v2385_v23 = vpop.f32.mrb[7].mxu0  ;;  %v3120_v37 = vld [vmem:[#allocation3 + $0x38] sm:$0x1] }
 0x1b8   : > { %v2497_v62 = vmax.f32 %v2383_v0, 0.0  ;;  %v2386_v42 = vadd.f32 %v6914_v7, %v2385_v23  ;;  %4084 = vrot.lane.b32.xlu0 %v6985_v34, %s5443_s10  ;;  %v2658_v0 = vld [vmem:[#allocation3 + $0x98] sm:$0x1]  ;;  %v2655_v23 = vld [vmem:[#allocation3 + $0x8c] sm:$0x1] }
 0x1b9   : > { %v5249_v31 = vpack.c.bf16 %v2499_v36, %v2499_v36  ;;  %v2500_v57 = vmax.f32 %v2394_v53, 0.0  ;;  %v3113_v36 = vld [vmem:[#allocation3 + $0x2c] sm:$0x1]  ;;  %v2659_v53 = vsel %vm6730_vm2, %v6718_v6, %v2658_v0  ;;  %v2656_v4 = vsel %vm6730_vm2, %v6718_v6, %v2655_v23 }
 0x1ba   : > { %v5247_v41 = vpack.c.bf16 %v2497_v62, %v2497_v62  ;;  %v2498_v17 = vmax.f32 %v2386_v42, 0.0  ;;  %2660 = vst [vmem:[#allocation3 + $0x98] sm:$0x1] %v2659_v53  ;;  %v5403_v42 = vld [vmem:[%s8387_s3] sm:$0xff]   ;;  %2657 = vst [vmem:[#allocation3 + $0x8c] sm:$0x1] %v2656_v4 }
 0x1bb   : > { %v2824_v2 = vshrl.u32 %v5249_v31, 16  ;;  %v5250_v54 = vpack.c.bf16 %v2500_v57, %v2500_v57  ;;  %v2827_v14 = vshll.u32 %v5249_v31, 16  ;;  %4648 = vmatpush1.bf16.msra.mxu0 %v5403_v42  ;;  %5341 = vmatpush1.bf16.msra.mxu1 %v5403_v42 }
 0x1bc   : > { %v2807_v39 = vshrl.u32 %v5247_v41, 16  ;;  %v5248_v50 = vpack.c.bf16 %v2498_v17, %v2498_v17  ;;  %4156 = vrot.lane.b32.xlu0 %v5191_v46, %s5444_s11  ;;  %v2810_v22 = vshll.u32 %v5247_v41, 16  ;;  %v3326_v41 = vor.u32 %v7001_v45, %v7004_v44  ;;  %v5405_v45 = vld [vmem:[%s8387_s3 + $0x10] sm:$0xff]  }
 0x1bd   : > { %v2826_v56 = vrot.slane %v2824_v2, 7  ;;  %v2832_v16 = vshrl.u32 %v5250_v54, 16  ;;  %v2835_v8 = vshll.u32 %v5250_v54, 16  ;;  %v8434_v17 = vmov 0  }
 0x1be   : > { %v2809_v1 = vrot.slane %v2807_v39, 7  ;;  %v2815_v29 = vshrl.u32 %v5248_v50, 16  ;;  %v2818_v5 = vshll.u32 %v5248_v50, 16  ;;  %4649 = vmatprep.subr.bf16.mxu0 %v8434_v17  ;;  %5333 = vmatprep.subr.bf16.mxu1 %v8434_v17  ;;  %v3299_v2 = vshrl.u32 %v6964_v35, 16 }
 0x1bf   : > { %v2829_v47 = vor.u32 %v2827_v14, %v2826_v56  ;;  %v2830_v21 = vrot.slane %v2826_v56, 4  ;;  %v2834_v32 = vrot.slane %v2832_v16, 7  ;;  %v3295_v54 = vshll.u32 %v6964_v35, 16  ;;  %4650 = vmatpush1.bf16.msra.mxu0 %v5404_v49  ;;  %5342 = vmatpush1.bf16.msra.mxu1 %v5404_v49 }
 0x1c0   : > { %v2812_v48 = vor.u32 %v2810_v22, %v2809_v1  ;;  %v2813_v24 = vrot.slane %v2809_v1, 4  ;;  %v2817_v12 = vrot.slane %v2815_v29, 7  ;;  %4053 = vrot.lane.b32.xlu0 %v5191_v46, %s5438_s18  ;;  %v3286_v39 = vshrl.u32 %v6976_v27, 16  ;;  %4651 = vmatprep.subr.bf16.mxu0 %v8434_v17 }
 0x1c1   : > { %v3117_v11 = vsel %vm6939_vm6, %v2829_v47, %v3116_v15  ;;  %v2837_v10 = vor.u32 %v2835_v8, %v2834_v32  ;;  %v2839_v33 = vrot.slane %v2834_v32, 4  ;;  %v3289_v50 = vshll.u32 %v6976_v27, 16  ;;  %5334 = vmatprep.subr.bf16.mxu1 %v8434_v17  ;;  %v5407_v47 = vld [vmem:[%s8387_s3 + $0x20] sm:$0xff]  }
 0x1c2   : > { %3118 = vst [vmem:[#allocation3 + $0x30] sm:$0xf] %v3117_v11  ;;  %v3110_v46 = vsel %vm6939_vm6, %v2812_v48, %v3109_v9  ;;  %v2820_v55 = vor.u32 %v2818_v5, %v2817_v12  ;;  %v2822_v62 = vrot.slane %v2817_v12, 4  ;;  %v3327_v63 = vrot.slane %v3326_v41, 4 }
 0x1c3   : > { %3111 = vst [vmem:[#allocation3 + $0x24] sm:$0xf] %v3110_v46  ;;  %v2838_v3 = vsel %vm5565_vm10, %v2830_v21, %v2837_v10  ;;  %v3121_v30 = vsel %vm6697_vm3, %v2839_v33, %v3120_v37  ;;  %v7061_v27 = vrot.slane %v3295_v54, 5  ;;  %v3301_v56 = vrot.slane %v3299_v2, 4  ;;  %4652 = vmatpush1.bf16.msra.mxu0 %v5405_v45  ;;  %5343 = vmatpush1.bf16.msra.mxu1 %v5405_v45  ;;  %v2590_v37 = vld [vmem:[#allocation3 + $0xa8] sm:$0x1] }
 0x1c4   : > { %3119 = vst.msk [vmem:[#allocation3 + $0x34] sm:$0xf] %vm8432_vm11, %v2838_v3  ;;  %3122 = vst [vmem:[#allocation3 + $0x38] sm:$0x1] %v3121_v30  ;;  %v2821_v31 = vsel %vm5565_vm10, %v2813_v24, %v2820_v55  ;;  %v3114_v57 = vsel %vm6697_vm3, %v2822_v62, %v3113_v36  ;;  %4154 = vrot.lane.b32.xlu0 %v5190_v28, %s5444_s11  ;;  %v3288_v15 = vrot.slane %v3286_v39, 4  ;;  %v3291_v16 = vrot.slane %v3289_v50, 5 }
 0x1c5   : > { %3112 = vst.msk [vmem:[#allocation3 + $0x28] sm:$0xf] %vm8433_vm12, %v2821_v31  ;;  %3115 = vst [vmem:[#allocation3 + $0x2c] sm:$0x1] %v3114_v57  ;;  %v3332_v1 = vsel %vm5636_vm14, %v3327_v63, %v3331_v43  ;;  %4653 = vmatprep.subr.bf16.mxu0 %v8434_v17  ;;  %5335 = vmatprep.subr.bf16.mxu1 %v8434_v17  ;;  %v3322_v22 = vsel %vm5636_vm14, %v3317_v38, %v7004_v44  ;;  %v3305_v21 = vshll.u32 %v6980_v25, 16  ;;  %v5409_v25 = vld [vmem:[%s8387_s3 + $0x28] sm:$0xff]  }
 0x1c6   : > { %v3302_v9 = vor.u32 %v3301_v56, %v7061_v27  ;;  %v7080_v8 = vcombine.low %v3322_v22, %v3332_v1  ;;  %v3292_v29 = vor.u32 %v3291_v16, %v3288_v15  ;;  %v7104_v10 = vld [vmem:[%s8391_s7] sm:$0x1]  ;;  %vm8452_vm11 = vmmov %vm8436_vm0 }
 0x1c7   : > { %v3307_v11 = vrot.slane %v3305_v21, 5  ;;  %v2591_v33 = vsel %vm6697_vm3, %v7104_v10, %v2590_v37  ;;  %v3130_v15 = vld [vmem:[#allocation3 + $0x48] sm:$0xf]  ;;  %v5410_v21 = vld [vmem:[%s8387_s3 + $0x30] sm:$0xff]   ;;  %vm8453_vm12 = vmmov %vm8436_vm0 }
 0x1c8   : > { %4051 = vrot.lane.b32.xlu0 %v5190_v28, %s5438_s18  ;;  %v5406_v28 = vld [vmem:[%s8387_s3 + $0x18] sm:$0xff]   ;;  %v3303_v44 = vrot.slane %v3302_v9, 4  ;;  %v3293_v24 = vrot.slane %v3292_v29, 4  ;;  %2592 = vst [vmem:[#allocation3 + $0xa8] sm:$0x1] %v2591_v33 }
 0x1c9   : > { %v7057_v35 = vld [vmem:[#allocation3 + $0x30] sm:$0xf]  ;;  %4654 = vmatpush1.bf16.msra.mxu0 %v5406_v28  ;;  %5344 = vmatpush1.bf16.msra.mxu1 %v5406_v28 }
 0x1ca   : > { %4655 = vmatprep.subr.bf16.mxu0 %v8434_v17  ;;  %5336 = vmatprep.subr.bf16.mxu1 %v8434_v17  ;;  %v5143_v5 = vrot.slane %v7057_v35, 9  ;;  %v7116_v3 = vld [vmem:[#allocation3 + $0x24] sm:$0xf]  ;;  %v3308_v30 = vsel %vm5636_vm14, %v3303_v44, %v3307_v11  ;;  %v3298_v2 = vsel %vm5636_vm14, %v3293_v24, %v7061_v27  ;;  %v3358_v63 = vshrl.u32 %v7057_v35, 16  ;;  %v2587_v11 = vld [vmem:[#allocation3 + $0x9c] sm:$0x1] }
 0x1cb   : > { %v7059_v60 = vld [vmem:[#allocation3 + $0x34] sm:$0xf]  ;;  %v7090_v32 = vld [vmem:[#allocation3 + $0x38] sm:$0x1]  ;;  %v7136_v45 = vcombine.low %v3298_v2, %v3308_v30  ;;  %v3361_v38 = vshll.u32 %v7057_v35, 16 }
 0x1cc   : > { %v7065_v14 = vcombine.low %v7057_v35, %v7059_v60  ;;  %v3723_v26 = vrot.slane %v7059_v60, 5  ;;  %v7098_v0 = vld [vmem:[#allocation3 + $0x28] sm:$0xf]  ;;  %v3726_v55 = vrot.slane %v7090_v32, 5  ;;  %v3371_v27 = vshrl.u32 %v7059_v60, 16 }
 0x1cd   : > { %4656 = vmatpush1.bf16.msra.mxu0 %v5407_v47  ;;  %5345 = vmatpush1.bf16.msra.mxu1 %v5407_v47  ;;  %v7124_v49 = vcombine.low %v7116_v3, %v7098_v0  ;;  %v3716_v1 = vrot.slane %v7098_v0, 5  ;;  %v3367_v47 = vshll.u32 %v7059_v60, 16 }
 0x1ce   : > { %4193 = vrot.lane.b32.xlu0 %v7065_v14, %s5442_s9  ;;  %4657 = vmatprep.subr.bf16.mxu0 %v8434_v17  ;;  %v3724_v36 = vsel %vm5580_vm13, %v5143_v5, %v3723_v26  ;;  %v3725_v46 = vrot.slane %v3723_v26, 4  ;;  %v3123_v26 = vld [vmem:[#allocation3 + $0x3c] sm:$0xf] }
 0x1cf   : > { %5337 = vmatprep.subr.bf16.mxu1 %v8434_v17 }
 0x1d0   : > { %v3727_v41 = vsel %vm5580_vm13, %v3725_v46, %v3726_v55  ;;  %v2588_v46 = vsel %vm6697_vm3, %v7104_v10, %v2587_v11  ;;  %v2664_v55 = vld [vmem:[#allocation3 + $0xb0] sm:$0x1] }
 0x1d1   : > { %4658 = vmatpush1.bf16.msra.mxu0 %v5409_v25  ;;  %v7132_v54 = vcombine.low %v3724_v36, %v3727_v41  ;;  %5346 = vmatpush1.bf16.msra.mxu1 %v5409_v25  ;;  %2589 = vst [vmem:[#allocation3 + $0x9c] sm:$0x1] %v2588_v46  ;;  %v2665_v30 = vsel %vm6730_vm2, %v6718_v6, %v2664_v55 }
 0x1d2   : > { %4224 = vrot.lane.b32.xlu0 %v7080_v8, %s5445_s24  ;;  %4659 = vmatprep.subr.bf16.mxu0 %v8434_v17  ;;  %2666 = vst [vmem:[#allocation3 + $0xb0] sm:$0x1] %v2665_v30 }
 0x1d3   : > { %5338 = vmatprep.subr.bf16.mxu1 %v8434_v17 }
 0x1d4   : > { %v5310_v48 = vpop.f32.mrb[8].mxu0 }
 0x1d5   : > { %v2407_v12 = vadd.f32 %v5310_v48, %v6914_v7  ;;  %v2398_v18 = vpop.f32.mrb[9].mxu0  ;;  %4660 = vmatpush1.bf16.msra.mxu0 %v5410_v21  ;;  %5347 = vmatpush1.bf16.msra.mxu1 %v5410_v21  ;;  %v3718_v21 = vrot.slane %v3716_v1, 4 }
 0x1d6   : > { %v2399_v53 = vadd.f32 %v6914_v7, %v2398_v18  ;;  %v5311_v23 = vpop.f32.mrb[10].mxu0  ;;  %4121 = vrot.lane.b32.xlu0 %v7080_v8, %s5446_s12  ;;  %4661 = vmatprep.subr.bf16.mxu0 %v8434_v17 }
 0x1d7   : > { %v2503_v62 = vmax.f32 %v2407_v12, 0.0  ;;  %v2410_v4 = vadd.f32 %v5311_v23, %v6914_v7  ;;  %v2401_v42 = vpop.f32.mrb[11].mxu0  ;;  %5339 = vmatprep.subr.bf16.mxu1 %v8434_v17 }
 0x1d8   : > { %v2501_v31 = vmax.f32 %v2399_v53, 0.0  ;;  %v2402_v57 = vadd.f32 %v6914_v7, %v2401_v42  ;;  %v3134_v53 = vld [vmem:[#allocation3 + $0x50] sm:$0x1]  ;;  %v3127_v42 = vld [vmem:[#allocation3 + $0x44] sm:$0x1] }
 0x1d9   : > { %v5253_v58 = vpack.c.bf16 %v2503_v62, %v2503_v62  ;;  %v2504_v52 = vmax.f32 %v2410_v4, 0.0 }
 0x1da   : > { %v5251_v39 = vpack.c.bf16 %v2501_v31, %v2501_v31  ;;  %v2502_v50 = vmax.f32 %v2402_v57, 0.0  ;;  %4191 = vrot.lane.b32.xlu0 %v7124_v49, %s5442_s9  ;;  %v2661_v31 = vld [vmem:[#allocation3 + $0xa4] sm:$0x1] }
 0x1db   : > { %v2858_v43 = vshrl.u32 %v5253_v58, 16  ;;  %v5254_v56 = vpack.c.bf16 %v2504_v52, %v2504_v52  ;;  %v2861_v9 = vshll.u32 %v5253_v58, 16  ;;  %v5411_v57 = vld [vmem:[%s8387_s3 + $0x38] sm:$0xff]   ;;  %v2662_v2 = vsel %vm6730_vm2, %v6718_v6, %v2661_v31 }
 0x1dc   : > { %v2841_v16 = vshrl.u32 %v5251_v39, 16  ;;  %v5252_v28 = vpack.c.bf16 %v2502_v50, %v2502_v50  ;;  %v2844_v5 = vshll.u32 %v5251_v39, 16  ;;  %2663 = vst [vmem:[#allocation3 + $0xa4] sm:$0x1] %v2662_v2  ;;  %4662 = vmatpush1.bf16.msra.mxu0 %v5411_v57  ;;  %5348 = vmatpush1.bf16.msra.mxu1 %v5411_v57 }
 0x1dd   : > { %v2860_v22 = vrot.slane %v2858_v43, 7  ;;  %v2866_v29 = vshrl.u32 %v5254_v56, 16  ;;  %v2869_v48 = vshll.u32 %v5254_v56, 16  ;;  %v3334_v43 = vshrl.u32 %v7116_v3, 16  ;;  %4663 = vmatprep.subr.bf16.mxu0 %v8434_v17  ;;  %5340 = vmatprep.subr.bf16.mxu1 %v8434_v17 }
 0x1de   : > { %v2843_v44 = vrot.slane %v2841_v16, 7  ;;  %v2849_v24 = vshrl.u32 %v5252_v28, 16  ;;  %3973 = vrot.lane.b32.xlu0 %v7080_v8, %s5439_s21  ;;  %v2852_v18 = vshll.u32 %v5252_v28, 16  ;;  %v3337_v56 = vshll.u32 %v7116_v3, 16 }
 0x1df   : > { %v2863_v25 = vor.u32 %v2861_v9, %v2860_v22  ;;  %v2864_v37 = vrot.slane %v2860_v22, 4  ;;  %v2868_v12 = vrot.slane %v2866_v29, 7  ;;  %v3347_v22 = vshrl.u32 %v7098_v0, 16  ;;  %v7184_v9 = vld [vmem:[#allocation3 + $0x2c] sm:$0x1] }
 0x1e0   : > { %v2846_v33 = vor.u32 %v2844_v5, %v2843_v44  ;;  %v2847_v36 = vrot.slane %v2843_v44, 4  ;;  %v2851_v23 = vrot.slane %v2849_v24, 7  ;;  %v3343_v29 = vshll.u32 %v7098_v0, 16 }
 0x1e1   : > { %v3131_v8 = vsel %vm6939_vm6, %v2863_v25, %v3130_v15  ;;  %v2871_v62 = vor.u32 %v2869_v48, %v2868_v12  ;;  %v2873_v4 = vrot.slane %v2868_v12, 4  ;;  %v5413_v15 = vld [vmem:[%s8387_s3 + $0x40] sm:$0xff]   ;;  %v3360_v44 = vrot.slane %v3358_v63, 4 }
 0x1e2   : > { %3132 = vst [vmem:[#allocation3 + $0x48] sm:$0xf] %v3131_v8  ;;  %v3124_v41 = vsel %vm6939_vm6, %v2846_v33, %v3123_v26  ;;  %v2854_v58 = vor.u32 %v2852_v18, %v2851_v23  ;;  %v2856_v52 = vrot.slane %v2851_v23, 4  ;;  %4088 = vrot.lane.b32.xlu0 %v7124_v49, %s5443_s10  ;;  %v7196_v5 = vrot.slane %v3367_v47, 5  ;;  %4664 = vmatpush1.bf16.msra.mxu0 %v5413_v15 }
 0x1e3   : > { %3125 = vst [vmem:[#allocation3 + $0x3c] sm:$0xf] %v3124_v41  ;;  %v2872_v39 = vsel %vm5565_vm10, %v2864_v37, %v2871_v62  ;;  %v3135_v50 = vsel %vm6697_vm3, %v2873_v4, %v3134_v53  ;;  %v3373_v26 = vrot.slane %v3371_v27, 4  ;;  %v3719_v48 = vrot.slane %v7184_v9, 5  ;;  %5349 = vmatpush1.bf16.msra.mxu1 %v5413_v15 }
 0x1e4   : > { %3133 = vst.msk [vmem:[#allocation3 + $0x4c] sm:$0xf] %vm8435_vm15, %v2872_v39  ;;  %3136 = vst [vmem:[#allocation3 + $0x50] sm:$0x1] %v3135_v50  ;;  %v2855_v16 = vsel %vm5565_vm10, %v2847_v36, %v2854_v58  ;;  %v3128_v28 = vsel %vm6697_vm3, %v2856_v52, %v3127_v42  ;;  %v3363_v17 = vrot.slane %v3361_v38, 5  ;;  %v3336_v24 = vrot.slane %v3334_v43, 4 }
 0x1e5   : > { %3126 = vst.msk [vmem:[#allocation3 + $0x40] sm:$0xf] %vm8436_vm0, %v2855_v16  ;;  %3129 = vst [vmem:[#allocation3 + $0x44] sm:$0x1] %v3128_v28  ;;  %v3339_v25 = vrot.slane %v3337_v56, 5  ;;  %v7203_v37 = vrot.slane %v3343_v29, 5  ;;  %v3720_v63 = vsel %vm5580_vm13, %v3718_v21, %v3719_v48  ;;  %v3374_v38 = vor.u32 %v3373_v26, %v7196_v5 }
 0x1e6   : > { %4119 = vrot.lane.b32.xlu0 %v7136_v45, %s5446_s12  ;;  %v3349_v12 = vrot.slane %v3347_v22, 4  ;;  %v5142_v18 = vrot.slane %v7116_v3, 9  ;;  %v3377_v27 = vshll.u32 %v7090_v32, 16  ;;  %v3353_v42 = vshll.u32 %v7184_v9, 16 }
 0x1e7   : > { %v3340_v53 = vor.u32 %v3339_v25, %v3336_v24  ;;  %v3375_v41 = vrot.slane %v3374_v38, 4  ;;  %vm4339_vm15 = vcmask 392192   ;;  %vm4372_vm0 = vcmask 523264  }
 0x1e8   : > { %v3717_v3 = vsel %vm5580_vm13, %v5142_v18, %v3716_v1  ;;  %v3350_v8 = vor.u32 %v3349_v12, %v7203_v37  ;;  %v3379_v43 = vrot.slane %v3377_v27, 5  ;;  %v3355_v48 = vrot.slane %v3353_v42, 5 }
 0x1e9   : > { %v7208_v47 = vld [vmem:[#allocation3 + $0x48] sm:$0xf]  ;;  %v7226_v23 = vcombine.low %v3717_v3, %v3720_v63  ;;  %v3341_v26 = vrot.slane %v3340_v53, 4 }
 0x1ea   : > { %3971 = vrot.lane.b32.xlu0 %v7136_v45, %s5439_s21  ;;  %v3406_v35 = vshrl.u32 %v7208_v47, 16  ;;  %v3409_v60 = vshll.u32 %v7208_v47, 16  ;;  %v7220_v11 = vld [vmem:[#allocation3 + $0x3c] sm:$0xf]  ;;  %v3364_v45 = vor.u32 %v3363_v17, %v3360_v44  ;;  %v3351_v56 = vrot.slane %v3350_v8, 4 }
 0x1eb   : > { %v7222_v33 = vld [vmem:[#allocation3 + $0x4c] sm:$0xf]  ;;  %v7224_v36 = vld [vmem:[#allocation3 + $0x50] sm:$0x1]  ;;  %v5144_v30 = vrot.slane %v7220_v11, 9  ;;  %v3380_v18 = vsel %vm5636_vm14, %v3375_v41, %v3379_v43  ;;  %v3346_v41 = vsel %vm5636_vm14, %v3341_v26, %v7203_v37 }
 0x1ec   : > { %v7228_v46 = vld [vmem:[#allocation3 + $0x40] sm:$0xf]  ;;  %v7230_v55 = vld [vmem:[#allocation3 + $0x44] sm:$0x1]  ;;  %v3419_v32 = vshrl.u32 %v7222_v33, 16  ;;  %v3408_v0 = vrot.slane %v3406_v35, 4  ;;  %v7259_v38 = vcombine.low %v7208_v47, %v7222_v33  ;;  %v3356_v27 = vsel %vm5636_vm14, %v3351_v56, %v3355_v48 }
 0x1ed   : > { %v3730_v1 = vrot.slane %v7228_v46, 5  ;;  %v3411_v62 = vrot.slane %v3409_v60, 5  ;;  %v3415_v4 = vshll.u32 %v7222_v33, 16  ;;  %v3733_v31 = vrot.slane %v7230_v55, 5 }
 0x1ee   : > { %4158 = vrot.lane.b32.xlu0 %v7226_v23, %s5444_s11  ;;  %v3421_v57 = vrot.slane %v3419_v32, 4  ;;  %v3425_v39 = vshll.u32 %v7224_v36, 16  ;;  %v3365_v50 = vrot.slane %v3364_v45, 4  ;;  %8438 = vst [vmem:[#allocation5_spill] sm:$0xff] %v7259_v38  ;;  %v3391_v37 = vshll.u32 %v7228_v46, 16 }
 0x1ef   : > { %v3732_v58 = vrot.slane %v3730_v1, 4  ;;  %v3412_v52 = vor.u32 %v3411_v62, %v3408_v0  ;;  %v3417_v2 = vrot.slane %v3415_v4, 5  ;;  %v3731_v16 = vsel %vm5580_vm13, %v5144_v30, %v3730_v1 }
 0x1f0   : > { %v3427_v12 = vrot.slane %v3425_v39, 5  ;;  %v3737_v62 = vrot.slane %v7222_v33, 5  ;;  %v3382_v39 = vshrl.u32 %v7220_v11, 16  ;;  %v3395_v48 = vshrl.u32 %v7228_v46, 16 }
 0x1f1   : > { %v5314_v15 = vpop.f32.mrb[12].mxu0  ;;  %v3734_v28 = vsel %vm5580_vm13, %v3732_v58, %v3733_v31  ;;  %v3413_v22 = vrot.slane %v3412_v52, 4  ;;  %v3422_v9 = vor.u32 %v3421_v57, %v3417_v2 }
 0x1f2   : > { %v2423_v29 = vadd.f32 %v5314_v15, %v6914_v7  ;;  %v2414_v21 = vpop.f32.mrb[13].mxu0  ;;  %4055 = vrot.lane.b32.xlu0 %v7226_v23, %s5438_s18  ;;  %v7249_v44 = vcombine.low %v3731_v16, %v3734_v28 }
 0x1f3   : > { %v2415_v17 = vadd.f32 %v6914_v7, %v2414_v21  ;;  %v5315_v24 = vpop.f32.mrb[14].mxu0  ;;  %v3423_v25 = vrot.slane %v3422_v9, 4  ;;  %v3418_v53 = vsel %vm5636_vm14, %v3413_v22, %v3417_v2  ;;  %v5176_v2 = vcombine.low %v3346_v41, %v3356_v27 }
 0x1f4   : > { %8437 = vst [vmem:[#allocation4_spill] sm:$0xff] %v7249_v44  ;;  %v2507_v63 = vmax.f32 %v2423_v29, 0.0  ;;  %v2426_v35 = vadd.f32 %v5315_v24, %v6914_v7  ;;  %4059 = vrot.lane.b32.xlu1 %v7249_v44, %s5438_s18  ;;  %v2417_v60 = vpop.f32.mrb[15].mxu0  ;;  %v3137_v29 = vld [vmem:[#allocation3 + $0x54] sm:$0xf] }
 0x1f5   : > { %v2505_v3 = vmax.f32 %v2415_v17, 0.0  ;;  %v2418_v45 = vadd.f32 %v6914_v7, %v2417_v60  ;;  %v3428_v32 = vsel %vm5636_vm14, %v3423_v25, %v3427_v12  ;;  %v3370_v7 = vsel %vm5636_vm14, %v3365_v50, %v7196_v5  ;;  %v3144_v50 = vld [vmem:[#allocation3 + $0x60] sm:$0xf]  ;;  %v3148_v24 = vld [vmem:[#allocation3 + $0x68] sm:$0x1] }
 0x1f6   : > { %v5257_v0 = vpack.c.bf16 %v2507_v63, %v2507_v63  ;;  %v2508_v8 = vmax.f32 %v2426_v35, 0.0  ;;  %4094 = vrot.lane.b32.xlu0 %v7259_v38, %s5443_s10  ;;  %v7270_v1 = vcombine.low %v3418_v53, %v3428_v32  ;;  %v7278_v57 = vcombine.low %v3370_v7, %v3380_v18  ;;  %v2596_v63 = vld [vmem:[#allocation3 + $0xc0] sm:$0x1] }
 0x1f7   : > { %v5255_v4 = vpack.c.bf16 %v2505_v3, %v2505_v3  ;;  %v2506_v42 = vmax.f32 %v2418_v45, 0.0  ;;  %v3739_v5 = vrot.slane %v3737_v62, 4  ;;  %v7292_v18 = vcombine.low %v7220_v11, %v7228_v46  ;;  %v3141_v45 = vld [vmem:[#allocation3 + $0x5c] sm:$0x1] }
 0x1f8   : > { %8439 = vst [vmem:[#allocation6_spill] sm:$0xff] %v7270_v1  ;;  %v2892_v30 = vshrl.u32 %v5257_v0, 16  ;;  %v5258_v31 = vpack.c.bf16 %v2508_v8, %v2508_v8  ;;  %4129 = vrot.lane.b32.xlu1 %v7270_v1, %s5446_s12  ;;  %v2895_v56 = vshll.u32 %v5257_v0, 16  ;;  %v2597_v7 = vsel %vm6697_vm3, %v7104_v10, %v2596_v63 }
 0x1f9   : > { %v2875_v58 = vshrl.u32 %v5255_v4, 16  ;;  %v5256_v52 = vpack.c.bf16 %v2506_v42, %v2506_v42  ;;  %v2878_v28 = vshll.u32 %v5255_v4, 16  ;;  %v2593_v4 = vld [vmem:[#allocation3 + $0xb4] sm:$0x1]  ;;  %2598 = vst [vmem:[#allocation3 + $0xc0] sm:$0x1] %v2597_v7 }
 0x1fa   : > { %v2894_v43 = vrot.slane %v2892_v30, 7  ;;  %v2900_v15 = vshrl.u32 %v5258_v31, 16  ;;  %4228 = vrot.lane.b32.xlu0 %v7278_v57, %s5445_s24  ;;  %v2903_v26 = vshll.u32 %v5258_v31, 16  ;;  %v2594_v30 = vsel %vm6697_vm3, %v7104_v10, %v2593_v4  ;;  %v2670_v31 = vld [vmem:[#allocation3 + $0xc8] sm:$0x1] }
 0x1fb   : > { %v2877_v16 = vrot.slane %v2875_v58, 7  ;;  %v2883_v22 = vshrl.u32 %v5256_v52, 16  ;;  %v2886_v12 = vshll.u32 %v5256_v52, 16  ;;  %v3385_v52 = vshll.u32 %v7220_v11, 16  ;;  %2595 = vst [vmem:[#allocation3 + $0xb4] sm:$0x1] %v2594_v30 }
 0x1fc   : > { %v2897_v9 = vor.u32 %v2895_v56, %v2894_v43  ;;  %v2902_v21 = vrot.slane %v2900_v15, 7  ;;  %v2898_v35 = vrot.slane %v2894_v43, 4  ;;  %v2671_v43 = vsel %vm6730_vm2, %v6718_v6, %v2670_v31  ;;  %v2667_v56 = vld [vmem:[#allocation3 + $0xbc] sm:$0x1] }
 0x1fd   : > { %v2880_v17 = vor.u32 %v2878_v28, %v2877_v16  ;;  %v2885_v25 = vrot.slane %v2883_v22, 7  ;;  %v2881_v53 = vrot.slane %v2877_v16, 4  ;;  %2672 = vst [vmem:[#allocation3 + $0xc8] sm:$0x1] %v2671_v43  ;;  %v2668_v10 = vsel %vm6730_vm2, %v6718_v6, %v2667_v56 }
 0x1fe   : > { %v3145_v60 = vsel %vm6939_vm6, %v2897_v9, %v3144_v50  ;;  %v2905_v27 = vor.u32 %v2903_v26, %v2902_v21  ;;  %v2907_v3 = vrot.slane %v2902_v21, 4  ;;  %4226 = vrot.lane.b32.xlu0 %v5176_v2, %s5445_s24  ;;  %v3740_v15 = vrot.slane %v7224_v36, 5  ;;  %2669 = vst [vmem:[#allocation3 + $0xbc] sm:$0x1] %v2668_v10 }
 0x1ff   : > { %3146 = vst [vmem:[#allocation3 + $0x60] sm:$0xf] %v3145_v60  ;;  %v3138_v32 = vsel %vm6939_vm6, %v2880_v17, %v3137_v29  ;;  %v2888_v0 = vor.u32 %v2886_v12, %v2885_v25  ;;  %v2890_v8 = vrot.slane %v2885_v25, 4  ;;  %v3393_v11 = vrot.slane %v3391_v37, 5 }
 0x200   : > { %3139 = vst [vmem:[#allocation3 + $0x54] sm:$0xf] %v3138_v32  ;;  %v2906_v46 = vsel %vm5565_vm10, %v2898_v35, %v2905_v27  ;;  %v3149_v42 = vsel %vm6697_vm3, %v2907_v3, %v3148_v24  ;;  %v3397_v50 = vrot.slane %v3395_v48, 4  ;;  %v5145_v16 = vrot.slane %v7208_v47, 9 }
 0x201   : > { %3147 = vst.msk [vmem:[#allocation3 + $0x64] sm:$0xf] %vm8440_vm9, %v2906_v46  ;;  %3150 = vst [vmem:[#allocation3 + $0x68] sm:$0x1] %v3149_v42  ;;  %v2889_v41 = vsel %vm5565_vm10, %v2881_v53, %v2888_v0  ;;  %v3142_v58 = vsel %vm6697_vm3, %v2890_v8, %v3141_v45  ;;  %v3741_v28 = vsel %vm5580_vm13, %v3739_v5, %v3740_v15  ;;  %v3384_v22 = vrot.slane %v3382_v39, 4 }
 0x202   : > { %3140 = vst.msk [vmem:[#allocation3 + $0x58] sm:$0xf] %vm8441_vm1, %v2889_v41  ;;  %3143 = vst [vmem:[#allocation3 + $0x5c] sm:$0x1] %v3142_v58  ;;  %4123 = vrot.lane.b32.xlu0 %v5176_v2, %s5446_s12  ;;  %v3387_v9 = vrot.slane %v3385_v52, 5  ;;  %v3738_v29 = vsel %vm5580_vm13, %v5145_v16, %v3737_v62  ;;  %v3398_v21 = vor.u32 %v3397_v50, %v3393_v11  ;;  %v3401_v47 = vshll.u32 %v7230_v55, 16 }
 0x203   : > { %v7332_v26 = vcombine.low %v3738_v29, %v3741_v28  ;;  %v7384_v58 = vld [vmem:[%s8386_s2] ss:$0 sm:$0xff]  ;;  %vm4405_vm9 = vcmask 654336   ;;  %vm4438_vm1 = vcmask 785408  }
 0x204   : > { %v3399_v24 = vrot.slane %v3398_v21, 4  ;;  %v3403_v27 = vrot.slane %v3401_v47, 5 }
 0x205   : > { %8442 = vst [vmem:[#allocation7_spill] sm:$0xff] %v7332_v26 }
 0x206   : > { %3975 = vrot.lane.b32.xlu0 %v5176_v2, %s5439_s21  ;;  %v7334_v36 = vld [vmem:[#allocation3 + $0x60] sm:$0xf]  ;;  %v3388_v2 = vor.u32 %v3387_v9, %v3384_v22  ;;  %v3404_v42 = vsel %vm5636_vm14, %v3399_v24, %v3403_v27 }
 0x207   : > { %v7339_v48 = vld [vmem:[#allocation3 + $0x54] sm:$0xf]  ;;  %v3454_v55 = vshrl.u32 %v7334_v36, 16  ;;  %v3457_v35 = vshll.u32 %v7334_v36, 16 }
 0x208   : > { %v7336_v37 = vld [vmem:[#allocation3 + $0x64] sm:$0xf]  ;;  %v5146_v25 = vrot.slane %v7339_v48, 9  ;;  %v3389_v60 = vrot.slane %v3388_v2, 4  ;;  %v3233_v7 = vld [vmem:[#allocation3 + $0x68] sm:$0x1] }
 0x209   : > { %v7341_v39 = vld [vmem:[#allocation3 + $0x58] sm:$0xf]  ;;  %v7343_v5 = vld [vmem:[#allocation3 + $0x5c] sm:$0x1]  ;;  %v3467_v17 = vshrl.u32 %v7336_v37, 16  ;;  %v3463_v3 = vshll.u32 %v7336_v37, 16  ;;  %v7375_v46 = vcombine.low %v7334_v36, %v7336_v37 }
 0x20a   : > { %4164 = vrot.lane.b32.xlu0 %v7332_v26, %s5444_s11  ;;  %v7349_v33 = vcombine.low %v7339_v48, %v7341_v39  ;;  %v3744_v62 = vrot.slane %v7341_v39, 5  ;;  %v3747_v63 = vrot.slane %v7343_v5, 5  ;;  %v3751_v32 = vrot.slane %v7336_v37, 5 }
 0x20b   : > { %v3469_v0 = vrot.slane %v3467_v17, 4  ;;  %v7369_v4 = vrot.slane %v3463_v3, 5  ;;  %8444 = vst [vmem:[#allocation9_spill] sm:$0xff] %v7375_v46  ;;  %v3456_v30 = vrot.slane %v3454_v55, 4  ;;  %v3459_v31 = vrot.slane %v3457_v35, 5 }
 0x20c   : > { %8443 = vst [vmem:[#allocation8_spill] sm:$0xff] %v7349_v33  ;;  %4199 = vrot.lane.b32.xlu1 %v7349_v33, %s5442_s9  ;;  %v3746_v12 = vrot.slane %v3744_v62, 4  ;;  %v3745_v45 = vsel %vm5580_vm13, %v5146_v25, %v3744_v62  ;;  %v3394_v56 = vsel %vm5636_vm14, %v3389_v60, %v3393_v11  ;;  %v3753_v10 = vrot.slane %v3751_v32, 4  ;;  %v7403_v25 = vpop.permute.xlu0 %3969 }
 0x20d   : > { %v3470_v15 = vor.u32 %v3469_v0, %v7369_v4  ;;  %v7393_v28 = vcombine.low %v3394_v56, %v3404_v42  ;;  %v3754_v22 = vrot.slane %v3233_v7, 5  ;;  %v3460_v37 = vor.u32 %v3459_v31, %v3456_v30  ;;  %v3158_v56 = vld [vmem:[#allocation3 + $0x78] sm:$0xf] }
 0x20e   : > { %4061 = vrot.lane.b32.xlu0 %v7332_v26, %s5438_s18  ;;  %v3748_v53 = vsel %vm5580_vm13, %v3746_v12, %v3747_v63  ;;  %v3473_v47 = vshll.u32 %v3233_v7, 16  ;;  %v3430_v11 = vshrl.u32 %v7339_v48, 16  ;;  %v5147_v17 = vrot.slane %v7334_v36, 9 }
 0x20f   : > { %v7367_v8 = vcombine.low %v3745_v45, %v3748_v53  ;;  %v3755_v12 = vsel %vm5580_vm13, %v3753_v10, %v3754_v22  ;;  %v3471_v63 = vrot.slane %v3470_v15, 4  ;;  %v3433_v35 = vshll.u32 %v7339_v48, 16 }
 0x210   : > { %3981 = vrot.lane.b32.xlu1 %v7270_v1, %s5439_s21  ;;  %v3752_v3 = vsel %vm5580_vm13, %v5147_v17, %v3751_v32  ;;  %v3461_v53 = vrot.slane %v3460_v37, 4  ;;  %v3475_v0 = vrot.slane %v3473_v47, 5  ;;  %v3443_v42 = vshrl.u32 %v7341_v39, 16  ;;  %v7422_v37 = vpop.permute.xlu0 %4049 }
 0x211   : > { %v5318_v41 = vpop.f32.mrb[16].mxu0  ;;  %5226 = vmatprep.mubr.msk.bf16.mxu1 %vm2103_vm8, %v7367_v8  ;;  %v7413_v31 = vcombine.low %v3752_v3, %v3755_v12 }
 0x212   : > { %v2439_v52 = vadd.f32 %v7384_v58, %v5318_v41  ;;  %v2430_v43 = vpop.f32.mrb[17].mxu0  ;;  %4201 = vrot.lane.b32.xlu0 %v7375_v46, %s5442_s9  ;;  %v3476_v32 = vsel %vm5636_vm14, %v3471_v63, %v3475_v0  ;;  %v3466_v47 = vsel %vm5636_vm14, %v3461_v53, %v7369_v4 }
 0x213   : > { %v2431_v50 = vadd.f32 %v7384_v58, %v2430_v43  ;;  %v5319_v16 = vpop.f32.mrb[18].mxu0  ;;  %8445 = vst [vmem:[#allocation10_spill] sm:$0xff] %v7413_v31 }
 0x214   : > { %v2511_v9 = vmax.f32 %v2439_v52, 0.0  ;;  %v2442_v29 = vadd.f32 %v7384_v58, %v5319_v16  ;;  %4096 = vrot.lane.b32.xlu1 %v7349_v33, %s5443_s10  ;;  %v2433_v21 = vpop.f32.mrb[19].mxu0  ;;  %v3439_v16 = vshll.u32 %v7341_v39, 16 }
 0x215   : > { %v2509_v2 = vmax.f32 %v2431_v50, 0.0  ;;  %v2434_v62 = vadd.f32 %v7384_v58, %v2433_v21 }
 0x216   : > { %v5261_v55 = vpack.c.bf16 %v2511_v9, %v2511_v9  ;;  %v2512_v24 = vmax.f32 %v2442_v29, 0.0  ;;  %4098 = vrot.lane.b32.xlu0 %v7375_v46, %s5443_s10  ;;  %v3151_v9 = vld [vmem:[#allocation3 + $0x6c] sm:$0xf] }
 0x217   : > { %v5259_v60 = vpack.c.bf16 %v2509_v2, %v2509_v2  ;;  %v2510_v27 = vmax.f32 %v2434_v62, 0.0  ;;  %v3162_v62 = vld [vmem:[#allocation3 + $0x80] sm:$0x1] }
 0x218   : > { %v2926_v45 = vshrl.u32 %v5261_v55, 16  ;;  %v5262_v36 = vpack.c.bf16 %v2512_v24, %v2512_v24  ;;  %4166 = vrot.lane.b32.xlu1 %v7367_v8, %s5444_s11  ;;  %v2929_v52 = vshll.u32 %v5261_v55, 16  ;;  %v5181_v24 = vcombine.low %v3466_v47, %v3476_v32 }
 0x219   : > { %v2909_v7 = vshrl.u32 %v5259_v60, 16  ;;  %v5260_v30 = vpack.c.bf16 %v2510_v27, %v2510_v27  ;;  %v2912_v15 = vshll.u32 %v5259_v60, 16  ;;  %v3155_v27 = vld [vmem:[#allocation3 + $0x74] sm:$0x1]  ;;  %v3435_v32 = vrot.slane %v3433_v35, 5 }
 0x21a   : > { %v2928_v41 = vrot.slane %v2926_v45, 7  ;;  %v2934_v43 = vshrl.u32 %v5262_v36, 16  ;;  %3979 = vrot.lane.b32.xlu0 %v7393_v28, %s5439_s21  ;;  %v2937_v21 = vshll.u32 %v5262_v36, 16 }
 0x21b   : > { %v2911_v10 = vrot.slane %v2909_v7, 7  ;;  %v2917_v50 = vshrl.u32 %v5260_v30, 16  ;;  %v2920_v55 = vshll.u32 %v5260_v30, 16  ;;  %v3441_v30 = vrot.slane %v3439_v16, 5 }
 0x21c   : > { %v2931_v22 = vor.u32 %v2929_v52, %v2928_v41  ;;  %v2936_v29 = vrot.slane %v2934_v43, 7  ;;  %4063 = vrot.lane.b32.xlu1 %v7367_v8, %s5438_s18  ;;  %v2932_v12 = vrot.slane %v2928_v41, 4  ;;  %v3445_v41 = vrot.slane %v3443_v42, 4 }
 0x21d   : > { %v2914_v2 = vor.u32 %v2912_v15, %v2911_v10  ;;  %v2919_v17 = vrot.slane %v2917_v50, 7  ;;  %v2915_v8 = vrot.slane %v2911_v10, 4  ;;  %v3432_v43 = vrot.slane %v3430_v11, 4 }
 0x21e   : > { %v3159_v39 = vsel %vm6939_vm6, %v2931_v22, %v3158_v56  ;;  %v2939_v63 = vor.u32 %v2937_v21, %v2936_v29  ;;  %v2941_v60 = vrot.slane %v2936_v29, 4  ;;  %4168 = vrot.lane.b32.xlu0 %v7413_v31, %s5444_s11  ;;  %v3446_v56 = vor.u32 %v3445_v41, %v3441_v30 }
 0x21f   : > { %3160 = vst [vmem:[#allocation3 + $0x78] sm:$0xf] %v3159_v39  ;;  %v3152_v4 = vsel %vm6939_vm6, %v2914_v2, %v3151_v9  ;;  %v2922_v3 = vor.u32 %v2920_v55, %v2919_v17  ;;  %v2924_v45 = vrot.slane %v2919_v17, 4  ;;  %v3449_v15 = vshll.u32 %v7343_v5, 16 }
 0x220   : > { %3153 = vst [vmem:[#allocation3 + $0x6c] sm:$0xf] %v3152_v4  ;;  %v2940_v36 = vsel %vm5565_vm10, %v2932_v12, %v2939_v63  ;;  %v3163_v53 = vsel %vm6697_vm3, %v2941_v60, %v3162_v62  ;;  %4236 = vrot.lane.b32.xlu1 %v5181_v24, %s5445_s24  ;;  %v3436_v42 = vor.u32 %v3435_v32, %v3432_v43  ;;  %v3447_v48 = vrot.slane %v3446_v56, 4 }
 0x221   : > { %3161 = vst.msk [vmem:[#allocation3 + $0x7c] sm:$0xf] %vm8446_vm4, %v2940_v36  ;;  %3164 = vst [vmem:[#allocation3 + $0x80] sm:$0x1] %v3163_v53  ;;  %v2923_v0 = vsel %vm5565_vm10, %v2915_v8, %v2922_v3  ;;  %v3156_v7 = vsel %vm6697_vm3, %v2924_v45, %v3155_v27  ;;  %v3451_v21 = vrot.slane %v3449_v15, 5  ;;  %vm4471_vm4 = vcmask 916480  }
 0x222   : > { %3154 = vst.msk [vmem:[#allocation3 + $0x70] sm:$0xf] %vm8447_vm7, %v2923_v0  ;;  %3157 = vst [vmem:[#allocation3 + $0x74] sm:$0x1] %v3156_v7  ;;  %4065 = vrot.lane.b32.xlu0 %v7413_v31, %s5438_s18  ;;  %v7446_v52 = vpop.permute.xlu0 %4189  ;;  %v3437_v5 = vrot.slane %v3436_v42, 4 }
 0x223   : > { %v3452_v2 = vsel %vm5636_vm14, %v3447_v48, %v3451_v21  ;;  %v3169_v31 = vld [vmem:[#allocation3 + $0x8c] sm:$0x1] }
 0x224   : > { %4133 = vrot.lane.b32.xlu1 %v5181_v24, %s5446_s12  ;;  %v3442_v12 = vsel %vm5636_vm14, %v3437_v5, %v3441_v30 }
 0x225   : > { %v5180_v60 = vcombine.low %v3442_v12, %v3452_v2 }
 0x226   : > { %v7451_v10 = vpop.permute.xlu0 %4086  ;;  %v3237_v50 = vld [vmem:[#allocation3 + $0x78] sm:$0xf] }
 0x227   : > { %v7459_v9 = vld [vmem:[#allocation3 + $0x6c] sm:$0xf]  ;;  %v3502_v63 = vshrl.u32 %v3237_v50, 16  ;;  %v3505_v8 = vshll.u32 %v3237_v50, 16  ;;  %v5149_v45 = vrot.slane %v3237_v50, 9 }
 0x228   : > { %v7454_v16 = vld [vmem:[#allocation3 + $0x7c] sm:$0xf]  ;;  %v7486_v27 = vld [vmem:[#allocation3 + $0x80] sm:$0x1]  ;;  %v3478_v53 = vshrl.u32 %v7459_v9, 16  ;;  %v3481_v0 = vshll.u32 %v7459_v9, 16 }
 0x229   : > { %v7457_v22 = vcombine.low %v3237_v50, %v7454_v16  ;;  %v7461_v29 = vld [vmem:[#allocation3 + $0x70] sm:$0xf]  ;;  %v3765_v62 = vrot.slane %v7454_v16, 5  ;;  %v7479_v55 = vld [vmem:[#allocation3 + $0x74] sm:$0x1]  ;;  %v3515_v43 = vshrl.u32 %v7454_v16, 16 }
 0x22a   : > { %v7463_v11 = vpop.permute.xlu0 %4084  ;;  %v7467_v35 = vcombine.low %v7459_v9, %v7461_v29  ;;  %v3758_v47 = vrot.slane %v7461_v29, 5  ;;  %v3761_v3 = vrot.slane %v7479_v55, 5  ;;  %v3768_v42 = vrot.slane %v7486_v27, 5 }
 0x22b   : > { %8448 = vst [vmem:[#allocation11_spill] sm:$0xff] %v7457_v22  ;;  %4205 = vrot.lane.b32.xlu0 %v7457_v22, %s5442_s9  ;;  %v3767_v36 = vrot.slane %v3765_v62, 4  ;;  %v3491_v50 = vshrl.u32 %v7461_v29, 16  ;;  %v3766_v5 = vsel %vm5580_vm13, %v5149_v45, %v3765_v62  ;;  %v3511_v26 = vshll.u32 %v7454_v16, 16 }
 0x22c   : > { %8449 = vst [vmem:[#allocation12_spill] sm:$0xff] %v7467_v35  ;;  %4203 = vrot.lane.b32.xlu1 %v7467_v35, %s5442_s9  ;;  %v3760_v39 = vrot.slane %v3758_v47, 4  ;;  %v7518_v62 = vrot.slane %v3502_v63, 4  ;;  %v7520_v45 = vrot.slane %v3505_v8, 5  ;;  %v3487_v16 = vshll.u32 %v7461_v29, 16 }
 0x22d   : > { %v7527_v63 = vrot.slane %v3511_v26, 5  ;;  %v3172_v8 = vld [vmem:[#allocation3 + $0x90] sm:$0xf]  ;;  %v3483_v46 = vrot.slane %v3481_v0, 5  ;;  %v3493_v29 = vrot.slane %v3491_v50, 4 }
 0x22e   : > { %v7477_v17 = vpop.permute.xlu0 %4156  ;;  %v3762_v15 = vsel %vm5580_vm13, %v3760_v39, %v3761_v3  ;;  %v3176_v26 = vld [vmem:[#allocation3 + $0x98] sm:$0x1] }
 0x22f   : > { %4102 = vrot.lane.b32.xlu0 %v7457_v22, %s5443_s10 }
 0x230   : > { %3985 = vrot.lane.b32.xlu1 %v5181_v24, %s5439_s21  ;;  %v5148_v24 = vrot.slane %v7459_v9, 9 }
 0x231   : > { %v5322_v4 = vpop.f32.mrb[20].mxu0 }
 0x232   : > { %v2455_v7 = vadd.f32 %v7384_v58, %v5322_v4  ;;  %v2446_v30 = vpop.f32.mrb[21].mxu0  ;;  %v7492_v41 = vpop.permute.xlu0 %4053  ;;  %v3759_v39 = vsel %vm5580_vm13, %v5148_v24, %v3758_v47  ;;  %v3769_v4 = vsel %vm5580_vm13, %v3767_v36, %v3768_v42 }
 0x233   : > { %v2447_v32 = vadd.f32 %v7384_v58, %v2446_v30  ;;  %v5323_v56 = vpop.f32.mrb[22].mxu0  ;;  %4234 = vrot.lane.b32.xlu0 %v5180_v60, %s5445_s24  ;;  %v7524_v36 = vcombine.low %v3766_v5, %v3769_v4  ;;  %v3165_v4 = vld [vmem:[#allocation3 + $0x84] sm:$0xf] }
 0x234   : > { %v2515_v48 = vmax.f32 %v2455_v7, 0.0  ;;  %v2458_v21 = vadd.f32 %v7384_v58, %v5323_v56  ;;  %4100 = vrot.lane.b32.xlu1 %v7467_v35, %s5443_s10  ;;  %v2449_v9 = vpop.f32.mrb[23].mxu0  ;;  %v7514_v56 = vcombine.low %v3759_v39, %v3762_v15 }
 0x235   : > { %v2513_v2 = vmax.f32 %v2447_v32, 0.0  ;;  %v2450_v12 = vadd.f32 %v7384_v58, %v2449_v9  ;;  %8451 = vst [vmem:[#allocation14_spill] sm:$0xff] %v7524_v36  ;;  %v3517_v32 = vrot.slane %v3515_v43, 4 }
 0x236   : > { %v5265_v3 = vpack.c.bf16 %v2515_v48, %v2515_v48  ;;  %v2516_v7 = vmax.f32 %v2458_v21, 0.0  ;;  %v7512_v30 = vpop.permute.xlu0 %4154  ;;  %8450 = vst [vmem:[#allocation13_spill] sm:$0xff] %v7514_v56  ;;  %v3480_v48 = vrot.slane %v3478_v53, 4 }
 0x237   : > { %v5263_v22 = vpack.c.bf16 %v2513_v2, %v2513_v2  ;;  %v2514_v35 = vmax.f32 %v2450_v12, 0.0  ;;  %4131 = vrot.lane.b32.xlu0 %v5180_v60, %s5446_s12 }
 0x238   : > { %v2960_v47 = vshrl.u32 %v5265_v3, 16  ;;  %v5266_v24 = vpack.c.bf16 %v2516_v7, %v2516_v7  ;;  %4170 = vrot.lane.b32.xlu1 %v7514_v56, %s5444_s11  ;;  %v2963_v9 = vshll.u32 %v5265_v3, 16 }
 0x239   : > { %v2943_v15 = vshrl.u32 %v5263_v22, 16  ;;  %v5264_v42 = vpack.c.bf16 %v2514_v35, %v2514_v35  ;;  %v2946_v39 = vshll.u32 %v5263_v22, 16 }
 0x23a   : > { %v2962_v21 = vrot.slane %v2960_v47, 7  ;;  %v2968_v2 = vshrl.u32 %v5266_v24, 16  ;;  %v2971_v33 = vshll.u32 %v5266_v24, 16  ;;  %v7530_v35 = vpop.permute.xlu0 %4051 }
 0x23b   : > { %v2945_v12 = vrot.slane %v2943_v15, 7  ;;  %v2951_v7 = vshrl.u32 %v5264_v42, 16  ;;  %3983 = vrot.lane.b32.xlu0 %v5180_v60, %s5439_s21  ;;  %v2954_v47 = vshll.u32 %v5264_v42, 16  ;;  %v3489_v15 = vrot.slane %v3487_v16, 5 }
 0x23c   : > { %v2965_v5 = vor.u32 %v2963_v9, %v2962_v21  ;;  %v2970_v43 = vrot.slane %v2968_v2, 7  ;;  %4067 = vrot.lane.b32.xlu1 %v7514_v56, %s5438_s18  ;;  %v2966_v22 = vrot.slane %v2962_v21, 4 }
 0x23d   : > { %v2948_v53 = vor.u32 %v2946_v39, %v2945_v12  ;;  %v2953_v3 = vrot.slane %v2951_v7, 7  ;;  %v2949_v24 = vrot.slane %v2945_v12, 4  ;;  %v3494_v12 = vor.u32 %v3493_v29, %v3489_v15 }
 0x23e   : > { %v3173_v60 = vsel %vm6939_vm6, %v2965_v5, %v3172_v8  ;;  %v2973_v0 = vor.u32 %v2971_v33, %v2970_v43  ;;  %v2975_v9 = vrot.slane %v2970_v43, 4  ;;  %v3518_v8 = vor.u32 %v3517_v32, %v7527_v63 }
 0x23f   : > { %3174 = vst [vmem:[#allocation3 + $0x90] sm:$0xf] %v3173_v60  ;;  %v3166_v2 = vsel %vm6939_vm6, %v2948_v53, %v3165_v4  ;;  %v2956_v1 = vor.u32 %v2954_v47, %v2953_v3  ;;  %v2958_v56 = vrot.slane %v2953_v3, 4  ;;  %4172 = vrot.lane.b32.xlu0 %v7524_v36, %s5444_s11  ;;  %v3508_v39 = vor.u32 %v7520_v45, %v7518_v62 }
 0x240   : > { %3167 = vst [vmem:[#allocation3 + $0x84] sm:$0xf] %v3166_v2  ;;  %v2974_v50 = vsel %vm5565_vm10, %v2966_v22, %v2973_v0  ;;  %v3177_v42 = vsel %vm6697_vm3, %v2975_v9, %v3176_v26  ;;  %v7544_v33 = vpop.permute.xlu0 %4193  ;;  %v3521_v7 = vshll.u32 %v7486_v27, 16  ;;  %v3484_v5 = vor.u32 %v3483_v46, %v3480_v48 }
 0x241   : > { %3175 = vst.msk [vmem:[#allocation3 + $0x94] sm:$0xf] %vm8452_vm11, %v2974_v50  ;;  %3178 = vst [vmem:[#allocation3 + $0x98] sm:$0x1] %v3177_v42  ;;  %v2957_v16 = vsel %vm5565_vm10, %v2949_v24, %v2956_v1  ;;  %v3170_v21 = vsel %vm6697_vm3, %v2958_v56, %v3169_v31  ;;  %v3497_v1 = vshll.u32 %v7479_v55, 16  ;;  %v3519_v53 = vrot.slane %v3518_v8, 4 }
 0x242   : > { %3168 = vst.msk [vmem:[#allocation3 + $0x88] sm:$0xf] %vm8453_vm12, %v2957_v16  ;;  %3171 = vst [vmem:[#allocation3 + $0x8c] sm:$0x1] %v3170_v21  ;;  %v5421_v31 = vld [vmem:[#allocation3] sm:$0xf] }
 0x243   : > { %4069 = vrot.lane.b32.xlu0 %v7524_v36, %s5438_s18  ;;  %v5422_v56 = vld [vmem:[#allocation3 + $0x4] sm:$0xf]  ;;  %v3495_v26 = vrot.slane %v3494_v12, 4  ;;  %v3509_v32 = vrot.slane %v3508_v39, 4  ;;  %v3523_v29 = vrot.slane %v3521_v7, 5  ;;  %v3485_v3 = vrot.slane %v3484_v5, 4  ;;  %vm8456_vm11 = vmmov %vm8447_vm7 }
 0x244   : > { %v7559_v4 = vpop.permute.xlu0 %4224  ;;  %v5157_v43 = vcombine.low %v5421_v31, %v5422_v56  ;;  %v3499_v47 = vrot.slane %v3497_v1, 5  ;;  %v3186_v36 = vld [vmem:[#allocation3 + $0xa8] sm:$0xf] }
 0x245   : > { %v3524_v0 = vsel %vm5636_vm14, %v3519_v53, %v3523_v29  ;;  %v3514_v16 = vsel %vm5636_vm14, %v3509_v32, %v7527_v63  ;;  %v3490_v21 = vsel %vm5636_vm14, %v3485_v3, %v3489_v15 }
 0x246   : > { %v7565_v62 = vld [vmem:[#allocation3 + $0x90] sm:$0xf]  ;;  %v3500_v9 = vsel %vm5636_vm14, %v3495_v26, %v3499_v47  ;;  %v4261_v2 = vsel %vm2103_vm8, %v5157_v43, %v7403_v25  ;;  %v7596_v25 = vcombine.low %v3514_v16, %v3524_v0 }
 0x247   : > { %v7561_v22 = vld [vmem:[#allocation3 + $0x84] sm:$0xf]  ;;  %v5182_v39 = vcombine.low %v3490_v21, %v3500_v9  ;;  %v4308_v1 = vsel %vm2235_vm5, %v4261_v2, %v7422_v37 }
 0x248   : > { %v7563_v60 = vpop.permute.xlu0 %4121  ;;  %v7567_v46 = vld [vmem:[#allocation3 + $0x94] sm:$0xf]  ;;  %v3526_v55 = vshrl.u32 %v7561_v22, 16  ;;  %v3529_v27 = vshll.u32 %v7561_v22, 16  ;;  %v4341_v37 = vsel %vm4339_vm15, %v4308_v1, %v7463_v11  ;;  %v5151_v1 = vrot.slane %v7565_v62, 9 }
 0x249   : > { %v7573_v45 = vcombine.low %v7565_v62, %v7567_v46  ;;  %v7575_v48 = vld [vmem:[#allocation3 + $0x88] sm:$0xf]  ;;  %v7607_v15 = vld [vmem:[#allocation3 + $0x8c] sm:$0x1]  ;;  %v8404_v56 = vrot.slane %v7567_v46, 5 }
 0x24a   : > { %v3539_v24 = vshrl.u32 %v7575_v48, 16  ;;  %v3535_v50 = vshll.u32 %v7575_v48, 16  ;;  %v3528_v8 = vrot.slane %v3526_v55, 4  ;;  %v3531_v12 = vrot.slane %v3529_v27, 5  ;;  %v7619_v55 = vld [vmem:[#allocation3 + $0x98] sm:$0x1] }
 0x24b   : > { %8454 = vst [vmem:[#allocation15_spill] sm:$0xff] %v7573_v45  ;;  %4106 = vrot.lane.b32.xlu1 %v7573_v45, %s5443_s10  ;;  %4209 = vrot.lane.b32.xlu0 %v7573_v45, %s5442_s9  ;;  %v3545_v47 = vshll.u32 %v7607_v15, 16  ;;  %v3781_v2 = vrot.slane %v8404_v56, 4  ;;  %v7629_v21 = vcombine.low %v7561_v22, %v7575_v48 }
 0x24c   : > { %v7589_v42 = vpop.permute.xlu0 %4191  ;;  %v7598_v7 = vrot.slane %v3535_v50, 5  ;;  %v3541_v5 = vrot.slane %v3539_v24, 4  ;;  %v3532_v31 = vor.u32 %v3531_v12, %v3528_v8 }
 0x24e   : > { %v3542_v53 = vor.u32 %v3541_v5, %v7598_v7  ;;  %v3533_v11 = vrot.slane %v3532_v31, 4  ;;  %v3547_v31 = vrot.slane %v3545_v47, 5 }
 0x24f   : > { %4240 = vrot.lane.b32.xlu1 %v7596_v25, %s5445_s24  ;;  %4238 = vrot.lane.b32.xlu0 %v5182_v39, %s5445_s24 }
 0x250   : > { %v7605_v63 = vpop.permute.xlu0 %3973  ;;  %v3543_v8 = vrot.slane %v3542_v53, 4  ;;  %v3538_v53 = vsel %vm5636_vm14, %v3533_v11, %v7598_v7 }
 0x251   : > { %v5326_v43 = vpop.f32.mrb[24].mxu0 }
 0x252   : > { %v2471_v26 = vadd.f32 %v7384_v58, %v5326_v43  ;;  %v2462_v32 = vpop.f32.mrb[25].mxu0  ;;  %v3782_v43 = vrot.slane %v7619_v55, 5 }
 0x253   : > { %v2463_v29 = vadd.f32 %v7384_v58, %v2462_v32  ;;  %4137 = vrot.lane.b32.xlu1 %v7596_v25, %s5446_s12  ;;  %v5327_v3 = vpop.f32.mrb[26].mxu0  ;;  %4135 = vrot.lane.b32.xlu0 %v5182_v39, %s5446_s12 }
 0x254   : > { %v2519_v27 = vmax.f32 %v2471_v26, 0.0  ;;  %v2474_v0 = vadd.f32 %v7384_v58, %v5327_v3  ;;  %v2465_v9 = vpop.f32.mrb[27].mxu0  ;;  %v7622_v24 = vpop.permute.xlu0 %4088 }
 0x255   : > { %v2517_v50 = vmax.f32 %v2463_v29, 0.0  ;;  %v2466_v16 = vadd.f32 %v7384_v58, %v2465_v9 }
 0x256   : > { %v5269_v12 = vpack.c.bf16 %v2519_v27, %v2519_v27  ;;  %v2520_v5 = vmax.f32 %v2474_v0, 0.0  ;;  %v3783_v27 = vsel %vm5580_vm13, %v3781_v2, %v3782_v43 }
 0x257   : > { %v5267_v26 = vpack.c.bf16 %v2517_v50, %v2517_v50  ;;  %v2518_v32 = vmax.f32 %v2466_v16, 0.0  ;;  %4207 = vrot.lane.b32.xlu1 %v7629_v21, %s5442_s9  ;;  %3987 = vrot.lane.b32.xlu0 %v5182_v39, %s5439_s21  ;;  %v3548_v39 = vsel %vm5636_vm14, %v3543_v8, %v3547_v31 }
 0x258   : > { %v2994_v3 = vshrl.u32 %v5269_v12, 16  ;;  %v5270_v9 = vpack.c.bf16 %v2520_v5, %v2520_v5  ;;  %v4120_v56 = vpop.permute.xlu0 %4119  ;;  %v2997_v45 = vshll.u32 %v5269_v12, 16 }
 0x259   : > { %v2977_v0 = vshrl.u32 %v5267_v26, 16  ;;  %v5268_v50 = vpack.c.bf16 %v2518_v32, %v2518_v32  ;;  %v4374_v16 = vsel %vm4372_vm0, %v4341_v37, %v4120_v56  ;;  %v2980_v44 = vshll.u32 %v5267_v26, 16  ;;  %v3179_v37 = vld [vmem:[#allocation3 + $0x9c] sm:$0xf]  ;;  %v3190_v26 = vld [vmem:[#allocation3 + $0xb0] sm:$0x1] }
 0x25a   : > { %v2996_v47 = vrot.slane %v2994_v3, 7  ;;  %v3002_v29 = vshrl.u32 %v5270_v9, 16  ;;  %v4407_v5 = vsel %vm4405_vm9, %v4374_v16, %v7512_v30  ;;  %v3005_v8 = vshll.u32 %v5270_v9, 16  ;;  %v3183_v16 = vld [vmem:[#allocation3 + $0xa4] sm:$0x1] }
 0x25b   : > { %v2979_v38 = vrot.slane %v2977_v0, 7  ;;  %v2985_v7 = vshrl.u32 %v5268_v50, 16  ;;  %v4440_v11 = vsel %vm4438_vm1, %v4407_v5, %v7446_v52  ;;  %3989 = vrot.lane.b32.xlu1 %v7596_v25, %s5439_s21  ;;  %4090 = vrot.lane.b32.xlu0 %v7065_v14, %s5443_s10  ;;  %v2988_v31 = vshll.u32 %v5268_v50, 16 }
 0x25c   : > { %v2999_v56 = vor.u32 %v2997_v45, %v2996_v47  ;;  %v3004_v2 = vrot.slane %v3002_v29, 7  ;;  %v3972_v12 = vpop.permute.xlu0 %3971  ;;  %v4473_v30 = vsel %vm4471_vm4, %v4440_v11, %v7559_v4  ;;  %v7655_v52 = vcombine.low %v3538_v53, %v3548_v39 }
 0x25d   : > { %v2982_v43 = vor.u32 %v2980_v44, %v2979_v38  ;;  %v2987_v32 = vrot.slane %v2985_v7, 7  ;;  %4680 = vmatmul.mubr.bf16.vlgmr.msra.gmra.mrb[32].mxu0 %v4473_v30  ;;  %v3000_v3 = vrot.slane %v2996_v47, 4  ;;  %v2983_v29 = vrot.slane %v2979_v38, 4 }
 0x25e   : > { %v3187_v25 = vsel %vm6939_vm6, %v2999_v56, %v3186_v36  ;;  %v3007_v0 = vor.u32 %v3005_v8, %v3004_v2  ;;  %v3009_v45 = vrot.slane %v3004_v2, 4  ;;  %5222 = vmatprep.mubr.msk.bf16.mxu0 %vm2103_vm8, %v7226_v23  ;;  %v8455_v38 = vrot.slane %v7567_v46, 5 }
 0x25f   : > { %3188 = vst [vmem:[#allocation3 + $0xa8] sm:$0xf] %v3187_v25  ;;  %v3180_v44 = vsel %vm6939_vm6, %v2982_v43, %v3179_v37  ;;  %v2990_v4 = vor.u32 %v2988_v31, %v2987_v32  ;;  %v2992_v9 = vrot.slane %v2987_v32, 4  ;;  %4104 = vrot.lane.b32.xlu1 %v7629_v21, %s5443_s10  ;;  %4242 = vrot.lane.b32.xlu0 %v7655_v52, %s5445_s24  ;;  %v8457_v11 = vrot.slane %v7575_v48, 5 }
 0x260   : > { %3181 = vst [vmem:[#allocation3 + $0x9c] sm:$0xf] %v3180_v44  ;;  %v3008_v36 = vsel %vm5565_vm10, %v3000_v3, %v3007_v0  ;;  %v3191_v23 = vsel %vm6697_vm3, %v3009_v45, %v3190_v26  ;;  %v7671_v53 = vpop.permute.xlu0 %4158  ;;  %v3780_v50 = vsel %vm5580_vm13, %v5151_v1, %v8455_v38  ;;  %v4264_v5 = vsel %vm2103_vm8, %v6985_v34, %v3972_v12  ;;  %v2599_v44 = vld [vmem:[#allocation3 + $0xcc] sm:$0x1] }
 0x261   : > { %3189 = vst.msk [vmem:[#allocation3 + $0xac] sm:$0xf] %vm8447_vm7, %v3008_v36  ;;  %3192 = vst [vmem:[#allocation3 + $0xb0] sm:$0x1] %v3191_v23  ;;  %v2991_v39 = vsel %vm5565_vm10, %v2983_v29, %v2990_v4  ;;  %v3184_v47 = vsel %vm6697_vm3, %v2992_v9, %v3183_v16  ;;  %v7684_v7 = vcombine.low %v3780_v50, %v3783_v27  ;;  %v3774_v1 = vrot.slane %v8457_v11, 4 }
 0x262   : > { %3182 = vst.msk [vmem:[#allocation3 + $0xa0] sm:$0xf] %vm8456_vm11, %v2991_v39  ;;  %3185 = vst [vmem:[#allocation3 + $0xa4] sm:$0x1] %v3184_v47  ;;  %v3563_v56 = vshrl.u32 %v7567_v46, 16  ;;  %v4310_v37 = vsel %vm2235_vm5, %v4264_v5, %v7530_v35  ;;  %v3775_v27 = vrot.slane %v7607_v15, 5 }
 0x263   : > { %4176 = vrot.lane.b32.xlu1 %v7684_v7, %s5444_s11  ;;  %4139 = vrot.lane.b32.xlu0 %v7655_v52, %s5446_s12  ;;  %v3559_v2 = vshll.u32 %v7567_v46, 16  ;;  %v3550_v8 = vshrl.u32 %v7565_v62, 16  ;;  %v3553_v12 = vshll.u32 %v7565_v62, 16  ;;  %v5150_v30 = vrot.slane %v7561_v22, 9  ;;  %v2673_v50 = vld [vmem:[#allocation3 + $0xd4] sm:$0x1] }
 0x264   : > { %v7696_v34 = vpop.permute.xlu0 %4055  ;;  %v3776_v43 = vsel %vm5580_vm13, %v3774_v1, %v3775_v27  ;;  %v4343_v26 = vsel %vm4339_vm15, %v4310_v37, %v7451_v10  ;;  %v8458_v46 = vmov %v8457_v11  ;;  %v3565_v15 = vrot.slane %v3563_v56, 4 }
 0x265   : > { %v3773_v62 = vsel %vm5580_vm13, %v5150_v30, %v8458_v46  ;;  %v3561_v22 = vrot.slane %v3559_v2, 5  ;;  %v4376_v10 = vsel %vm4372_vm0, %v4343_v26, %v7563_v60  ;;  %v3552_v31 = vrot.slane %v3550_v8, 4 }
 0x266   : > { %v7717_v32 = vcombine.low %v3773_v62, %v3776_v43  ;;  %v3555_v3 = vrot.slane %v3553_v12, 5  ;;  %v4409_v0 = vsel %vm4405_vm9, %v4376_v10, %v7477_v17  ;;  %v3569_v29 = vshll.u32 %v7619_v55, 16  ;;  %v7739_v9 = vld [vmem:[#allocation3 + $0xa8] sm:$0xf]  ;;  %v7756_v56 = vpop.permute.xlu1 %4059 }
 0x267   : > { %4073 = vrot.lane.b32.xlu1 %v7684_v7, %s5438_s18  ;;  %4125 = vrot.lane.b32.xlu0 %v7278_v57, %s5446_s12  ;;  %v3566_v48 = vor.u32 %v3565_v15, %v3561_v22  ;;  %v4267_v60 = vsel %vm2103_vm8, %v6962_v59, %v7605_v63  ;;  %v4442_v17 = vsel %vm4438_vm1, %v4409_v0, %v7589_v42  ;;  %v5423_v59 = vld [vmem:[%s8391_s7] sm:$0x1] }
 0x268   : > { %v7711_v35 = vpop.permute.xlu0 %4094  ;;  %v7727_v45 = vld [vmem:[#allocation3 + $0xac] sm:$0xf]  ;;  %v3556_v16 = vor.u32 %v3555_v3, %v3552_v31  ;;  %v2600_v63 = vsel %vm6697_vm3, %v5423_v59, %v2599_v44  ;;  %v4312_v42 = vsel %vm2235_vm5, %v4267_v60, %v7492_v41  ;;  %v3571_v11 = vrot.slane %v3569_v29, 5 }
 0x269   : > { %v3567_v36 = vrot.slane %v3566_v48, 4  ;;  %v7744_v38 = vcombine.low %v7739_v9, %v7727_v45  ;;  %2601 = vst [vmem:[#allocation3 + $0xcc] sm:$0x1] %v2600_v63  ;;  %v4345_v1 = vsel %vm4339_vm15, %v4312_v42, %v7622_v24  ;;  %v2674_v30 = vsel %vm6730_vm2, %v6718_v6, %v2673_v50  ;;  %v3193_v50 = vld [vmem:[#allocation3 + $0xb4] sm:$0xf]  ;;  %vm8460_vm2 = vmmov %vm8447_vm7 }
 0x26a   : > { %v3557_v5 = vrot.slane %v3556_v16, 4  ;;  %2675 = vst [vmem:[#allocation3 + $0xd4] sm:$0x1] %v2674_v30  ;;  %v3793_v13 = vrot.slane %v7727_v45, 5 }
 0x26b   : > { %4174 = vrot.lane.b32.xlu1 %v7717_v32, %s5444_s11  ;;  %4160 = vrot.lane.b32.xlu0 %v7132_v54, %s5444_s11  ;;  %v3572_v24 = vsel %vm5636_vm14, %v3567_v36, %v3571_v11 }
 0x26c   : > { %v4229_v25 = vpop.permute.xlu0 %4228  ;;  %v3562_v31 = vsel %vm5636_vm14, %v3557_v5, %v3561_v22 }
 0x26d   : > { %v5185_v20 = vcombine.low %v3562_v31, %v3572_v24  ;;  %v7803_v24 = vld [vmem:[#allocation3 + $0xa0] sm:$0xf] }
 0x26f   : > { %4071 = vrot.lane.b32.xlu1 %v7717_v32, %s5438_s18  ;;  %4195 = vrot.lane.b32.xlu0 %v7292_v18, %s5442_s9 }
 0x270   : > { %v4227_v4 = vpop.permute.xlu0 %4226 }
 0x271   : > { %v5330_v23 = vpop.f32.mrb[28].mxu0  ;;  %v4476_v55 = vsel %vm4471_vm4, %v4442_v17, %v4227_v4  ;;  %v7786_v17 = vpop.permute.xlu1 %4129 }
 0x272   : > { %v2487_v39 = vadd.f32 %v7384_v58, %v5330_v23  ;;  %v2478_v47 = vpop.f32.mrb[29].mxu0  ;;  %4688 = vmatmul.mubr.bf16.gmra.mrb[36].mxu0 %v4476_v55 }
 0x273   : > { %v2479_v37 = vadd.f32 %v7384_v58, %v2478_v47  ;;  %4213 = vrot.lane.b32.xlu1 %v7744_v38, %s5442_s9  ;;  %v5331_v27 = vpop.f32.mrb[30].mxu0  ;;  %4230 = vrot.lane.b32.xlu0 %v7393_v28, %s5445_s24 }
 0x274   : > { %v2523_v41 = vmax.f32 %v2487_v39, 0.0  ;;  %v2490_v2 = vadd.f32 %v7384_v58, %v5331_v27  ;;  %5223 = vmatprep.mubr.msk.bf16.mxu0 %vm2103_vm8, %v7132_v54  ;;  %v2481_v8 = vpop.f32.mrb[31].mxu0  ;;  %v4124_v12 = vpop.permute.xlu0 %4123  ;;  %v8459_v39 = vld [vmem:[#allocation4_spill] sm:$0xff] }
 0x275   : > { %v2521_v43 = vmax.f32 %v2479_v37, 0.0  ;;  %v2482_v26 = vadd.f32 %v7384_v58, %v2481_v8  ;;  %v4378_v46 = vsel %vm4372_vm0, %v4345_v1, %v4124_v12  ;;  %v3204_v1 = vld [vmem:[#allocation3 + $0xc8] sm:$0x1]  ;;  %v3197_v8 = vld [vmem:[#allocation3 + $0xbc] sm:$0x1] }
 0x276   : > { %v5273_v62 = vpack.c.bf16 %v2523_v41, %v2523_v41  ;;  %v2524_v15 = vmax.f32 %v2490_v2, 0.0  ;;  %v4411_v10 = vsel %vm4405_vm9, %v4378_v46, %v7671_v53 }
 0x277   : > { %v5271_v3 = vpack.c.bf16 %v2521_v43, %v2521_v43  ;;  %v2522_v48 = vmax.f32 %v2482_v26, 0.0  ;;  %4110 = vrot.lane.b32.xlu1 %v7744_v38, %s5443_s10  ;;  %3977 = vrot.lane.b32.xlu0 %v7278_v57, %s5439_s21  ;;  %v4444_v6 = vsel %vm4438_vm1, %v4411_v10, %v7544_v33  ;;  %v3200_v33 = vld [vmem:[#allocation3 + $0xc0] sm:$0xf] }
 0x278   : > { %v3028_v58 = vshrl.u32 %v5273_v62, 16  ;;  %v3031_v0 = vshll.u32 %v5273_v62, 16  ;;  %v5274_v16 = vpack.c.bf16 %v2524_v15, %v2524_v15  ;;  %v3976_v29 = vpop.permute.xlu0 %3975  ;;  %v4479_v53 = vsel %vm4471_vm4, %v4444_v6, %v4229_v25  ;;  %v7816_v15 = vld [vmem:[#allocation3 + $0x9c] sm:$0xf] }
 0x279   : > { %v3011_v44 = vshrl.u32 %v5271_v3, 16  ;;  %v3014_v22 = vshll.u32 %v5271_v3, 16  ;;  %v5272_v60 = vpack.c.bf16 %v2522_v48, %v2522_v48  ;;  %v4270_v4 = vsel %vm2103_vm8, %v7124_v49, %v3976_v29 }
 0x27a   : > { %v3030_v36 = vrot.slane %v3028_v58, 7  ;;  %v3036_v57 = vshrl.u32 %v5274_v16, 16  ;;  %v3039_v23 = vshll.u32 %v5274_v16, 16  ;;  %4696 = vmatmul.mubr.bf16.gmra.mrb[40].mxu0 %v4479_v53  ;;  %v7797_v47 = vsel %vm2235_vm5, %v4270_v4, %v7696_v34  ;;  %v3251_v58 = vld [vmem:[#allocation3 + $0xb0] sm:$0x1] }
 0x27b   : > { %v3013_v55 = vrot.slane %v3011_v44, 7  ;;  %v3019_v59 = vshrl.u32 %v5272_v60, 16  ;;  %4244 = vrot.lane.b32.xlu1 %v5185_v20, %s5445_s24  ;;  %4057 = vrot.lane.b32.xlu0 %v7132_v54, %s5438_s18  ;;  %v3022_v27 = vshll.u32 %v5272_v60, 16  ;;  %v7825_v31 = vcombine.low %v7816_v15, %v7803_v24  ;;  %v8463_v60 = vld [vmem:[#allocation6_spill] sm:$0xff] }
 0x27c   : > { %v3033_v25 = vor.u32 %v3031_v0, %v3030_v36  ;;  %v3034_v63 = vrot.slane %v3030_v36, 4  ;;  %v3038_v42 = vrot.slane %v3036_v57, 7  ;;  %5224 = vmatprep.mubr.msk.bf16.mxu0 %vm2103_vm8, %v8459_v39  ;;  %v7793_v49 = vpop.permute.xlu0 %4164  ;;  %v3795_v0 = vrot.slane %v3793_v13, 4 }
 0x27d   : > { %v3016_v5 = vor.u32 %v3014_v22, %v3013_v55  ;;  %v3017_v11 = vrot.slane %v3013_v55, 4  ;;  %v3021_v37 = vrot.slane %v3019_v59, 7  ;;  %v3796_v29 = vrot.slane %v3251_v58, 5 }
 0x27e   : > { %v3201_v54 = vsel %vm6939_vm6, %v3033_v25, %v3200_v33  ;;  %v3041_v41 = vor.u32 %v3039_v23, %v3038_v42  ;;  %v3043_v2 = vrot.slane %v3038_v42, 4  ;;  %v7801_v12 = vpop.permute.xlu1 %4199  ;;  %v5153_v44 = vrot.slane %v7739_v9, 9  ;;  %v7864_v23 = vld [vmem:[#allocation3 + $0xa4] sm:$0x1] }
 0x27f   : > { %3202 = vst [vmem:[#allocation3 + $0xc0] sm:$0xf] %v3201_v54  ;;  %v3194_v34 = vsel %vm6939_vm6, %v3016_v5, %v3193_v50  ;;  %v3024_v30 = vor.u32 %v3022_v27, %v3021_v37  ;;  %v3026_v43 = vrot.slane %v3021_v37, 4  ;;  %4141 = vrot.lane.b32.xlu1 %v5185_v20, %s5446_s12  ;;  %4092 = vrot.lane.b32.xlu0 %v7292_v18, %s5443_s10  ;;  %vm8461_vm6 = vmmov %vm8460_vm2  ;;  %v3786_v22 = vrot.slane %v7803_v24, 5 }
 0x280   : > { %3195 = vst [vmem:[#allocation3 + $0xb4] sm:$0xf] %v3194_v34  ;;  %v3042_v26 = vsel %vm5565_vm10, %v3034_v63, %v3041_v41  ;;  %v3205_v46 = vsel %vm6697_vm3, %v3043_v2, %v3204_v1  ;;  %v7814_v62 = vpop.permute.xlu0 %4061  ;;  %v3794_v4 = vsel %vm5580_vm13, %v5153_v44, %v3793_v13  ;;  %v3611_v33 = vshrl.u32 %v7727_v45, 16 }
 0x281   : > { %3203 = vst.msk [vmem:[#allocation3 + $0xc4] sm:$0xf] %vm8460_vm2, %v3042_v26  ;;  %3206 = vst [vmem:[#allocation3 + $0xc8] sm:$0x1] %v3205_v46  ;;  %v3025_v19 = vsel %vm5565_vm10, %v3017_v11, %v3024_v30  ;;  %v3198_v10 = vsel %vm6697_vm3, %v3026_v43, %v3197_v8  ;;  %v3788_v55 = vrot.slane %v3786_v22, 4  ;;  %v3607_v59 = vshll.u32 %v7727_v45, 16 }
 0x282   : > { %3196 = vst.msk [vmem:[#allocation3 + $0xb8] sm:$0xf] %vm8461_vm6, %v3025_v19  ;;  %3199 = vst [vmem:[#allocation3 + $0xbc] sm:$0x1] %v3198_v10  ;;  %v7828_v3 = vpop.permute.xlu1 %3981  ;;  %v3601_v63 = vshll.u32 %v7739_v9, 16  ;;  %v3789_v50 = vrot.slane %v7864_v23, 5 }
 0x283   : > { %4211 = vrot.lane.b32.xlu1 %v7825_v31, %s5442_s9  ;;  %4127 = vrot.lane.b32.xlu0 %v7393_v28, %s5446_s12  ;;  %v8462_v28 = vld [vmem:[#allocation5_spill] sm:$0xff]  ;;  %v5152_v42 = vrot.slane %v7816_v15, 9  ;;  %v3609_v45 = vrot.slane %v3607_v59, 5  ;;  %v3613_v11 = vrot.slane %v3611_v33, 4  ;;  %v3617_v30 = vshll.u32 %v3251_v58, 16 }
 0x284   : > { %v7834_v40 = vpop.permute.xlu0 %4201  ;;  %v3790_v5 = vsel %vm5580_vm13, %v3788_v55, %v3789_v50  ;;  %v3603_v27 = vrot.slane %v3601_v63, 5  ;;  %v3587_v33 = vshrl.u32 %v7803_v24, 16  ;;  %v8464_v63 = vld [vmem:[#allocation10_spill] sm:$0xff] }
 0x285   : > { %v3787_v37 = vsel %vm5580_vm13, %v5152_v42, %v3786_v22  ;;  %v3614_v2 = vor.u32 %v3613_v11, %v3609_v45 }
 0x286   : > { %v7836_v48 = vpop.permute.xlu1 %4096  ;;  %v7904_v10 = vld [vmem:[#allocation3 + $0xc0] sm:$0xf] }
 0x287   : > { %3993 = vrot.lane.b32.xlu1 %v5185_v20, %s5439_s21  ;;  %4162 = vrot.lane.b32.xlu0 %v8459_v39, %s5444_s11  ;;  %v3797_v20 = vsel %vm5580_vm13, %v3795_v0, %v3796_v29  ;;  %v3619_v0 = vrot.slane %v3617_v30, 5 }
 0x288   : > { %v7842_v6 = vpop.permute.xlu0 %4098  ;;  %v7862_v57 = vcombine.low %v3794_v4, %v3797_v20  ;;  %v7898_v46 = vld [vmem:[#allocation3 + $0xc4] sm:$0xf]  ;;  %v4279_v20 = vsel %vm2103_vm8, %v8462_v28, %v7828_v3  ;;  %v3577_v3 = vshll.u32 %v7816_v15, 16 }
 0x289   : > { %v7912_v29 = vcombine.low %v7904_v10, %v7898_v46  ;;  %v7942_v42 = vld [vmem:[#allocation3 + $0xb8] sm:$0xf] }
 0x28a   : > { %v7844_v16 = vpop.permute.xlu1 %4166 }
 0x28b   : > { %4108 = vrot.lane.b32.xlu1 %v7825_v31, %s5443_s10  ;;  %4197 = vrot.lane.b32.xlu0 %v8462_v28, %s5442_s9  ;;  %v4320_v28 = vsel %vm2235_vm5, %v4279_v20, %v7814_v62 }
 0x28c   : > { %v3980_v53 = vpop.permute.xlu0 %3979 }
 0x28d   : > { %v4276_v39 = vsel %vm2103_vm8, %v7292_v18, %v3980_v53  ;;  %v7888_v18 = vcombine.low %v3787_v37, %v3790_v5  ;;  %v3589_v5 = vrot.slane %v3587_v33, 4  ;;  %v3579_v37 = vrot.slane %v3577_v3, 5 }
 0x28e   : > { %v7860_v36 = vpop.permute.xlu1 %4063  ;;  %v4318_v54 = vsel %vm2235_vm5, %v4276_v39, %v7756_v56  ;;  %v3615_v56 = vrot.slane %v3614_v2, 4  ;;  %v3815_v33 = vshll.u32 %v7898_v46, 16  ;;  %v3635_v3 = vshrl.u32 %v7942_v42, 16 }
 0x28f   : > { %3991 = vrot.lane.b32.xlu1 %v7655_v52, %s5439_s21  ;;  %4232 = vrot.lane.b32.xlu0 %v8463_v60, %s5445_s24  ;;  %v3598_v52 = vshrl.u32 %v7739_v9, 16  ;;  %v4351_v8 = vsel %vm4339_vm15, %v4318_v54, %v7711_v35 }
 0x290   : > { %v7868_v25 = vpop.permute.xlu0 %4168  ;;  %v4384_v19 = vsel %vm4372_vm0, %v4351_v8, %v7786_v17  ;;  %v3620_v53 = vsel %vm5636_vm14, %v3615_v56, %v3619_v0  ;;  %v3593_v8 = vshll.u32 %v7864_v23, 16 }
 0x291   : > { %v3600_v9 = vrot.slane %v3598_v52, 4  ;;  %v4417_v44 = vsel %vm4405_vm9, %v4384_v19, %v7793_v49  ;;  %v3583_v49 = vshll.u32 %v7803_v24, 16  ;;  %v3574_v52 = vshrl.u32 %v7816_v15, 16  ;;  %v7947_v15 = vld [vmem:[#allocation3 + $0xb4] sm:$0xf] }
 0x292   : > { %v4237_v1 = vpop.permute.xlu1 %4236  ;;  %v4450_v4 = vsel %vm4438_vm1, %v4417_v44, %v7801_v12  ;;  %v4353_v12 = vsel %vm4339_vm15, %v4320_v28, %v7836_v48  ;;  %v3595_v0 = vrot.slane %v3593_v8, 5 }
 0x293   : > { %4180 = vrot.lane.b32.xlu1 %v7862_v57, %s5444_s11  ;;  %v3604_v34 = vor.u32 %v3603_v27, %v3600_v9  ;;  %v3585_v39 = vrot.slane %v3583_v49, 5  ;;  %v3576_v11 = vrot.slane %v3574_v52, 4  ;;  %v7955_v27 = vcombine.low %v7947_v15, %v7942_v42  ;;  %v3254_v52 = vld [vmem:[#allocation3 + $0xbc] sm:$0x1] }
 0x294   : > { %v7886_v41 = vpop.permute.xlu0 %4065  ;;  %v3809_v49 = vshll.u32 %v7904_v10, 16 }
 0x295   : > { %v3605_v13 = vrot.slane %v3604_v34, 4  ;;  %v3590_v2 = vor.u32 %v3589_v5, %v3585_v39  ;;  %v8466_v34 = vld [vmem:[#allocation8_spill] sm:$0xff]  ;;  %v3631_v5 = vshll.u32 %v7942_v42, 16 }
 0x296   : > { %v7894_v43 = vpop.permute.xlu1 %4133 }
 0x297   : > { %4077 = vrot.lane.b32.xlu1 %v7862_v57, %s5438_s18  ;;  %v3610_v17 = vsel %vm5636_vm14, %v3605_v13, %v3609_v45  ;;  %v3591_v56 = vrot.slane %v3590_v2, 4 }
 0x298   : > { %v5187_v60 = vcombine.low %v3610_v17, %v3620_v53 }
 0x299   : > { %v3596_v44 = vsel %vm5636_vm14, %v3591_v56, %v3595_v0  ;;  %v3633_v56 = vrot.slane %v3631_v5, 5 }
 0x29b   : > { %4178 = vrot.lane.b32.xlu1 %v7888_v18, %s5444_s11 }
 0x29d   : > { %v7896_v26 = vpop.permute.xlu0 %4205 }
 0x29e   : > { %v7906_v35 = vpop.permute.xlu1 %4203 }
 0x29f   : > { %4075 = vrot.lane.b32.xlu1 %v7888_v18, %s5438_s18 }
 0x2a1   : > { %v7908_v58 = vpop.permute.xlu0 %4102 }
 0x2a2   : > { %v7930_v59 = vpop.permute.xlu1 %3985 }
 0x2a3   : > { %4217 = vrot.lane.b32.xlu1 %v7912_v29, %s5442_s9 }
 0x2a5   : > { %v4235_v22 = vpop.permute.xlu0 %4234 }
 0x2a6   : > { %v4488_v55 = vsel %vm4471_vm4, %v4450_v4, %v4235_v22  ;;  %v7951_v48 = vpop.permute.xlu1 %4100  ;;  %v3800_v4 = vrot.slane %v7942_v42, 5 }
 0x2a7   : > { %4248 = vrot.lane.b32.xlu1 %v5187_v60, %s5445_s24  ;;  %4720 = vmatmul.mubr.bf16.vlgmr.msra.gmra.mrb[0].mxu1 %v4488_v55 }
 0x2a8   : > { %5227 = vmatprep.mubr.msk.bf16.mxu1 %vm2103_vm8, %v8464_v63 }
 0x2a9   : > { %v4132_v50 = vpop.permute.xlu0 %4131 }
 0x2aa   : > { %v4386_v24 = vsel %vm4372_vm0, %v4353_v12, %v4132_v50  ;;  %v7965_v19 = vpop.permute.xlu1 %4170  ;;  %v3802_v12 = vrot.slane %v3800_v4, 4 }
 0x2ab   : > { %v4419_v45 = vsel %vm4405_vm9, %v4386_v24, %v7844_v16  ;;  %4145 = vrot.lane.b32.xlu1 %v5187_v60, %s5446_s12  ;;  %v8465_v16 = vld [vmem:[#allocation13_spill] sm:$0xff]  ;;  %v3817_v24 = vrot.slane %v3815_v33, 5 }
 0x2ac   : > { %v4452_v62 = vsel %vm4438_vm1, %v4419_v45, %v7834_v40  ;;  %v3580_v40 = vor.u32 %v3579_v37, %v3576_v11  ;;  %v3622_v45 = vshrl.u32 %v7947_v15, 16  ;;  %v8003_v11 = vld [vmem:[#allocation3 + $0xc8] sm:$0x1] }
 0x2ad   : > { %v3984_v9 = vpop.permute.xlu0 %3983  ;;  %v4491_v54 = vsel %vm4471_vm4, %v4452_v62, %v4237_v1  ;;  %v3625_v62 = vshll.u32 %v7947_v15, 16  ;;  %v3825_v0 = vshll.u32 %v8003_v11, 16 }
 0x2ae   : > { %v4282_v30 = vsel %vm2103_vm8, %v8466_v34, %v3984_v9  ;;  %v3581_v1 = vrot.slane %v3580_v40, 4  ;;  %v7980_v20 = vpop.permute.xlu1 %4067  ;;  %v3811_v9 = vrot.slane %v3809_v49, 5  ;;  %v5154_v40 = vrot.slane %v7947_v15, 9  ;;  %v8468_v15 = vld [vmem:[#allocation14_spill] sm:$0xff] }
 0x2af   : > { %4215 = vrot.lane.b32.xlu1 %v7955_v27, %s5442_s9  ;;  %4728 = vmatmul.mubr.bf16.gmra.mrb[4].mxu1 %v4491_v54  ;;  %v4322_v53 = vsel %vm2235_vm5, %v4282_v30, %v7860_v36  ;;  %v3819_v36 = vshrl.u32 %v7898_v46, 16  ;;  %v8467_v54 = vld [vmem:[#allocation9_spill] sm:$0xff]  ;;  %v3827_v49 = vrot.slane %v3825_v0, 5 }
 0x2b0   : > { %5228 = vmatprep.mubr.msk.bf16.mxu1 %vm2103_vm8, %v8465_v16  ;;  %v4355_v23 = vsel %vm4339_vm15, %v4322_v53, %v7842_v6  ;;  %v3586_v17 = vsel %vm5636_vm14, %v3581_v1, %v3585_v39  ;;  %v3806_v6 = vshrl.u32 %v7904_v10, 16  ;;  %v4285_v2 = vsel %vm2103_vm8, %v8467_v54, %v7930_v59 }
 0x2b1   : > { %v7967_v13 = vpop.permute.xlu0 %4172  ;;  %v4388_v55 = vsel %vm4372_vm0, %v4355_v23, %v7894_v43  ;;  %v3821_v39 = vrot.slane %v3819_v36, 4  ;;  %v3803_v43 = vrot.slane %v3254_v52, 5  ;;  %v3637_v1 = vrot.slane %v3635_v3, 4 }
 0x2b2   : > { %v4421_v50 = vsel %vm4405_vm9, %v4388_v55, %v7868_v25  ;;  %v3808_v37 = vrot.slane %v3806_v6, 4  ;;  %v3801_v59 = vsel %vm5580_vm13, %v5154_v40, %v3800_v4  ;;  %v3627_v23 = vrot.slane %v3625_v62, 5 }
 0x2b3   : > { %3997 = vrot.lane.b32.xlu1 %v5187_v60, %s5439_s21  ;;  %v5186_v60 = vcombine.low %v3586_v17, %v3596_v44  ;;  %v4454_v42 = vsel %vm4438_vm1, %v4421_v50, %v7906_v35  ;;  %v3804_v8 = vsel %vm5580_vm13, %v3802_v12, %v3803_v43  ;;  %v3822_v30 = vor.u32 %v3821_v39, %v3817_v24 }
 0x2b4   : > { %v4324_v35 = vsel %vm2235_vm5, %v4285_v2, %v7886_v41  ;;  %v3812_v53 = vor.u32 %v3811_v9, %v3808_v37  ;;  %v3624_v44 = vrot.slane %v3622_v45, 4  ;;  %v8024_v33 = vcombine.low %v3801_v59, %v3804_v8  ;;  %v8469_v45 = vld [vmem:[#allocation12_spill] sm:$0xff]  ;;  %v8061_v59 = vld [vmem:[#allocation3 + $0xcc] sm:$0xf] }
 0x2b5   : > { %v7982_v22 = vpop.permute.xlu0 %4069  ;;  %v4357_v17 = vsel %vm4339_vm15, %v4324_v35, %v7951_v48  ;;  %v3823_v55 = vrot.slane %v3822_v30, 4  ;;  %v3638_v6 = vor.u32 %v3637_v1, %v3633_v56  ;;  %v3641_v50 = vshll.u32 %v3254_v52, 16  ;;  %v8065_v35 = vld [vmem:[#allocation3 + $0xd0] sm:$0xf] }
 0x2b6   : > { %v3813_v12 = vrot.slane %v3812_v53, 4  ;;  %v3628_v48 = vor.u32 %v3627_v23, %v3624_v44  ;;  %v3853_v53 = vshrl.u32 %v8065_v35, 16  ;;  %v3849_v44 = vshll.u32 %v8065_v35, 16 }
 0x2b7   : > { %4112 = vrot.lane.b32.xlu1 %v7955_v27, %s5443_s10  ;;  %v3639_v37 = vrot.slane %v3638_v6, 4  ;;  %v3643_v2 = vrot.slane %v3641_v50, 5 }
 0x2b8   : > { %v3818_v52 = vsel %vm5636_vm14, %v3813_v12, %v3817_v24  ;;  %v3629_v54 = vrot.slane %v3628_v48, 4  ;;  %v3855_v6 = vrot.slane %v3853_v53, 4  ;;  %v3837_v12 = vrot.slane %v8003_v11, 5 }
 0x2b9   : > { %v3644_v40 = vsel %vm5636_vm14, %v3639_v37, %v3643_v2  ;;  %v8470_v37 = vld [vmem:[#allocation11_spill] sm:$0xff] }
 0x2bb   : > { %4246 = vrot.lane.b32.xlu1 %v5186_v60, %s5445_s24 }
 0x2bd   : > { %v7993_v28 = vpop.permute.xlu1 %4106  ;;  %v7995_v63 = vpop.permute.xlu0 %4209 }
 0x2bf   : > { %4143 = vrot.lane.b32.xlu1 %v5186_v60, %s5446_s12 }
 0x2c1   : > { %v4241_v25 = vpop.permute.xlu1 %4240  ;;  %v4239_v16 = vpop.permute.xlu0 %4238 }
 0x2c2   : > { %v4494_v34 = vsel %vm4471_vm4, %v4454_v42, %v4239_v16 }
 0x2c3   : > { %3995 = vrot.lane.b32.xlu1 %v5186_v60, %s5439_s21  ;;  %4736 = vmatmul.mubr.bf16.gmra.mrb[8].mxu1 %v4494_v34 }
 0x2c4   : > { %5229 = vmatprep.mubr.msk.bf16.mxu1 %vm2103_vm8, %v8468_v15  ;;  %v3843_v15 = vshll.u32 %v8061_v59, 16 }
 0x2c5   : > { %v4138_v36 = vpop.permute.xlu1 %4137  ;;  %v4136_v60 = vpop.permute.xlu0 %4135 }
 0x2c6   : > { %v4390_v4 = vsel %vm4372_vm0, %v4357_v17, %v4136_v60  ;;  %v3834_v17 = vrot.slane %v7898_v46, 5  ;;  %v3845_v60 = vrot.slane %v3843_v15, 5  ;;  %v5155_v46 = vrot.slane %v7904_v10, 9 }
 0x2c7   : > { %v4423_v41 = vsel %vm4405_vm9, %v4390_v4, %v7965_v19  ;;  %4182 = vrot.lane.b32.xlu1 %v8024_v33, %s5444_s11  ;;  %v3828_v19 = vsel %vm5636_vm14, %v3823_v55, %v3827_v49  ;;  %v8076_v4 = vld [vmem:[#allocation3 + $0xd4] sm:$0x1]  ;;  %v3851_v55 = vrot.slane %v3849_v44, 5 }
 0x2c8   : > { %v4456_v3 = vsel %vm4438_vm1, %v4423_v41, %v7896_v26  ;;  %v5206_v42 = vcombine.low %v3818_v52, %v3828_v19  ;;  %v3859_v50 = vshll.u32 %v8076_v4, 16 }
 0x2c9   : > { %v4208_v39 = vpop.permute.xlu1 %4207  ;;  %v3988_v5 = vpop.permute.xlu0 %3987  ;;  %v4497_v43 = vsel %vm4471_vm4, %v4456_v3, %v4241_v25  ;;  %v3836_v3 = vrot.slane %v3834_v17, 4 }
 0x2ca   : > { %v4288_v62 = vsel %vm2103_vm8, %v8469_v45, %v3988_v5 }
 0x2cb   : > { %v4326_v9 = vsel %vm2235_vm5, %v4288_v62, %v7980_v20  ;;  %4079 = vrot.lane.b32.xlu1 %v8024_v33, %s5438_s18  ;;  %4744 = vmatmul.mubr.bf16.gmra.mrb[12].mxu1 %v4497_v43  ;;  %v3838_v62 = vsel %vm5580_vm13, %v3836_v3, %v3837_v12 }
 0x2cc   : > { %v4359_v26 = vsel %vm4339_vm15, %v4326_v9, %v7908_v58  ;;  %5230 = vmatprep.mubr.msk.bf16.mxu1 %vm2103_vm8, %v7717_v32  ;;  %v3634_v32 = vsel %vm5636_vm14, %v3629_v54, %v3633_v56  ;;  %v3840_v56 = vshrl.u32 %v8061_v59, 16 }
 0x2cd   : > { %v3990_v25 = vpop.permute.xlu1 %3989  ;;  %v4091_v16 = vpop.permute.xlu0 %4090  ;;  %v4392_v20 = vsel %vm4372_vm0, %v4359_v26, %v4138_v36  ;;  %v5188_v34 = vcombine.low %v3634_v32, %v3644_v40  ;;  %v3835_v26 = vsel %vm5580_vm13, %v5155_v46, %v3834_v17 }
 0x2ce   : > { %v4425_v8 = vsel %vm4405_vm9, %v4392_v20, %v7967_v13  ;;  %v3842_v36 = vrot.slane %v3840_v56, 4  ;;  %v4347_v45 = vsel %vm4339_vm15, %v7797_v47, %v4091_v16  ;;  %v4291_v9 = vsel %vm2103_vm8, %v8470_v37, %v3990_v25 }
 0x2cf   : > { %4252 = vrot.lane.b32.xlu1 %v5206_v42, %s5445_s24  ;;  %v4458_v30 = vsel %vm4438_vm1, %v4425_v8, %v4208_v39  ;;  %v3856_v39 = vor.u32 %v3855_v6, %v3851_v55  ;;  %v8097_v16 = vcombine.low %v3835_v26, %v3838_v62  ;;  %v4328_v20 = vsel %vm2235_vm5, %v4291_v9, %v7982_v22  ;;  %v8471_v8 = vld [vmem:[#allocation7_spill] sm:$0xff] }
 0x2d0   : > { %v3846_v48 = vor.u32 %v3845_v60, %v3842_v36  ;;  %v5208_v25 = vcombine.low %v8061_v59, %v8065_v35 }
 0x2d1   : > { %v4105_v58 = vpop.permute.xlu1 %4104  ;;  %v4243_v24 = vpop.permute.xlu0 %4242  ;;  %v3857_v52 = vrot.slane %v3856_v39, 4 }
 0x2d2   : > { %v4500_v1 = vsel %vm4471_vm4, %v4458_v30, %v4243_v24  ;;  %v3847_v11 = vrot.slane %v3846_v48, 4  ;;  %v4361_v40 = vsel %vm4339_vm15, %v4328_v20, %v4105_v58  ;;  %v8153_v20 = vld [vmem:[%s8388_s4] ss:$0 sm:$0xff] }
 0x2d3   : > { %4250 = vrot.lane.b32.xlu1 %v5188_v34, %s5445_s24  ;;  %4752 = vmatmul.mubr.bf16.gmra.mrb[16].mxu1 %v4500_v1 }
 0x2d4   : > { %5231 = vmatprep.mubr.msk.bf16.mxu1 %vm2103_vm8, %v7684_v7  ;;  %v3852_v32 = vsel %vm5636_vm14, %v3847_v11, %v3851_v55 }
 0x2d5   : > { %v8063_v13 = vpop.permute.xlu1 %4176  ;;  %v4140_v0 = vpop.permute.xlu0 %4139 }
 0x2d6   : > { %v4394_v22 = vsel %vm4372_vm0, %v4361_v40, %v4140_v0 }
 0x2d7   : > { %4147 = vrot.lane.b32.xlu1 %v5188_v34, %s5446_s12 }
 0x2d9   : > { %v8072_v23 = vpop.permute.xlu1 %4073  ;;  %v4126_v7 = vpop.permute.xlu0 %4125 }
 0x2da   : > { %v4380_v19 = vsel %vm4372_vm0, %v4347_v45, %v4126_v7 }
 0x2db   : > { %3999 = vrot.lane.b32.xlu1 %v5188_v34, %s5439_s21 }
 0x2dd   : > { %v4175_v41 = vpop.permute.xlu1 %4174  ;;  %v4161_v49 = vpop.permute.xlu0 %4160 }
 0x2de   : > { %v4413_v10 = vsel %vm4405_vm9, %v4380_v19, %v4161_v49  ;;  %v4427_v1 = vsel %vm4405_vm9, %v4394_v22, %v4175_v41 }
 0x2df   : > { %4114 = vrot.lane.b32.xlu1 %v7912_v29, %s5443_s10  ;;  %v3861_v29 = vrot.slane %v3859_v50, 5  ;;  %v4460_v53 = vsel %vm4438_vm1, %v4427_v1, %v7995_v63 }
 0x2e1   : > { %v4072_v5 = vpop.permute.xlu1 %4071  ;;  %v4196_v43 = vpop.permute.xlu0 %4195  ;;  %v3862_v24 = vsel %vm5636_vm14, %v3857_v52, %v3861_v29 }
 0x2e2   : > { %v4446_v47 = vsel %vm4438_vm1, %v4413_v10, %v4196_v43  ;;  %v5209_v56 = vcombine.low %v3852_v32, %v3862_v24 }
 0x2e3   : > { %4149 = vrot.lane.b32.xlu1 %v5206_v42, %s5446_s12 }
 0x2e5   : > { %v8095_v54 = vpop.permute.xlu1 %4213  ;;  %v4231_v2 = vpop.permute.xlu0 %4230 }
 0x2e6   : > { %v4482_v42 = vsel %vm4471_vm4, %v4446_v47, %v4231_v2  ;;  %v8472_v47 = vld [vmem:[#allocation15_spill] sm:$0xff] }
 0x2e7   : > { %4184 = vrot.lane.b32.xlu1 %v8097_v16, %s5444_s11  ;;  %4704 = vmatmul.mubr.bf16.gmra.mrb[44].mxu0 %v4482_v42  ;;  %s5242_s11 = sshll.u32 %s8474_s28, 8 }
 0x2e8   : > { %5225 = vmatprep.mubr.msk.bf16.mxu0 %vm2103_vm8, %v8471_v8  ;;  %s8182_s30 = scalar_lea.vmem %s8392_s8, %s5242_s11 }
 0x2e9   : > { %v8114_v34 = vpop.permute.xlu1 %4110  ;;  %v3978_v30 = vpop.permute.xlu0 %3977 }
 0x2ea   : > { %v4273_v55 = vsel %vm2103_vm8, %v7065_v14, %v3978_v30  ;;  %v8164_v30 = vld [vmem:[%s8389_s5] ss:$0 sm:$0xff] }
 0x2eb   : > { %4219 = vrot.lane.b32.xlu1 %v5208_v25, %s5442_s9 }
 0x2ed   : > { %v4245_v58 = vpop.permute.xlu1 %4244  ;;  %v4058_v15 = vpop.permute.xlu0 %4057 }
 0x2ee   : > { %v4503_v44 = vsel %vm4471_vm4, %v4460_v53, %v4245_v58  ;;  %v4316_v6 = vsel %vm2235_vm5, %v4273_v55, %v4058_v15  ;;  %v8173_v53 = vld [vmem:[%s8390_s6] ss:$0 sm:$0xff] }
 0x2ef   : > { %4254 = vrot.lane.b32.xlu1 %v5209_v56, %s5445_s24  ;;  %4760 = vmatmul.mubr.bf16.gmra.mrb[20].mxu1 %v4503_v44 }
 0x2f0   : > { %5232 = vmatprep.mubr.msk.bf16.mxu1 %vm2103_vm8, %v7888_v18 }
 0x2f1   : > { %v4142_v51 = vpop.permute.xlu1 %4141  ;;  %v4093_v0 = vpop.permute.xlu0 %4092 }
 0x2f2   : > { %v4349_v49 = vsel %vm4339_vm15, %v4316_v6, %v4093_v0 }
 0x2f5   : > { %v4212_v7 = vpop.permute.xlu1 %4211  ;;  %v4128_v17 = vpop.permute.xlu0 %4127 }
 0x2f6   : > { %v4382_v3 = vsel %vm4372_vm0, %v4349_v49, %v4128_v17 }
 0x2f9   : > { %v3994_v36 = vpop.permute.xlu1 %3993  ;;  %v4163_v60 = vpop.permute.xlu0 %4162 }
 0x2fa   : > { %v4415_v12 = vsel %vm4405_vm9, %v4382_v3, %v4163_v60 }
 0x2fd   : > { %v4109_v63 = vpop.permute.xlu1 %4108  ;;  %v4198_v41 = vpop.permute.xlu0 %4197 }
 0x2fe   : > { %v4448_v18 = vsel %vm4438_vm1, %v4415_v12, %v4198_v41  ;;  %v3868_v12 = vrot.slane %v8065_v35, 5 }
 0x301   : > { %v3992_v48 = vpop.permute.xlu1 %3991  ;;  %v4233_v50 = vpop.permute.xlu0 %4232 }
 0x302   : > { %v4294_v46 = vsel %vm2103_vm8, %v7629_v21, %v3992_v48  ;;  %v4485_v39 = vsel %vm4471_vm4, %v4448_v18, %v4233_v50  ;;  %v5156_v18 = vrot.slane %v8061_v59, 9 }
 0x303   : > { %v4330_v14 = vsel %vm2235_vm5, %v4294_v46, %v4072_v5  ;;  %4712 = vmatmul.mubr.bf16.gmra.mrb[48].mxu0 %v4485_v39 }
 0x304   : > { %v4363_v43 = vsel %vm4339_vm15, %v4330_v14, %v7993_v28  ;;  %v4297_v28 = vsel %vm2103_vm8, %v8472_v47, %v3994_v36  ;;  %v3870_v14 = vrot.slane %v3868_v12, 4 }
 0x305   : > { %v4181_v45 = vpop.permute.xlu1 %4180  ;;  %v4396_v62 = vsel %vm4372_vm0, %v4363_v43, %v4142_v51  ;;  %v4332_v25 = vsel %vm2235_vm5, %v4297_v28, %v8072_v23 }
 0x306   : > { %v4429_v19 = vsel %vm4405_vm9, %v4396_v62, %v8063_v13  ;;  %v4365_v8 = vsel %vm4339_vm15, %v4332_v25, %v4109_v63 }
 0x307   : > { %v4462_v42 = vsel %vm4438_vm1, %v4429_v19, %v4212_v7 }
 0x309   : > { %v8140_v11 = vpop.permute.xlu1 %4077 }
 0x30d   : > { %v4179_v29 = vpop.permute.xlu1 %4178 }
 0x311   : > { %v4076_v37 = vpop.permute.xlu1 %4075 }
 0x315   : > { %v8142_v9 = vpop.permute.xlu1 %4217 }
 0x319   : > { %v4249_v21 = vpop.permute.xlu1 %4248 }
 0x31d   : > { %v4146_v10 = vpop.permute.xlu1 %4145 }
 0x321   : > { %v4216_v26 = vpop.permute.xlu1 %4215 }
 0x325   : > { %v3998_v5 = vpop.permute.xlu1 %3997 }
 0x326   : > { %v4303_v48 = vsel %vm2103_vm8, %v7744_v38, %v3998_v5 }
 0x327   : > { %v4336_v59 = vsel %vm2235_vm5, %v4303_v48, %v8140_v11 }
 0x329   : > { %v8144_v52 = vpop.permute.xlu1 %4112 }
 0x32d   : > { %v4247_v2 = vpop.permute.xlu1 %4246 }
 0x32e   : > { %v4506_v13 = vsel %vm4471_vm4, %v4462_v42, %v4247_v2 }
 0x32f   : > { %4768 = vmatmul.mubr.bf16.gmra.mrb[24].mxu1 %v4506_v13 }
 0x330   : > { %v4681_v40 = vpop.f32.mrb[32].mxu0  ;;  %5233 = vmatprep.mubr.msk.bf16.mxu1 %vm2103_vm8, %v7862_v57 }
 0x331   : > { %v4682_v32 = vadd.f32 %v8153_v20, %v4681_v40  ;;  %v4144_v24 = vpop.permute.xlu1 %4143  ;;  %v4683_v22 = vpop.f32.mrb[33].mxu0 }
 0x332   : > { %v4398_v1 = vsel %vm4372_vm0, %v4365_v8, %v4144_v24  ;;  %v4684_v56 = vpop.f32.mrb[34].mxu0 }
 0x333   : > { %v4808_v23 = vmax.f32 %v4682_v32, 0.0  ;;  %v4431_v58 = vsel %vm4405_vm9, %v4398_v1, %v4179_v29  ;;  %v4685_v57 = vadd.f32 %v8153_v20, %v4684_v56  ;;  %v4686_v15 = vpop.f32.mrb[35].mxu0 }
 0x334   : > { %v4464_v44 = vsel %vm4438_vm1, %v4431_v58, %v8095_v54 }
 0x335   : > { %v4847_v51 = vmul.f32 %v8164_v30, %v4808_v23  ;;  %v4809_v0 = vmax.f32 %v4685_v57, 0.0  ;;  %v3996_v7 = vpop.permute.xlu1 %3995  ;;  %v4509_v17 = vsel %vm4471_vm4, %v4464_v44, %v4249_v21  ;;  %v3869_v21 = vsel %vm5580_vm13, %v5156_v18, %v3868_v12 }
 0x336   : > { %v4300_v36 = vsel %vm2103_vm8, %v7825_v31, %v3996_v7 }
 0x337   : > { %v4886_v60 = vadd.f32 %v8173_v53, %v4847_v51  ;;  %v4848_v54 = vmul.f32 %v8164_v30, %v4809_v0  ;;  %4776 = vmatmul.mubr.bf16.gmra.mrb[28].mxu1 %v4509_v17  ;;  %v4334_v6 = vsel %vm2235_vm5, %v4300_v36, %v4076_v37 }
 0x338   : > { %5234 = vmatprep.mubr.msk.bf16.mxu1 %vm2103_vm8, %v8024_v33  ;;  %v4367_v31 = vsel %vm4339_vm15, %v4334_v6, %v8114_v34  ;;  %v3871_v34 = vrot.slane %v8076_v4, 5  ;;  %v4369_v4 = vsel %vm4339_vm15, %v4336_v59, %v8144_v52 }
 0x339   : > { %4918 = vst.msk [vmem:[%s8182_s30] sm:$0xff] %vm2103_vm8, %v4886_v60  ;;  %v4887_v55 = vadd.f32 %v8173_v53, %v4848_v54  ;;  %v4183_v63 = vpop.permute.xlu1 %4182  ;;  %v4400_v49 = vsel %vm4372_vm0, %v4367_v31, %v4146_v10 }
 0x33a   : > { %v4433_v33 = vsel %vm4405_vm9, %v4400_v49, %v4181_v45  ;;  %v3872_v10 = vsel %vm5580_vm13, %v3870_v14, %v3871_v34 }
 0x33b   : > { %4919 = vst.msk [vmem:[%s8182_s30 + $0x8] sm:$0xff] %vm2103_vm8, %v4887_v55  ;;  %v4466_v39 = vsel %vm4438_vm1, %v4433_v33, %v4216_v26  ;;  %v5210_v2 = vcombine.low %v3869_v21, %v3872_v10 }
 0x33d   : > { %v4080_v41 = vpop.permute.xlu1 %4079 }
 0x341   : > { %v4253_v3 = vpop.permute.xlu1 %4252 }
 0x345   : > { %v4251_v50 = vpop.permute.xlu1 %4250  ;;  %v4689_v46 = vpop.f32.mrb[36].mxu0 }
 0x346   : > { %v4690_v43 = vadd.f32 %v8153_v20, %v4689_v46  ;;  %v4691_v62 = vpop.f32.mrb[37].mxu0  ;;  %v4512_v19 = vsel %vm4471_vm4, %v4466_v39, %v4251_v50 }
 0x347   : > { %v4692_v35 = vpop.f32.mrb[38].mxu0  ;;  %4784 = vmatmul.mubr.bf16.gmra.mrb[32].mxu1 %v4512_v19 }
 0x348   : > { %v4810_v45 = vmax.f32 %v4690_v43, 0.0  ;;  %v4693_v38 = vadd.f32 %v8153_v20, %v4692_v35  ;;  %v4694_v29 = vpop.f32.mrb[39].mxu0  ;;  %5235 = vmatprep.mubr.msk.bf16.mxu1 %vm2103_vm8, %v8097_v16 }
 0x349   : > { %v4148_v37 = vpop.permute.xlu1 %4147 }
 0x34a   : > { %v4849_v11 = vmul.f32 %v8164_v30, %v4810_v45  ;;  %v4811_v26 = vmax.f32 %v4693_v38, 0.0  ;;  %v4402_v5 = vsel %vm4372_vm0, %v4369_v4, %v4148_v37 }
 0x34b   : > { %v4435_v47 = vsel %vm4405_vm9, %v4402_v5, %v4183_v63 }
 0x34c   : > { %v4888_v16 = vadd.f32 %v8173_v53, %v4849_v11  ;;  %v4850_v28 = vmul.f32 %v8164_v30, %v4811_v26  ;;  %v4468_v52 = vsel %vm4438_vm1, %v4435_v47, %v8142_v9 }
 0x34d   : > { %v4000_v42 = vpop.permute.xlu1 %3999  ;;  %v4697_v13 = vpop.f32.mrb[40].mxu0  ;;  %v4515_v61 = vsel %vm4471_vm4, %v4468_v52, %v4253_v3 }
 0x34e   : > { %4920 = vst.msk [vmem:[%s8182_s30 + $0x10] sm:$0xff] %vm2103_vm8, %v4888_v16  ;;  %v4889_v25 = vadd.f32 %v8173_v53, %v4850_v28  ;;  %v4698_v40 = vadd.f32 %v8153_v20, %v4697_v13  ;;  %v4699_v8 = vpop.f32.mrb[41].mxu0  ;;  %v4306_v0 = vsel %vm2103_vm8, %v7955_v27, %v4000_v42 }
 0x34f   : > { %v4700_v32 = vpop.f32.mrb[42].mxu0  ;;  %4792 = vmatmul.mubr.bf16.gmra.mrb[36].mxu1 %v4515_v61  ;;  %v4338_v7 = vsel %vm2235_vm5, %v4306_v0, %v4080_v41 }
 0x350   : > { %4921 = vst.msk [vmem:[%s8182_s30 + $0x18] sm:$0xff] %vm2103_vm8, %v4889_v25  ;;  %v4812_v24 = vmax.f32 %v4698_v40, 0.0  ;;  %v4701_v9 = vadd.f32 %v8153_v20, %v4700_v32  ;;  %v4702_v22 = vpop.f32.mrb[43].mxu0  ;;  %5236 = vmatprep.mubr.msk.bf16.mxu1 %vm2103_vm8, %v5210_v2 }
 0x351   : > { %v4115_v1 = vpop.permute.xlu1 %4114 }
 0x352   : > { %v4851_v56 = vmul.f32 %v8164_v30, %v4812_v24  ;;  %v4813_v23 = vmax.f32 %v4701_v9, 0.0  ;;  %v4371_v36 = vsel %vm4339_vm15, %v4338_v7, %v4115_v1 }
 0x354   : > { %v4890_v58 = vadd.f32 %v8173_v53, %v4851_v56  ;;  %v4852_v57 = vmul.f32 %v8164_v30, %v4813_v23 }
 0x355   : > { %v4150_v15 = vpop.permute.xlu1 %4149 }
 0x356   : > { %4922 = vst.msk [vmem:[%s8182_s30 + $0x20] sm:$0xff] %vm2103_vm8, %v4890_v58  ;;  %v4891_v44 = vadd.f32 %v8173_v53, %v4852_v57  ;;  %v4404_v60 = vsel %vm4372_vm0, %v4371_v36, %v4150_v15 }
 0x358   : > { %4923 = vst.msk [vmem:[%s8182_s30 + $0x28] sm:$0xff] %vm2103_vm8, %v4891_v44 }
 0x359   : > { %v4185_v51 = vpop.permute.xlu1 %4184 }
 0x35a   : > { %v4437_v54 = vsel %vm4405_vm9, %v4404_v60, %v4185_v51 }
 0x35d   : > { %v4220_v17 = vpop.permute.xlu1 %4219 }
 0x35e   : > { %v4470_v55 = vsel %vm4438_vm1, %v4437_v54, %v4220_v17 }
 0x361   : > { %v4255_v6 = vpop.permute.xlu1 %4254 }
 0x362   : > { %v4518_v63 = vsel %vm4471_vm4, %v4470_v55, %v4255_v6 }
 0x363   : > { %4800 = vmatmul.mubr.bf16.gmra.mrb[40].mxu1 %v4518_v63 }
 0x37a   : > { %v4721_v31 = vpop.f32.mrb[0].mxu1 }
 0x37b   : > { %v4722_v49 = vadd.f32 %v8153_v20, %v4721_v31  ;;  %v4723_v27 = vpop.f32.mrb[1].mxu1 }
 0x37c   : > { %v4724_v41 = vpop.f32.mrb[2].mxu1 }
 0x37d   : > { %v4818_v3 = vmax.f32 %v4722_v49, 0.0  ;;  %v4725_v12 = vadd.f32 %v8153_v20, %v4724_v41  ;;  %v4726_v33 = vpop.f32.mrb[3].mxu1 }
 0x37f   : > { %v4857_v18 = vmul.f32 %v8164_v30, %v4818_v3  ;;  %v4819_v48 = vmax.f32 %v4725_v12, 0.0 }
 0x381   : > { %v4896_v50 = vadd.f32 %v8173_v53, %v4857_v18  ;;  %v4858_v46 = vmul.f32 %v8164_v30, %v4819_v48 }
 0x382   : > { %v4729_v39 = vpop.f32.mrb[4].mxu1 }
 0x383   : > { %4928 = vst.msk [vmem:[%s8182_s30 + $0x50] sm:$0xff] %vm2103_vm8, %v4896_v50  ;;  %v4897_v14 = vadd.f32 %v8173_v53, %v4858_v46  ;;  %v4730_v34 = vadd.f32 %v8153_v20, %v4729_v39  ;;  %v4731_v43 = vpop.f32.mrb[5].mxu1 }
 0x384   : > { %v4732_v62 = vpop.f32.mrb[6].mxu1 }
 0x385   : > { %4929 = vst.msk [vmem:[%s8182_s30 + $0x58] sm:$0xff] %vm2103_vm8, %v4897_v14  ;;  %v4820_v19 = vmax.f32 %v4730_v34, 0.0  ;;  %v4733_v35 = vadd.f32 %v8153_v20, %v4732_v62  ;;  %v4734_v59 = vpop.f32.mrb[7].mxu1 }
 0x387   : > { %v4859_v45 = vmul.f32 %v8164_v30, %v4820_v19  ;;  %v4821_v38 = vmax.f32 %v4733_v35, 0.0 }
 0x389   : > { %v4898_v29 = vadd.f32 %v8173_v53, %v4859_v45  ;;  %v4860_v4 = vmul.f32 %v8164_v30, %v4821_v38 }
 0x38b   : > { %4930 = vst.msk [vmem:[%s8182_s30 + $0x60] sm:$0xff] %vm2103_vm8, %v4898_v29  ;;  %v4899_v37 = vadd.f32 %v8173_v53, %v4860_v4 }
 0x38d   : > { %4931 = vst.msk [vmem:[%s8182_s30 + $0x68] sm:$0xff] %vm2103_vm8, %v4899_v37 }
 0x396   : > { %v4737_v21 = vpop.f32.mrb[8].mxu1 }
 0x397   : > { %v4738_v10 = vadd.f32 %v8153_v20, %v4737_v21  ;;  %v4739_v11 = vpop.f32.mrb[9].mxu1 }
 0x398   : > { %v4740_v26 = vpop.f32.mrb[10].mxu1 }
 0x399   : > { %v4822_v5 = vmax.f32 %v4738_v10, 0.0  ;;  %v4741_v47 = vadd.f32 %v8153_v20, %v4740_v26  ;;  %v4742_v16 = vpop.f32.mrb[11].mxu1 }
 0x39b   : > { %v4861_v28 = vmul.f32 %v8164_v30, %v4822_v5  ;;  %v4823_v52 = vmax.f32 %v4741_v47, 0.0 }
 0x39d   : > { %v4900_v2 = vadd.f32 %v8173_v53, %v4861_v28  ;;  %v4862_v42 = vmul.f32 %v8164_v30, %v4823_v52 }
 0x39e   : > { %v4745_v13 = vpop.f32.mrb[12].mxu1 }
 0x39f   : > { %4932 = vst.msk [vmem:[%s8182_s30 + $0x70] sm:$0xff] %vm2103_vm8, %v4900_v2  ;;  %v4901_v61 = vadd.f32 %v8173_v53, %v4862_v42  ;;  %v4746_v25 = vadd.f32 %v8153_v20, %v4745_v13  ;;  %v4747_v40 = vpop.f32.mrb[13].mxu1 }
 0x3a0   : > { %v4748_v8 = vpop.f32.mrb[14].mxu1 }
 0x3a1   : > { %4933 = vst.msk [vmem:[%s8182_s30 + $0x78] sm:$0xff] %vm2103_vm8, %v4901_v61  ;;  %v4824_v32 = vmax.f32 %v4746_v25, 0.0  ;;  %v4749_v24 = vadd.f32 %v8153_v20, %v4748_v8  ;;  %v4750_v9 = vpop.f32.mrb[15].mxu1 }
 0x3a3   : > { %v4863_v22 = vmul.f32 %v8164_v30, %v4824_v32  ;;  %v4825_v1 = vmax.f32 %v4749_v24, 0.0 }
 0x3a5   : > { %v4902_v56 = vadd.f32 %v8173_v53, %v4863_v22  ;;  %v4864_v23 = vmul.f32 %v8164_v30, %v4825_v1 }
 0x3a6   : > { %v4753_v58 = vpop.f32.mrb[16].mxu1 }
 0x3a7   : > { %4934 = vst.msk [vmem:[%s8182_s30 + $0x80] sm:$0xff] %vm2103_vm8, %v4902_v56  ;;  %v4903_v57 = vadd.f32 %v8173_v53, %v4864_v23  ;;  %v4754_v15 = vadd.f32 %v8153_v20, %v4753_v58  ;;  %v4755_v44 = vpop.f32.mrb[17].mxu1 }
 0x3a8   : > { %v4756_v51 = vpop.f32.mrb[18].mxu1 }
 0x3a9   : > { %4935 = vst.msk [vmem:[%s8182_s30 + $0x88] sm:$0xff] %vm2103_vm8, %v4903_v57  ;;  %v4826_v0 = vmax.f32 %v4754_v15, 0.0  ;;  %v4757_v7 = vadd.f32 %v8153_v20, %v4756_v51  ;;  %v4758_v17 = vpop.f32.mrb[19].mxu1 }
 0x3ab   : > { %v4865_v36 = vmul.f32 %v8164_v30, %v4826_v0  ;;  %v4827_v60 = vmax.f32 %v4757_v7, 0.0 }
 0x3ad   : > { %v4904_v54 = vadd.f32 %v8173_v53, %v4865_v36  ;;  %v4866_v55 = vmul.f32 %v8164_v30, %v4827_v60 }
 0x3af   : > { %4936 = vst.msk [vmem:[%s8182_s30 + $0x90] sm:$0xff] %vm2103_vm8, %v4904_v54  ;;  %v4905_v6 = vadd.f32 %v8173_v53, %v4866_v55 }
 0x3b1   : > { %4937 = vst.msk [vmem:[%s8182_s30 + $0x98] sm:$0xff] %vm2103_vm8, %v4905_v6 }
 0x3ba   : > { %v4705_v63 = vpop.f32.mrb[44].mxu0 }
 0x3bb   : > { %v4706_v31 = vadd.f32 %v8153_v20, %v4705_v63  ;;  %v4707_v49 = vpop.f32.mrb[45].mxu0 }
 0x3bc   : > { %v4708_v27 = vpop.f32.mrb[46].mxu0 }
 0x3bd   : > { %v4814_v41 = vmax.f32 %v4706_v31, 0.0  ;;  %v4709_v3 = vadd.f32 %v8153_v20, %v4708_v27  ;;  %v4710_v12 = vpop.f32.mrb[47].mxu0 }
 0x3bf   : > { %v4853_v33 = vmul.f32 %v8164_v30, %v4814_v41  ;;  %v4815_v18 = vmax.f32 %v4709_v3, 0.0 }
 0x3c1   : > { %v4892_v48 = vadd.f32 %v8173_v53, %v4853_v33  ;;  %v4854_v50 = vmul.f32 %v8164_v30, %v4815_v18 }
 0x3c2   : > { %v4761_v46 = vpop.f32.mrb[20].mxu1 }
 0x3c3   : > { %4924 = vst.msk [vmem:[%s8182_s30 + $0x30] sm:$0xff] %vm2103_vm8, %v4892_v48  ;;  %v4893_v39 = vadd.f32 %v8173_v53, %v4854_v50  ;;  %v4762_v14 = vadd.f32 %v8153_v20, %v4761_v46  ;;  %v4763_v34 = vpop.f32.mrb[21].mxu1 }
 0x3c4   : > { %v4764_v43 = vpop.f32.mrb[22].mxu1 }
 0x3c5   : > { %4925 = vst.msk [vmem:[%s8182_s30 + $0x38] sm:$0xff] %vm2103_vm8, %v4893_v39  ;;  %v4828_v62 = vmax.f32 %v4762_v14, 0.0  ;;  %v4765_v19 = vadd.f32 %v8153_v20, %v4764_v43  ;;  %v4766_v35 = vpop.f32.mrb[23].mxu1 }
 0x3c7   : > { %v4867_v59 = vmul.f32 %v8164_v30, %v4828_v62  ;;  %v4829_v45 = vmax.f32 %v4765_v19, 0.0 }
 0x3c9   : > { %v4906_v38 = vadd.f32 %v8173_v53, %v4867_v59  ;;  %v4868_v29 = vmul.f32 %v8164_v30, %v4829_v45 }
 0x3cb   : > { %4938 = vst.msk [vmem:[%s8182_s30 + $0xa0] sm:$0xff] %vm2103_vm8, %v4906_v38  ;;  %v4907_v4 = vadd.f32 %v8173_v53, %v4868_v29 }
 0x3cd   : > { %4939 = vst.msk [vmem:[%s8182_s30 + $0xa8] sm:$0xff] %vm2103_vm8, %v4907_v4 }
 0x3d6   : > { %v4713_v37 = vpop.f32.mrb[48].mxu0 }
 0x3d7   : > { %v4714_v21 = vadd.f32 %v8153_v20, %v4713_v37  ;;  %v4715_v10 = vpop.f32.mrb[49].mxu0 }
 0x3d8   : > { %v4716_v11 = vpop.f32.mrb[50].mxu0 }
 0x3d9   : > { %v4816_v26 = vmax.f32 %v4714_v21, 0.0  ;;  %v4717_v5 = vadd.f32 %v8153_v20, %v4716_v11  ;;  %v4718_v47 = vpop.f32.mrb[51].mxu0 }
 0x3db   : > { %v4855_v16 = vmul.f32 %v8164_v30, %v4816_v26  ;;  %v4817_v28 = vmax.f32 %v4717_v5, 0.0 }
 0x3dd   : > { %v4894_v52 = vadd.f32 %v8173_v53, %v4855_v16  ;;  %v4856_v2 = vmul.f32 %v8164_v30, %v4817_v28 }
 0x3df   : > { %4926 = vst.msk [vmem:[%s8182_s30 + $0x40] sm:$0xff] %vm2103_vm8, %v4894_v52  ;;  %v4895_v42 = vadd.f32 %v8173_v53, %v4856_v2 }
 0x3e1   : > { %4927 = vst.msk [vmem:[%s8182_s30 + $0x48] sm:$0xff] %vm2103_vm8, %v4895_v42 }
 0x402   : > { %v4769_v13 = vpop.f32.mrb[24].mxu1 }
 0x403   : > { %v4770_v61 = vadd.f32 %v8153_v20, %v4769_v13  ;;  %v4771_v25 = vpop.f32.mrb[25].mxu1 }
 0x404   : > { %v4772_v40 = vpop.f32.mrb[26].mxu1 }
 0x405   : > { %v4830_v8 = vmax.f32 %v4770_v61, 0.0  ;;  %v4773_v32 = vadd.f32 %v8153_v20, %v4772_v40  ;;  %v4774_v24 = vpop.f32.mrb[27].mxu1 }
 0x407   : > { %v4869_v9 = vmul.f32 %v8164_v30, %v4830_v8  ;;  %v4831_v22 = vmax.f32 %v4773_v32, 0.0 }
 0x409   : > { %v4908_v1 = vadd.f32 %v8173_v53, %v4869_v9  ;;  %v4870_v56 = vmul.f32 %v8164_v30, %v4831_v22 }
 0x40a   : > { %v4777_v23 = vpop.f32.mrb[28].mxu1 }
 0x40b   : > { %4940 = vst.msk [vmem:[%s8182_s30 + $0xb0] sm:$0xff] %vm2103_vm8, %v4908_v1  ;;  %v4909_v58 = vadd.f32 %v8173_v53, %v4870_v56  ;;  %v4778_v57 = vadd.f32 %v8153_v20, %v4777_v23  ;;  %v4779_v15 = vpop.f32.mrb[29].mxu1 }
 0x40c   : > { %v4780_v44 = vpop.f32.mrb[30].mxu1 }
 0x40d   : > { %4941 = vst.msk [vmem:[%s8182_s30 + $0xb8] sm:$0xff] %vm2103_vm8, %v4909_v58  ;;  %v4832_v51 = vmax.f32 %v4778_v57, 0.0  ;;  %v4781_v0 = vadd.f32 %v8153_v20, %v4780_v44  ;;  %v4782_v7 = vpop.f32.mrb[31].mxu1 }
 0x40f   : > { %v4871_v17 = vmul.f32 %v8164_v30, %v4832_v51  ;;  %v4833_v36 = vmax.f32 %v4781_v0, 0.0 }
 0x411   : > { %v4910_v60 = vadd.f32 %v8173_v53, %v4871_v17  ;;  %v4872_v54 = vmul.f32 %v8164_v30, %v4833_v36 }
 0x413   : > { %4942 = vst.msk [vmem:[%s8182_s30 + $0xc0] sm:$0xff] %vm2103_vm8, %v4910_v60  ;;  %v4911_v55 = vadd.f32 %v8173_v53, %v4872_v54 }
 0x415   : > { %4943 = vst.msk [vmem:[%s8182_s30 + $0xc8] sm:$0xff] %vm2103_vm8, %v4911_v55 }
 0x41a   : > { %v4785_v6 = vpop.f32.mrb[32].mxu1 }
 0x41b   : > { %v4786_v63 = vadd.f32 %v8153_v20, %v4785_v6  ;;  %v4787_v31 = vpop.f32.mrb[33].mxu1 }
 0x41c   : > { %v4788_v49 = vpop.f32.mrb[34].mxu1 }
 0x41d   : > { %v4834_v27 = vmax.f32 %v4786_v63, 0.0  ;;  %v4789_v41 = vadd.f32 %v8153_v20, %v4788_v49  ;;  %v4790_v3 = vpop.f32.mrb[35].mxu1 }
 0x41f   : > { %v4873_v12 = vmul.f32 %v8164_v30, %v4834_v27  ;;  %v4835_v33 = vmax.f32 %v4789_v41, 0.0 }
 0x421   : > { %v4912_v18 = vadd.f32 %v8173_v53, %v4873_v12  ;;  %v4874_v48 = vmul.f32 %v8164_v30, %v4835_v33 }
 0x422   : > { %v4793_v50 = vpop.f32.mrb[36].mxu1 }
 0x423   : > { %4944 = vst.msk [vmem:[%s8182_s30 + $0xd0] sm:$0xff] %vm2103_vm8, %v4912_v18  ;;  %v4913_v46 = vadd.f32 %v8173_v53, %v4874_v48  ;;  %v4794_v39 = vadd.f32 %v8153_v20, %v4793_v50  ;;  %v4795_v14 = vpop.f32.mrb[37].mxu1 }
 0x424   : > { %v4796_v34 = vpop.f32.mrb[38].mxu1 }
 0x425   : > { %4945 = vst.msk [vmem:[%s8182_s30 + $0xd8] sm:$0xff] %vm2103_vm8, %v4913_v46  ;;  %v4836_v43 = vmax.f32 %v4794_v39, 0.0  ;;  %v4797_v62 = vadd.f32 %v8153_v20, %v4796_v34  ;;  %v4798_v19 = vpop.f32.mrb[39].mxu1 }
 0x427   : > { %v4875_v35 = vmul.f32 %v8164_v30, %v4836_v43  ;;  %v4837_v59 = vmax.f32 %v4797_v62, 0.0 }
 0x429   : > { %v4914_v45 = vadd.f32 %v8173_v53, %v4875_v35  ;;  %v4876_v38 = vmul.f32 %v8164_v30, %v4837_v59 }
 0x42b   : > { %4946 = vst.msk [vmem:[%s8182_s30 + $0xe0] sm:$0xff] %vm2103_vm8, %v4914_v45  ;;  %v4915_v29 = vadd.f32 %v8173_v53, %v4876_v38 }
 0x42d   : > { %4947 = vst.msk [vmem:[%s8182_s30 + $0xe8] sm:$0xff] %vm2103_vm8, %v4915_v29 }
 0x436   : > { %v4801_v4 = vpop.f32.mrb[40].mxu1 }
 0x437   : > { %v4802_v37 = vadd.f32 %v8153_v20, %v4801_v4  ;;  %v4803_v21 = vpop.f32.mrb[41].mxu1 }
 0x438   : > { %v4804_v10 = vpop.f32.mrb[42].mxu1 }
 0x439   : > { %v4838_v11 = vmax.f32 %v4802_v37, 0.0  ;;  %v4805_v26 = vadd.f32 %v8153_v20, %v4804_v10  ;;  %v4806_v5 = vpop.f32.mrb[43].mxu1 }
 0x43b   : > { %v4877_v47 = vmul.f32 %v8164_v30, %v4838_v11  ;;  %v4839_v16 = vmax.f32 %v4805_v26, 0.0 }
 0x43d   : > { %v4916_v28 = vadd.f32 %v8173_v53, %v4877_v47  ;;  %v4878_v52 = vmul.f32 %v8164_v30, %v4839_v16 }
 0x43f   : > { %4948 = vst.msk [vmem:[%s8182_s30 + $0xf0] sm:$0xff] %vm2103_vm8, %v4916_v28  ;;  %v4917_v2 = vadd.f32 %v8173_v53, %v4878_v52 }
 0x441   : > { %4949 = vst.msk [vmem:[%s8182_s30 + $0xf8] sm:$0xff] %vm2103_vm8, %v4917_v2 }
 0x442 PF: > { %s18_s27 = sadd.s32 1, %s5430_s27  }
 0x443   : > { %p15_p4 = scmp.ge.s32.totalorder %s18_s27, 4  }
 0x445   :  { %17 = sbr.rel (!%p15_p4) target bundleno = 1 (0x1), region = 86 }

</bundles_post_ra>
